<compile_context>
chip_gen: v7x
topology: tpu7x:2x2x1
jax: 0.10.0
libtpu: 0.0.40
codegen_flags: <defaults>
</compile_context>

<pallas_src>
import functools
import math

import jax
import jax.numpy as jnp
from jax.experimental import pallas as pl
from jax.experimental.pallas import tpu as pltpu


def _round_up(x, m):
    return ((x + m - 1) // m) * m


# ----------------------------------------------------------------------------- kernel
def _lstm_kernel(x_ref, w_ih0_ref, w_ih_rest_ref, w_hh_ref, b_ref, fc_w_ref, fc_b_ref,
                 out_ref, seq_scr, gates_scr, h_scr, c_scr,
                 *, seq_len, hidden_pad, t_chunk):
    """Grid point = (batch tile i, layer l).

    x_ref:         (S, TILE_B, Ip)   bf16  batch tile of the input sequence (time-major)
    w_ih0_ref:     (Ip, 4*Hp)        bf16  layer-0 input weights (VMEM-resident)
    w_ih_rest_ref: (1, Hp, 4*Hp)     bf16  this layer's input weights (entry 0 is a dummy)
    w_hh_ref:      (1, Hp, 4*Hp)     bf16  this layer's recurrent weights (streamed)
    b_ref:         (1, 1, 4*Hp)      f32   this layer's b_ih + b_hh (streamed)
    fc_w_ref:      (Hp, Op)          bf16  fc head (resident)
    fc_b_ref:      (1, Op)           f32
    out_ref:       (1, TILE_B, Op)   f32   fc(ReLU(hn[l])) for this (layer, batch tile)
    seq_scr:       (S*TILE_B, Hp)    bf16  this layer's output sequence (persists to next layer)
    gates_scr:     (T*TILE_B, 4*Hp)  f32   hoisted input projection for one chunk
    h_scr:         (TILE_B, Hp)      bf16
    c_scr:         (TILE_B, Hp)      f32
    """
    H = hidden_pad
    tb = h_scr.shape[0]
    layer = pl.program_id(1)

    # h_0 = c_0 = 0 for every layer.
    h_scr[...] = jnp.zeros_like(h_scr)
    c_scr[...] = jnp.zeros_like(c_scr)

    bias = b_ref[0]                                    # (1, 4H) f32  (read once per layer)
    w_hh = w_hh_ref[0]                                 # (Hp, 4H) bf16

    def project_chunk(t0, tc):
        # gates_in = x_t @ W_ih + b for tc timesteps as ONE large MXU matmul (hoisted out of
        # the recurrence).  Layer 0 reads the input; layers >= 1 read the previous layer's
        # output sequence from seq_scr.
        @pl.when(layer == 0)
        def _():
            xc = x_ref[pl.ds(t0, tc)]                  # (tc, TILE_B, Ip) bf16
            xc = xc.reshape(tc * tb, xc.shape[-1])
            gates_scr[0:tc * tb] = (
                jnp.dot(xc, w_ih0_ref[...], preferred_element_type=jnp.float32) + bias)

        @pl.when(layer > 0)
        def _():
            xc = seq_scr[pl.ds(t0 * tb, tc * tb)]      # (tc*TILE_B, Hp) bf16
            gates_scr[0:tc * tb] = (
                jnp.dot(xc, w_ih_rest_ref[0], preferred_element_type=jnp.float32) + bias)

    def recur_chunk(t0, tc):
        # Serial path: one MXU matmul + gate nonlinearities per step (chunk fully unrolled).
        for tt in range(tc):
            gates = (gates_scr[tt * tb:(tt + 1) * tb]
                     + jnp.dot(h_scr[...], w_hh, preferred_element_type=jnp.float32))
            # PyTorch gate order: i, f, g, o
            i_g = jax.nn.sigmoid(gates[:, 0 * H:1 * H])
            f_g = jax.nn.sigmoid(gates[:, 1 * H:2 * H])
            g_g = jnp.tanh(gates[:, 2 * H:3 * H])
            o_g = jax.nn.sigmoid(gates[:, 3 * H:4 * H])
            c_new = f_g * c_scr[...] + i_g * g_g
            h_bf = (o_g * jnp.tanh(c_new)).astype(jnp.bfloat16)   # single cast, reused below
            c_scr[...] = c_new
            h_scr[...] = h_bf
            seq_scr[pl.ds((t0 + tt) * tb, tb)] = h_bf  # next layer's input sequence

    n_full = seq_len // t_chunk
    rem = seq_len - n_full * t_chunk

    if n_full > 0:
        @pl.loop(0, n_full)
        def _(s):
            t0 = pl.multiple_of(s * t_chunk, t_chunk)
            project_chunk(t0, t_chunk)
            recur_chunk(t0, t_chunk)
    if rem > 0:
        project_chunk(n_full * t_chunk, rem)
        recur_chunk(n_full * t_chunk, rem)

    # hn[l] -> ReLU -> fc  (module applies the head to every layer's final hidden state)
    hn = jnp.maximum(h_scr[...], 0)                    # bf16
    out_ref[0] = (jnp.dot(hn, fc_w_ref[...], preferred_element_type=jnp.float32)
                  + fc_b_ref[...]).astype(out_ref.dtype)


# ----------------------------------------------------------------------------- params
def init_params(input_size, hidden_size, num_layers, output_size, key):
    """PyTorch-style init: LSTM and Linear params ~ U(-1/sqrt(H), 1/sqrt(H))."""
    raw = {"lstm": []}
    k = 1.0 / math.sqrt(hidden_size)
    for l in range(num_layers):
        in_l = input_size if l == 0 else hidden_size
        key, k1, k2, k3, k4 = jax.random.split(key, 5)
        w_ih = jax.random.uniform(k1, (4 * hidden_size, in_l), jnp.float32, -k, k)
        w_hh = jax.random.uniform(k2, (4 * hidden_size, hidden_size), jnp.float32, -k, k)
        b_ih = jax.random.uniform(k3, (4 * hidden_size,), jnp.float32, -k, k)
        b_hh = jax.random.uniform(k4, (4 * hidden_size,), jnp.float32, -k, k)
        raw["lstm"].append((w_ih, w_hh, b_ih, b_hh))
    key, k1, k2 = jax.random.split(key, 3)
    raw["fc_w"] = jax.random.uniform(k1, (output_size, hidden_size), jnp.float32, -k, k)
    raw["fc_b"] = jax.random.uniform(k2, (output_size,), jnp.float32, -k, k)
    return raw


def pack_params(raw, input_size, hidden_size, num_layers, output_size):
    """Pad/transpose params into a TPU-friendly layout; matmul operands stored as bf16."""
    H, I, O = hidden_size, input_size, output_size
    Hp, Ip, Op = _round_up(H, 128), _round_up(I, 128), _round_up(O, 128)
    G = 4 * Hp

    def pack_gate_w(w, in_dim, in_pad):
        # w: (4H, in_dim) PyTorch layout -> (in_pad, 4*Hp), x @ W layout, zero padded.
        out = jnp.zeros((in_pad, G), jnp.float32)
        for g in range(4):
            out = out.at[:in_dim, g * Hp:g * Hp + H].set(w[g * H:(g + 1) * H, :].T)
        return out.astype(jnp.bfloat16)

    def pack_bias(b_ih, b_hh):
        b = b_ih + b_hh
        out = jnp.zeros((1, G), jnp.float32)
        for g in range(4):
            out = out.at[0, g * Hp:g * Hp + H].set(b[g * H:(g + 1) * H])
        return out

    w_ih0 = pack_gate_w(raw["lstm"][0][0], I, Ip)                        # (Ip, G)

    # Per-layer streamed stacks (indexed by the layer grid axis).
    w_hh_stack = jnp.stack([pack_gate_w(raw["lstm"][l][1], H, Hp)
                            for l in range(num_layers)])                 # (L, Hp, G)
    # Input weights for layers >= 1; entry 0 is a dummy zero block (layer 0 uses w_ih0).
    w_ih_rest = [jnp.zeros((Hp, G), jnp.bfloat16)]
    for l in range(1, num_layers):
        w_ih_rest.append(pack_gate_w(raw["lstm"][l][0], H, Hp))
    w_ih_rest = jnp.stack(w_ih_rest)                                     # (L, Hp, G)
    b_stack = jnp.stack([pack_bias(raw["lstm"][l][2], raw["lstm"][l][3])
                         for l in range(num_layers)])                    # (L, 1, G)

    fc_w = jnp.zeros((Hp, Op), jnp.float32).at[:H, :O].set(raw["fc_w"].T).astype(jnp.bfloat16)
    fc_b = jnp.zeros((1, Op), jnp.float32).at[0, :O].set(raw["fc_b"])
    return dict(w_ih0=w_ih0, w_ih_rest=w_ih_rest, w_hh_stack=w_hh_stack, b_stack=b_stack,
                fc_w=fc_w, fc_b=fc_b, dims=(Ip, Hp, Op, G))


# ----------------------------------------------------------------------------- wrapper
def custom_lstm_forward(x, packed, input_size, hidden_size, num_layers, output_size,
                        *, tile_b=None, t_chunk=8):
    """x: (B, S, input_size) f32  ->  (num_layers * B, output_size) f32."""
    Ip, Hp, Op, G = packed["dims"]
    B, S, F = x.shape
    assert F == input_size

    T = max(1, min(t_chunk, S))                          # input-projection chunk length

    # --- per-generation VMEM budget / tile selection -------------------------------------
    try:
        vmem_cap = int(pltpu.get_tpu_info().vmem_capacity_bytes)
    except Exception:
        vmem_cap = 64 * 1024 * 1024                      # conservative: v7x per-TC VMEM

    budget = vmem_cap // 2

    def footprint(tb):
        blocks = 2 * (S * tb * Ip * 2                    # x block (bf16), double-buffered
                      + Ip * G * 2                       # w_ih0 (resident)
                      + Hp * G * 2                       # w_ih block (streamed per layer)
                      + Hp * G * 2                       # w_hh block (streamed per layer)
                      + G * 4                            # bias block
                      + Hp * Op * 2 + Op * 4             # fc weights / bias
                      + tb * Op * 4)                     # output block
        scratch = (S * tb * Hp * 2                       # seq_scr (bf16)
                   + T * tb * G * 4                      # gates_scr (f32)
                   + tb * Hp * 2 + tb * Hp * 4)          # h (bf16) / c (f32)
        return blocks + scratch

    b_ceiling = _round_up(B, 16)                         # min tile 16: dense bf16 packing
    if tile_b is None:
        tile = 16
        for cand in (512, 384, 256, 192, 128, 96, 64, 48, 32, 16):
            if footprint(cand) <= budget:
                tile = cand
                break
    else:
        tile = max(16, _round_up(tile_b, 16))
    tile = min(tile, b_ceiling)
    # Ensure >=2 batch tiles when possible so the "parallel" axis spans both v7x TensorCores
    # (near-free on single-TC chips: one extra grid step, smaller per-block VMEM).
    while _round_up(B, tile) // tile < 2 and tile >= 32:
        tile = _round_up(tile // 2, 16)

    B_pad = _round_up(B, tile)
    grid = (B_pad // tile, num_layers)

    vmem_limit = min(max(int(1.6 * footprint(tile)), 32 * 1024 * 1024),
                     vmem_cap - 8 * 1024 * 1024)

    # NOTE: transpose-to-time-major + pad + cast is one extra HBM round-trip before the kernel;
    # acceptable here, fuse into the upstream producer for very large S*B*I.
    x_t = jnp.transpose(x, (1, 0, 2)).astype(jnp.bfloat16)               # (S, B, I)
    x_pad = jnp.zeros((S, B_pad, Ip), jnp.bfloat16).at[:, :B, :input_size].set(x_t)

    kernel = functools.partial(_lstm_kernel, seq_len=S, hidden_pad=Hp, t_chunk=T)

    in_specs = [
        pl.BlockSpec((S, tile, Ip), lambda i, l: (0, i, 0)),   # input: batch-tiled, layer-invariant
        pl.BlockSpec((Ip, G), lambda i, l: (0, 0)),            # layer-0 W_ih: resident
        pl.BlockSpec((1, Hp, G), lambda i, l: (l, 0, 0)),      # W_ih (layers >= 1): streamed
        pl.BlockSpec((1, Hp, G), lambda i, l: (l, 0, 0)),      # W_hh: streamed per layer
        pl.BlockSpec((1, 1, G), lambda i, l: (l, 0, 0)),       # bias: streamed per layer
        pl.BlockSpec((Hp, Op), lambda i, l: (0, 0)),           # fc: resident
        pl.BlockSpec((1, Op), lambda i, l: (0, 0)),
    ]
    out_specs = pl.BlockSpec((1, tile, Op), lambda i, l: (l, i, 0))

    n_tiles = B_pad // tile
    flops = int(B_pad * S * 2 * Ip * G                            # layer-0 input projection
                + B_pad * S * (num_layers - 1) * 2 * Hp * G       # input proj, layers 1..L-1
                + B_pad * S * num_layers * 2 * Hp * G             # recurrent matmuls
                + num_layers * B_pad * 2 * Hp * Op)               # fc head
    transcendentals = int(B_pad * S * num_layers * 5 * Hp)
    bytes_accessed = int(x_pad.size * 2
                         + n_tiles * (packed["w_hh_stack"].size * 2
                                      + packed["w_ih_rest"].size * 2
                                      + packed["b_stack"].size * 4)
                         + packed["w_ih0"].size * 2 + packed["fc_w"].size * 2
                         + packed["fc_b"].size * 4
                         + num_layers * B_pad * Op * 4)

    out_pad = pl.pallas_call(
        kernel,
        out_shape=jax.ShapeDtypeStruct((num_layers, B_pad, Op), jnp.float32),
        grid_spec=pltpu.PrefetchScalarGridSpec(
            num_scalar_prefetch=0,
            grid=grid,
            in_specs=in_specs,
            out_specs=out_specs,
            scratch_shapes=[
                pltpu.VMEM((S * tile, Hp), jnp.bfloat16),   # seq_scr: layer output sequence
                pltpu.VMEM((T * tile, G), jnp.float32),     # gates_scr: hoisted projection
                pltpu.VMEM((tile, Hp), jnp.bfloat16),       # h
                pltpu.VMEM((tile, Hp), jnp.float32),        # c
            ],
        ),
        compiler_params=pltpu.CompilerParams(
            dimension_semantics=("parallel", "arbitrary"),  # batch tiles independent; layers ordered
            vmem_limit_bytes=vmem_limit,
        ),
        cost_estimate=pl.CostEstimate(flops=flops, transcendentals=transcendentals,
                                      bytes_accessed=bytes_accessed),
    )(x_pad, packed["w_ih0"], packed["w_ih_rest"], packed["w_hh_stack"],
      packed["b_stack"], packed["fc_w"], packed["fc_b"])

    # hn.view(-1, H) is layer-major; fc head already applied in-kernel -> (L*B, output_size)
    return out_pad[:, :B, :output_size].reshape(num_layers * B, output_size)


# ----------------------------------------------------------------------------- reference
def reference_forward(x, raw, hidden_size, num_layers):
    """Pure-JAX reference with the same bf16-operand / f32-accumulate matmul precision."""
    B, S, _ = x.shape
    H = hidden_size

    def dot(a, b):
        return jnp.dot(a.astype(jnp.bfloat16), b.astype(jnp.bfloat16),
                       preferred_element_type=jnp.float32)

    layer_in = x
    hns = []
    for l in range(num_layers):
        w_ih, w_hh, b_ih, b_hh = raw["lstm"][l]
        b = (b_ih + b_hh)[None, :]
        h = jnp.zeros((B, H), jnp.float32)
        c = jnp.zeros((B, H), jnp.float32)
        outs = []
        for t in range(S):
            gates = dot(layer_in[:, t, :], w_ih.T) + dot(h, w_hh.T) + b
            i = jax.nn.sigmoid(gates[:, 0 * H:1 * H])
            f = jax.nn.sigmoid(gates[:, 1 * H:2 * H])
            g = jnp.tanh(gates[:, 2 * H:3 * H])
            o = jax.nn.sigmoid(gates[:, 3 * H:4 * H])
            c = f * c + i * g
            h = o * jnp.tanh(c)
            outs.append(h)
        layer_in = jnp.stack(outs, axis=1)
        hns.append(h)
    hn = jnp.stack(hns, axis=0).reshape(-1, H)      # (L*B, H), layer-major like hn.view(-1, H)
    out = jnp.maximum(hn, 0.0)
    return dot(out, raw["fc_w"].T) + raw["fc_b"][None, :]


# ----------------------------------------------------------------------------- demo
if __name__ == "__main__":
    key = jax.random.PRNGKey(0)

    input_size, hidden_size, num_layers, output_size = 16, 32, 2, 8
    batch, seq = 24, 10          # exercises 2 batch tiles, padded rows, and a remainder chunk

    raw = init_params(input_size, hidden_size, num_layers, output_size, key)
    packed = pack_params(raw, input_size, hidden_size, num_layers, output_size)

    key, sub = jax.random.split(key)
    x = jax.random.normal(sub, (batch, seq, input_size), jnp.float32)

    out = custom_lstm_forward(x, packed, input_size, hidden_size, num_layers, output_size)
    out = jax.block_until_ready(out)

    ref = reference_forward(x, raw, hidden_size, num_layers)
    assert out.shape == (num_layers * batch, output_size), out.shape
    assert jnp.allclose(out, ref, atol=2e-3, rtol=2e-3), float(jnp.max(jnp.abs(out - ref)))

    print("KERNEL_OK")
</pallas_src>

<mosaic_0001>
module attributes {stable_mosaic.version = 11 : i64} {
  func.func @_lstm_kernel(%arg0: i32, %arg1: i32, %arg2: memref<10x16x128xbf16, #tpu.memory_space<vmem>>, %arg3: memref<128x512xbf16, #tpu.memory_space<vmem>>, %arg4: memref<1x128x512xbf16, #tpu.memory_space<vmem>>, %arg5: memref<1x128x512xbf16, #tpu.memory_space<vmem>>, %arg6: memref<1x1x512xf32, #tpu.memory_space<vmem>>, %arg7: memref<128x128xbf16, #tpu.memory_space<vmem>>, %arg8: memref<1x128xf32, #tpu.memory_space<vmem>>, %arg9: memref<1x16x128xf32, #tpu.memory_space<vmem>>, %arg10: memref<160x128xbf16, #tpu.memory_space<vmem>>, %arg11: memref<128x512xf32, #tpu.memory_space<vmem>>, %arg12: memref<16x128xbf16, #tpu.memory_space<vmem>>, %arg13: memref<16x128xf32, #tpu.memory_space<vmem>>) attributes {dimension_semantics = [#tpu.dimension_semantics<parallel>, #tpu.dimension_semantics<arbitrary>], iteration_bounds = array<i64: 2, 2>, scalar_prefetch = 0 : i64, scratch_operands = 4 : i64, tpu.core_type = #tpu.core_type<tc>, window_params = [{transform_indices = @transform_0, window_bounds = array<i64: 10, 16, 128>}, {pipeline_mode = #tpu.pipeline_mode<synchronous>, transform_indices = @transform_1, window_bounds = array<i64: 128, 512>}, {transform_indices = @transform_2, window_bounds = array<i64: 1, 128, 512>}, {transform_indices = @transform_3, window_bounds = array<i64: 1, 128, 512>}, {transform_indices = @transform_4, window_bounds = array<i64: 1, 1, 512>}, {pipeline_mode = #tpu.pipeline_mode<synchronous>, transform_indices = @transform_5, window_bounds = array<i64: 128, 128>}, {pipeline_mode = #tpu.pipeline_mode<synchronous>, transform_indices = @transform_6, window_bounds = array<i64: 1, 128>}, {transform_indices = @transform_7, window_bounds = array<i64: 1, 16, 128>}]} {
    %cst = arith.constant 0.000000e+00 : bf16
    %0 = vector.broadcast %cst : bf16 to vector<16x128xbf16>
    %c0 = arith.constant 0 : index
    %c0_0 = arith.constant 0 : index
    %1 = vector.load %arg12[%c0, %c0_0] : memref<16x128xbf16, #tpu.memory_space<vmem>>, vector<16x128xbf16>
    tpu.vector_store %arg12[%c0, %c0_0], %0 {strides = array<i32>} : memref<16x128xbf16, #tpu.memory_space<vmem>>, vector<16x128xbf16>,
    %cst_1 = arith.constant 0.000000e+00 : f32
    %2 = vector.broadcast %cst_1 : f32 to vector<16x128xf32>
    %c0_2 = arith.constant 0 : index
    %c0_3 = arith.constant 0 : index
    %3 = vector.load %arg13[%c0_2, %c0_3] : memref<16x128xf32, #tpu.memory_space<vmem>>, vector<16x128xf32>
    tpu.vector_store %arg13[%c0_2, %c0_3], %2 {strides = array<i32>} : memref<16x128xf32, #tpu.memory_space<vmem>>, vector<16x128xf32>,
    %c0_4 = arith.constant 0 : index
    %c0_5 = arith.constant 0 : index
    %c0_6 = arith.constant 0 : index
    %4 = vector.load %arg6[%c0_4, %c0_5, %c0_6] : memref<1x1x512xf32, #tpu.memory_space<vmem>>, vector<1x1x512xf32>
    %5 = vector.shape_cast %4 : vector<1x1x512xf32> to vector<1x512xf32>
    %c0_7 = arith.constant 0 : index
    %c0_8 = arith.constant 0 : index
    %c0_9 = arith.constant 0 : index
    %6 = vector.load %arg5[%c0_7, %c0_8, %c0_9] : memref<1x128x512xbf16, #tpu.memory_space<vmem>>, vector<1x128x512xbf16>
    %7 = vector.shape_cast %6 : vector<1x128x512xbf16> to vector<128x512xbf16>
    %c0_i32 = arith.constant 0 : i32
    %c1_i32 = arith.constant 1 : i32
    %8 = arith.muli %c0_i32, %c1_i32 : i32
    %c0_i32_10 = arith.constant 0 : i32
    %9 = arith.addi %c0_i32_10, %8 : i32
    %c8_i32 = arith.constant 8 : i32
    %10 = arith.muli %9, %c8_i32 : i32
    %11 = tpu.assume_multiple %10, 8 : i32
    %c0_i32_11 = arith.constant 0 : i32
    %12 = arith.cmpi eq, %arg1, %c0_i32_11 : i32
    %13 = arith.extui %12 : i1 to i32
    %c0_i32_12 = arith.constant 0 : i32
    %14 = arith.cmpi ne, %13, %c0_i32_12 : i32
    scf.if %14 {
      %399 = arith.index_cast %11 : i32 to index
      %c0_183 = arith.constant 0 : index
      %c0_184 = arith.constant 0 : index
      %400 = vector.load %arg2[%399, %c0_183, %c0_184] : memref<10x16x128xbf16, #tpu.memory_space<vmem>>, vector<8x16x128xbf16>
      %401 = vector.shape_cast %400 : vector<8x16x128xbf16> to vector<128x128xbf16>
      %c0_185 = arith.constant 0 : index
      %c0_186 = arith.constant 0 : index
      %402 = vector.load %arg3[%c0_185, %c0_186] : memref<128x512xbf16, #tpu.memory_space<vmem>>, vector<128x512xbf16>
      %cst_187 = arith.constant dense<0.000000e+00> : vector<128x512xf32>
      %403 = tpu.matmul %401, %402, %cst_187 {dimension_numbers = #tpu.dot_dimension_numbers<[1], [0], [0], [1], [0, 0, 1, 1], [], []>} : vector<128x128xbf16>, vector<128x512xbf16>, vector<128x512xf32> -> vector<128x512xf32>
      %404 = vector.broadcast %5 : vector<1x512xf32> to vector<128x512xf32>
      %405 = arith.addf %403, %404 : vector<128x512xf32>
      %c0_188 = arith.constant 0 : index
      %c0_189 = arith.constant 0 : index
      %406 = vector.load %arg11[%c0_188, %c0_189] : memref<128x512xf32, #tpu.memory_space<vmem>>, vector<128x512xf32>
      tpu.vector_store %arg11[%c0_188, %c0_189], %405 {strides = array<i32>} : memref<128x512xf32, #tpu.memory_space<vmem>>, vector<128x512xf32>,
    } else {
    }
    %c0_i32_13 = arith.constant 0 : i32
    %15 = arith.cmpi sgt, %arg1, %c0_i32_13 : i32
    %16 = arith.extui %15 : i1 to i32
    %c0_i32_14 = arith.constant 0 : i32
    %17 = arith.cmpi ne, %16, %c0_i32_14 : i32
    scf.if %17 {
      %c16_i32_183 = arith.constant 16 : i32
      %399 = arith.muli %11, %c16_i32_183 : i32
      %400 = arith.index_cast %399 : i32 to index
      %c0_184 = arith.constant 0 : index
      %401 = vector.load %arg10[%400, %c0_184] : memref<160x128xbf16, #tpu.memory_space<vmem>>, vector<128x128xbf16>
      %c0_185 = arith.constant 0 : index
      %c0_186 = arith.constant 0 : index
      %c0_187 = arith.constant 0 : index
      %402 = vector.load %arg4[%c0_185, %c0_186, %c0_187] : memref<1x128x512xbf16, #tpu.memory_space<vmem>>, vector<1x128x512xbf16>
      %403 = vector.shape_cast %402 : vector<1x128x512xbf16> to vector<128x512xbf16>
      %cst_188 = arith.constant dense<0.000000e+00> : vector<128x512xf32>
      %404 = tpu.matmul %401, %403, %cst_188 {dimension_numbers = #tpu.dot_dimension_numbers<[1], [0], [0], [1], [0, 0, 1, 1], [], []>} : vector<128x128xbf16>, vector<128x512xbf16>, vector<128x512xf32> -> vector<128x512xf32>
      %405 = vector.broadcast %5 : vector<1x512xf32> to vector<128x512xf32>
      %406 = arith.addf %404, %405 : vector<128x512xf32>
      %c0_189 = arith.constant 0 : index
      %c0_190 = arith.constant 0 : index
      %407 = vector.load %arg11[%c0_189, %c0_190] : memref<128x512xf32, #tpu.memory_space<vmem>>, vector<128x512xf32>
      tpu.vector_store %arg11[%c0_189, %c0_190], %406 {strides = array<i32>} : memref<128x512xf32, #tpu.memory_space<vmem>>, vector<128x512xf32>,
    } else {
    }
    %c0_15 = arith.constant 0 : index
    %c0_16 = arith.constant 0 : index
    %18 = vector.load %arg11[%c0_15, %c0_16] : memref<128x512xf32, #tpu.memory_space<vmem>>, vector<16x512xf32>
    %c0_17 = arith.constant 0 : index
    %c0_18 = arith.constant 0 : index
    %19 = vector.load %arg12[%c0_17, %c0_18] : memref<16x128xbf16, #tpu.memory_space<vmem>>, vector<16x128xbf16>
    %cst_19 = arith.constant dense<0.000000e+00> : vector<16x512xf32>
    %20 = tpu.matmul %19, %7, %cst_19 {dimension_numbers = #tpu.dot_dimension_numbers<[1], [0], [0], [1], [0, 0, 1, 1], [], []>} : vector<16x128xbf16>, vector<128x512xbf16>, vector<16x512xf32> -> vector<16x512xf32>
    %21 = arith.addf %18, %20 : vector<16x512xf32>
    %22 = vector.extract_strided_slice %21 {offsets = [0, 0], sizes = [16, 128], strides = [1, 1]} : vector<16x512xf32> to vector<16x128xf32>
    %23 = arith.negf %22 : vector<16x128xf32>
    %24 = math.exp %23 : vector<16x128xf32>
    %cst_20 = arith.constant 1.000000e+00 : f32
    %25 = vector.broadcast %cst_20 : f32 to vector<16x128xf32>
    %26 = arith.addf %25, %24 : vector<16x128xf32>
    %27 = arith.divf %25, %26 : vector<16x128xf32>
    %28 = vector.extract_strided_slice %21 {offsets = [0, 128], sizes = [16, 128], strides = [1, 1]} : vector<16x512xf32> to vector<16x128xf32>
    %29 = arith.negf %28 : vector<16x128xf32>
    %30 = math.exp %29 : vector<16x128xf32>
    %cst_21 = arith.constant 1.000000e+00 : f32
    %31 = vector.broadcast %cst_21 : f32 to vector<16x128xf32>
    %32 = arith.addf %31, %30 : vector<16x128xf32>
    %33 = arith.divf %31, %32 : vector<16x128xf32>
    %34 = vector.extract_strided_slice %21 {offsets = [0, 256], sizes = [16, 128], strides = [1, 1]} : vector<16x512xf32> to vector<16x128xf32>
    %35 = math.tanh %34 : vector<16x128xf32>
    %36 = vector.extract_strided_slice %21 {offsets = [0, 384], sizes = [16, 128], strides = [1, 1]} : vector<16x512xf32> to vector<16x128xf32>
    %37 = arith.negf %36 : vector<16x128xf32>
    %38 = math.exp %37 : vector<16x128xf32>
    %cst_22 = arith.constant 1.000000e+00 : f32
    %39 = vector.broadcast %cst_22 : f32 to vector<16x128xf32>
    %40 = arith.addf %39, %38 : vector<16x128xf32>
    %41 = arith.divf %39, %40 : vector<16x128xf32>
    %c0_23 = arith.constant 0 : index
    %c0_24 = arith.constant 0 : index
    %42 = vector.load %arg13[%c0_23, %c0_24] : memref<16x128xf32, #tpu.memory_space<vmem>>, vector<16x128xf32>
    %43 = arith.mulf %33, %42 : vector<16x128xf32>
    %44 = arith.mulf %27, %35 : vector<16x128xf32>
    %45 = arith.addf %43, %44 : vector<16x128xf32>
    %46 = math.tanh %45 : vector<16x128xf32>
    %47 = arith.mulf %41, %46 : vector<16x128xf32>
    %48 = arith.truncf %47 : vector<16x128xf32> to vector<16x128xbf16>
    %c0_25 = arith.constant 0 : index
    %c0_26 = arith.constant 0 : index
    %49 = vector.load %arg13[%c0_25, %c0_26] : memref<16x128xf32, #tpu.memory_space<vmem>>, vector<16x128xf32>
    tpu.vector_store %arg13[%c0_25, %c0_26], %45 {strides = array<i32>} : memref<16x128xf32, #tpu.memory_space<vmem>>, vector<16x128xf32>,
    %c0_27 = arith.constant 0 : index
    %c0_28 = arith.constant 0 : index
    %50 = vector.load %arg12[%c0_27, %c0_28] : memref<16x128xbf16, #tpu.memory_space<vmem>>, vector<16x128xbf16>
    tpu.vector_store %arg12[%c0_27, %c0_28], %48 {strides = array<i32>} : memref<16x128xbf16, #tpu.memory_space<vmem>>, vector<16x128xbf16>,
    %c0_i32_29 = arith.constant 0 : i32
    %51 = arith.addi %11, %c0_i32_29 : i32
    %c16_i32 = arith.constant 16 : i32
    %52 = arith.muli %51, %c16_i32 : i32
    %53 = arith.index_cast %52 : i32 to index
    %c0_30 = arith.constant 0 : index
    %54 = vector.load %arg10[%53, %c0_30] : memref<160x128xbf16, #tpu.memory_space<vmem>>, vector<16x128xbf16>
    tpu.vector_store %arg10[%53, %c0_30], %48 {strides = array<i32>} : memref<160x128xbf16, #tpu.memory_space<vmem>>, vector<16x128xbf16>,
    %c16 = arith.constant 16 : index
    %c0_31 = arith.constant 0 : index
    %55 = vector.load %arg11[%c16, %c0_31] : memref<128x512xf32, #tpu.memory_space<vmem>>, vector<16x512xf32>
    %c0_32 = arith.constant 0 : index
    %c0_33 = arith.constant 0 : index
    %56 = vector.load %arg12[%c0_32, %c0_33] : memref<16x128xbf16, #tpu.memory_space<vmem>>, vector<16x128xbf16>
    %cst_34 = arith.constant dense<0.000000e+00> : vector<16x512xf32>
    %57 = tpu.matmul %56, %7, %cst_34 {dimension_numbers = #tpu.dot_dimension_numbers<[1], [0], [0], [1], [0, 0, 1, 1], [], []>} : vector<16x128xbf16>, vector<128x512xbf16>, vector<16x512xf32> -> vector<16x512xf32>
    %58 = arith.addf %55, %57 : vector<16x512xf32>
    %59 = vector.extract_strided_slice %58 {offsets = [0, 0], sizes = [16, 128], strides = [1, 1]} : vector<16x512xf32> to vector<16x128xf32>
    %60 = arith.negf %59 : vector<16x128xf32>
    %61 = math.exp %60 : vector<16x128xf32>
    %cst_35 = arith.constant 1.000000e+00 : f32
    %62 = vector.broadcast %cst_35 : f32 to vector<16x128xf32>
    %63 = arith.addf %62, %61 : vector<16x128xf32>
    %64 = arith.divf %62, %63 : vector<16x128xf32>
    %65 = vector.extract_strided_slice %58 {offsets = [0, 128], sizes = [16, 128], strides = [1, 1]} : vector<16x512xf32> to vector<16x128xf32>
    %66 = arith.negf %65 : vector<16x128xf32>
    %67 = math.exp %66 : vector<16x128xf32>
    %cst_36 = arith.constant 1.000000e+00 : f32
    %68 = vector.broadcast %cst_36 : f32 to vector<16x128xf32>
    %69 = arith.addf %68, %67 : vector<16x128xf32>
    %70 = arith.divf %68, %69 : vector<16x128xf32>
    %71 = vector.extract_strided_slice %58 {offsets = [0, 256], sizes = [16, 128], strides = [1, 1]} : vector<16x512xf32> to vector<16x128xf32>
    %72 = math.tanh %71 : vector<16x128xf32>
    %73 = vector.extract_strided_slice %58 {offsets = [0, 384], sizes = [16, 128], strides = [1, 1]} : vector<16x512xf32> to vector<16x128xf32>
    %74 = arith.negf %73 : vector<16x128xf32>
    %75 = math.exp %74 : vector<16x128xf32>
    %cst_37 = arith.constant 1.000000e+00 : f32
    %76 = vector.broadcast %cst_37 : f32 to vector<16x128xf32>
    %77 = arith.addf %76, %75 : vector<16x128xf32>
    %78 = arith.divf %76, %77 : vector<16x128xf32>
    %c0_38 = arith.constant 0 : index
    %c0_39 = arith.constant 0 : index
    %79 = vector.load %arg13[%c0_38, %c0_39] : memref<16x128xf32, #tpu.memory_space<vmem>>, vector<16x128xf32>
    %80 = arith.mulf %70, %79 : vector<16x128xf32>
    %81 = arith.mulf %64, %72 : vector<16x128xf32>
    %82 = arith.addf %80, %81 : vector<16x128xf32>
    %83 = math.tanh %82 : vector<16x128xf32>
    %84 = arith.mulf %78, %83 : vector<16x128xf32>
    %85 = arith.truncf %84 : vector<16x128xf32> to vector<16x128xbf16>
    %c0_40 = arith.constant 0 : index
    %c0_41 = arith.constant 0 : index
    %86 = vector.load %arg13[%c0_40, %c0_41] : memref<16x128xf32, #tpu.memory_space<vmem>>, vector<16x128xf32>
    tpu.vector_store %arg13[%c0_40, %c0_41], %82 {strides = array<i32>} : memref<16x128xf32, #tpu.memory_space<vmem>>, vector<16x128xf32>,
    %c0_42 = arith.constant 0 : index
    %c0_43 = arith.constant 0 : index
    %87 = vector.load %arg12[%c0_42, %c0_43] : memref<16x128xbf16, #tpu.memory_space<vmem>>, vector<16x128xbf16>
    tpu.vector_store %arg12[%c0_42, %c0_43], %85 {strides = array<i32>} : memref<16x128xbf16, #tpu.memory_space<vmem>>, vector<16x128xbf16>,
    %c1_i32_44 = arith.constant 1 : i32
    %88 = arith.addi %11, %c1_i32_44 : i32
    %c16_i32_45 = arith.constant 16 : i32
    %89 = arith.muli %88, %c16_i32_45 : i32
    %90 = arith.index_cast %89 : i32 to index
    %c0_46 = arith.constant 0 : index
    %91 = vector.load %arg10[%90, %c0_46] : memref<160x128xbf16, #tpu.memory_space<vmem>>, vector<16x128xbf16>
    tpu.vector_store %arg10[%90, %c0_46], %85 {strides = array<i32>} : memref<160x128xbf16, #tpu.memory_space<vmem>>, vector<16x128xbf16>,
    %c32 = arith.constant 32 : index
    %c0_47 = arith.constant 0 : index
    %92 = vector.load %arg11[%c32, %c0_47] : memref<128x512xf32, #tpu.memory_space<vmem>>, vector<16x512xf32>
    %c0_48 = arith.constant 0 : index
    %c0_49 = arith.constant 0 : index
    %93 = vector.load %arg12[%c0_48, %c0_49] : memref<16x128xbf16, #tpu.memory_space<vmem>>, vector<16x128xbf16>
    %cst_50 = arith.constant dense<0.000000e+00> : vector<16x512xf32>
    %94 = tpu.matmul %93, %7, %cst_50 {dimension_numbers = #tpu.dot_dimension_numbers<[1], [0], [0], [1], [0, 0, 1, 1], [], []>} : vector<16x128xbf16>, vector<128x512xbf16>, vector<16x512xf32> -> vector<16x512xf32>
    %95 = arith.addf %92, %94 : vector<16x512xf32>
    %96 = vector.extract_strided_slice %95 {offsets = [0, 0], sizes = [16, 128], strides = [1, 1]} : vector<16x512xf32> to vector<16x128xf32>
    %97 = arith.negf %96 : vector<16x128xf32>
    %98 = math.exp %97 : vector<16x128xf32>
    %cst_51 = arith.constant 1.000000e+00 : f32
    %99 = vector.broadcast %cst_51 : f32 to vector<16x128xf32>
    %100 = arith.addf %99, %98 : vector<16x128xf32>
    %101 = arith.divf %99, %100 : vector<16x128xf32>
    %102 = vector.extract_strided_slice %95 {offsets = [0, 128], sizes = [16, 128], strides = [1, 1]} : vector<16x512xf32> to vector<16x128xf32>
    %103 = arith.negf %102 : vector<16x128xf32>
    %104 = math.exp %103 : vector<16x128xf32>
    %cst_52 = arith.constant 1.000000e+00 : f32
    %105 = vector.broadcast %cst_52 : f32 to vector<16x128xf32>
    %106 = arith.addf %105, %104 : vector<16x128xf32>
    %107 = arith.divf %105, %106 : vector<16x128xf32>
    %108 = vector.extract_strided_slice %95 {offsets = [0, 256], sizes = [16, 128], strides = [1, 1]} : vector<16x512xf32> to vector<16x128xf32>
    %109 = math.tanh %108 : vector<16x128xf32>
    %110 = vector.extract_strided_slice %95 {offsets = [0, 384], sizes = [16, 128], strides = [1, 1]} : vector<16x512xf32> to vector<16x128xf32>
    %111 = arith.negf %110 : vector<16x128xf32>
    %112 = math.exp %111 : vector<16x128xf32>
    %cst_53 = arith.constant 1.000000e+00 : f32
    %113 = vector.broadcast %cst_53 : f32 to vector<16x128xf32>
    %114 = arith.addf %113, %112 : vector<16x128xf32>
    %115 = arith.divf %113, %114 : vector<16x128xf32>
    %c0_54 = arith.constant 0 : index
    %c0_55 = arith.constant 0 : index
    %116 = vector.load %arg13[%c0_54, %c0_55] : memref<16x128xf32, #tpu.memory_space<vmem>>, vector<16x128xf32>
    %117 = arith.mulf %107, %116 : vector<16x128xf32>
    %118 = arith.mulf %101, %109 : vector<16x128xf32>
    %119 = arith.addf %117, %118 : vector<16x128xf32>
    %120 = math.tanh %119 : vector<16x128xf32>
    %121 = arith.mulf %115, %120 : vector<16x128xf32>
    %122 = arith.truncf %121 : vector<16x128xf32> to vector<16x128xbf16>
    %c0_56 = arith.constant 0 : index
    %c0_57 = arith.constant 0 : index
    %123 = vector.load %arg13[%c0_56, %c0_57] : memref<16x128xf32, #tpu.memory_space<vmem>>, vector<16x128xf32>
    tpu.vector_store %arg13[%c0_56, %c0_57], %119 {strides = array<i32>} : memref<16x128xf32, #tpu.memory_space<vmem>>, vector<16x128xf32>,
    %c0_58 = arith.constant 0 : index
    %c0_59 = arith.constant 0 : index
    %124 = vector.load %arg12[%c0_58, %c0_59] : memref<16x128xbf16, #tpu.memory_space<vmem>>, vector<16x128xbf16>
    tpu.vector_store %arg12[%c0_58, %c0_59], %122 {strides = array<i32>} : memref<16x128xbf16, #tpu.memory_space<vmem>>, vector<16x128xbf16>,
    %c2_i32 = arith.constant 2 : i32
    %125 = arith.addi %11, %c2_i32 : i32
    %c16_i32_60 = arith.constant 16 : i32
    %126 = arith.muli %125, %c16_i32_60 : i32
    %127 = arith.index_cast %126 : i32 to index
    %c0_61 = arith.constant 0 : index
    %128 = vector.load %arg10[%127, %c0_61] : memref<160x128xbf16, #tpu.memory_space<vmem>>, vector<16x128xbf16>
    tpu.vector_store %arg10[%127, %c0_61], %122 {strides = array<i32>} : memref<160x128xbf16, #tpu.memory_space<vmem>>, vector<16x128xbf16>,
    %c48 = arith.constant 48 : index
    %c0_62 = arith.constant 0 : index
    %129 = vector.load %arg11[%c48, %c0_62] : memref<128x512xf32, #tpu.memory_space<vmem>>, vector<16x512xf32>
    %c0_63 = arith.constant 0 : index
    %c0_64 = arith.constant 0 : index
    %130 = vector.load %arg12[%c0_63, %c0_64] : memref<16x128xbf16, #tpu.memory_space<vmem>>, vector<16x128xbf16>
    %cst_65 = arith.constant dense<0.000000e+00> : vector<16x512xf32>
    %131 = tpu.matmul %130, %7, %cst_65 {dimension_numbers = #tpu.dot_dimension_numbers<[1], [0], [0], [1], [0, 0, 1, 1], [], []>} : vector<16x128xbf16>, vector<128x512xbf16>, vector<16x512xf32> -> vector<16x512xf32>
    %132 = arith.addf %129, %131 : vector<16x512xf32>
    %133 = vector.extract_strided_slice %132 {offsets = [0, 0], sizes = [16, 128], strides = [1, 1]} : vector<16x512xf32> to vector<16x128xf32>
    %134 = arith.negf %133 : vector<16x128xf32>
    %135 = math.exp %134 : vector<16x128xf32>
    %cst_66 = arith.constant 1.000000e+00 : f32
    %136 = vector.broadcast %cst_66 : f32 to vector<16x128xf32>
    %137 = arith.addf %136, %135 : vector<16x128xf32>
    %138 = arith.divf %136, %137 : vector<16x128xf32>
    %139 = vector.extract_strided_slice %132 {offsets = [0, 128], sizes = [16, 128], strides = [1, 1]} : vector<16x512xf32> to vector<16x128xf32>
    %140 = arith.negf %139 : vector<16x128xf32>
    %141 = math.exp %140 : vector<16x128xf32>
    %cst_67 = arith.constant 1.000000e+00 : f32
    %142 = vector.broadcast %cst_67 : f32 to vector<16x128xf32>
    %143 = arith.addf %142, %141 : vector<16x128xf32>
    %144 = arith.divf %142, %143 : vector<16x128xf32>
    %145 = vector.extract_strided_slice %132 {offsets = [0, 256], sizes = [16, 128], strides = [1, 1]} : vector<16x512xf32> to vector<16x128xf32>
    %146 = math.tanh %145 : vector<16x128xf32>
    %147 = vector.extract_strided_slice %132 {offsets = [0, 384], sizes = [16, 128], strides = [1, 1]} : vector<16x512xf32> to vector<16x128xf32>
    %148 = arith.negf %147 : vector<16x128xf32>
    %149 = math.exp %148 : vector<16x128xf32>
    %cst_68 = arith.constant 1.000000e+00 : f32
    %150 = vector.broadcast %cst_68 : f32 to vector<16x128xf32>
    %151 = arith.addf %150, %149 : vector<16x128xf32>
    %152 = arith.divf %150, %151 : vector<16x128xf32>
    %c0_69 = arith.constant 0 : index
    %c0_70 = arith.constant 0 : index
    %153 = vector.load %arg13[%c0_69, %c0_70] : memref<16x128xf32, #tpu.memory_space<vmem>>, vector<16x128xf32>
    %154 = arith.mulf %144, %153 : vector<16x128xf32>
    %155 = arith.mulf %138, %146 : vector<16x128xf32>
    %156 = arith.addf %154, %155 : vector<16x128xf32>
    %157 = math.tanh %156 : vector<16x128xf32>
    %158 = arith.mulf %152, %157 : vector<16x128xf32>
    %159 = arith.truncf %158 : vector<16x128xf32> to vector<16x128xbf16>
    %c0_71 = arith.constant 0 : index
    %c0_72 = arith.constant 0 : index
    %160 = vector.load %arg13[%c0_71, %c0_72] : memref<16x128xf32, #tpu.memory_space<vmem>>, vector<16x128xf32>
    tpu.vector_store %arg13[%c0_71, %c0_72], %156 {strides = array<i32>} : memref<16x128xf32, #tpu.memory_space<vmem>>, vector<16x128xf32>,
    %c0_73 = arith.constant 0 : index
    %c0_74 = arith.constant 0 : index
    %161 = vector.load %arg12[%c0_73, %c0_74] : memref<16x128xbf16, #tpu.memory_space<vmem>>, vector<16x128xbf16>
    tpu.vector_store %arg12[%c0_73, %c0_74], %159 {strides = array<i32>} : memref<16x128xbf16, #tpu.memory_space<vmem>>, vector<16x128xbf16>,
    %c3_i32 = arith.constant 3 : i32
    %162 = arith.addi %11, %c3_i32 : i32
    %c16_i32_75 = arith.constant 16 : i32
    %163 = arith.muli %162, %c16_i32_75 : i32
    %164 = arith.index_cast %163 : i32 to index
    %c0_76 = arith.constant 0 : index
    %165 = vector.load %arg10[%164, %c0_76] : memref<160x128xbf16, #tpu.memory_space<vmem>>, vector<16x128xbf16>
    tpu.vector_store %arg10[%164, %c0_76], %159 {strides = array<i32>} : memref<160x128xbf16, #tpu.memory_space<vmem>>, vector<16x128xbf16>,
    %c64 = arith.constant 64 : index
    %c0_77 = arith.constant 0 : index
    %166 = vector.load %arg11[%c64, %c0_77] : memref<128x512xf32, #tpu.memory_space<vmem>>, vector<16x512xf32>
    %c0_78 = arith.constant 0 : index
    %c0_79 = arith.constant 0 : index
    %167 = vector.load %arg12[%c0_78, %c0_79] : memref<16x128xbf16, #tpu.memory_space<vmem>>, vector<16x128xbf16>
    %cst_80 = arith.constant dense<0.000000e+00> : vector<16x512xf32>
    %168 = tpu.matmul %167, %7, %cst_80 {dimension_numbers = #tpu.dot_dimension_numbers<[1], [0], [0], [1], [0, 0, 1, 1], [], []>} : vector<16x128xbf16>, vector<128x512xbf16>, vector<16x512xf32> -> vector<16x512xf32>
    %169 = arith.addf %166, %168 : vector<16x512xf32>
    %170 = vector.extract_strided_slice %169 {offsets = [0, 0], sizes = [16, 128], strides = [1, 1]} : vector<16x512xf32> to vector<16x128xf32>
    %171 = arith.negf %170 : vector<16x128xf32>
    %172 = math.exp %171 : vector<16x128xf32>
    %cst_81 = arith.constant 1.000000e+00 : f32
    %173 = vector.broadcast %cst_81 : f32 to vector<16x128xf32>
    %174 = arith.addf %173, %172 : vector<16x128xf32>
    %175 = arith.divf %173, %174 : vector<16x128xf32>
    %176 = vector.extract_strided_slice %169 {offsets = [0, 128], sizes = [16, 128], strides = [1, 1]} : vector<16x512xf32> to vector<16x128xf32>
    %177 = arith.negf %176 : vector<16x128xf32>
    %178 = math.exp %177 : vector<16x128xf32>
    %cst_82 = arith.constant 1.000000e+00 : f32
    %179 = vector.broadcast %cst_82 : f32 to vector<16x128xf32>
    %180 = arith.addf %179, %178 : vector<16x128xf32>
    %181 = arith.divf %179, %180 : vector<16x128xf32>
    %182 = vector.extract_strided_slice %169 {offsets = [0, 256], sizes = [16, 128], strides = [1, 1]} : vector<16x512xf32> to vector<16x128xf32>
    %183 = math.tanh %182 : vector<16x128xf32>
    %184 = vector.extract_strided_slice %169 {offsets = [0, 384], sizes = [16, 128], strides = [1, 1]} : vector<16x512xf32> to vector<16x128xf32>
    %185 = arith.negf %184 : vector<16x128xf32>
    %186 = math.exp %185 : vector<16x128xf32>
    %cst_83 = arith.constant 1.000000e+00 : f32
    %187 = vector.broadcast %cst_83 : f32 to vector<16x128xf32>
    %188 = arith.addf %187, %186 : vector<16x128xf32>
    %189 = arith.divf %187, %188 : vector<16x128xf32>
    %c0_84 = arith.constant 0 : index
    %c0_85 = arith.constant 0 : index
    %190 = vector.load %arg13[%c0_84, %c0_85] : memref<16x128xf32, #tpu.memory_space<vmem>>, vector<16x128xf32>
    %191 = arith.mulf %181, %190 : vector<16x128xf32>
    %192 = arith.mulf %175, %183 : vector<16x128xf32>
    %193 = arith.addf %191, %192 : vector<16x128xf32>
    %194 = math.tanh %193 : vector<16x128xf32>
    %195 = arith.mulf %189, %194 : vector<16x128xf32>
    %196 = arith.truncf %195 : vector<16x128xf32> to vector<16x128xbf16>
    %c0_86 = arith.constant 0 : index
    %c0_87 = arith.constant 0 : index
    %197 = vector.load %arg13[%c0_86, %c0_87] : memref<16x128xf32, #tpu.memory_space<vmem>>, vector<16x128xf32>
    tpu.vector_store %arg13[%c0_86, %c0_87], %193 {strides = array<i32>} : memref<16x128xf32, #tpu.memory_space<vmem>>, vector<16x128xf32>,
    %c0_88 = arith.constant 0 : index
    %c0_89 = arith.constant 0 : index
    %198 = vector.load %arg12[%c0_88, %c0_89] : memref<16x128xbf16, #tpu.memory_space<vmem>>, vector<16x128xbf16>
    tpu.vector_store %arg12[%c0_88, %c0_89], %196 {strides = array<i32>} : memref<16x128xbf16, #tpu.memory_space<vmem>>, vector<16x128xbf16>,
    %c4_i32 = arith.constant 4 : i32
    %199 = arith.addi %11, %c4_i32 : i32
    %c16_i32_90 = arith.constant 16 : i32
    %200 = arith.muli %199, %c16_i32_90 : i32
    %201 = arith.index_cast %200 : i32 to index
    %c0_91 = arith.constant 0 : index
    %202 = vector.load %arg10[%201, %c0_91] : memref<160x128xbf16, #tpu.memory_space<vmem>>, vector<16x128xbf16>
    tpu.vector_store %arg10[%201, %c0_91], %196 {strides = array<i32>} : memref<160x128xbf16, #tpu.memory_space<vmem>>, vector<16x128xbf16>,
    %c80 = arith.constant 80 : index
    %c0_92 = arith.constant 0 : index
    %203 = vector.load %arg11[%c80, %c0_92] : memref<128x512xf32, #tpu.memory_space<vmem>>, vector<16x512xf32>
    %c0_93 = arith.constant 0 : index
    %c0_94 = arith.constant 0 : index
    %204 = vector.load %arg12[%c0_93, %c0_94] : memref<16x128xbf16, #tpu.memory_space<vmem>>, vector<16x128xbf16>
    %cst_95 = arith.constant dense<0.000000e+00> : vector<16x512xf32>
    %205 = tpu.matmul %204, %7, %cst_95 {dimension_numbers = #tpu.dot_dimension_numbers<[1], [0], [0], [1], [0, 0, 1, 1], [], []>} : vector<16x128xbf16>, vector<128x512xbf16>, vector<16x512xf32> -> vector<16x512xf32>
    %206 = arith.addf %203, %205 : vector<16x512xf32>
    %207 = vector.extract_strided_slice %206 {offsets = [0, 0], sizes = [16, 128], strides = [1, 1]} : vector<16x512xf32> to vector<16x128xf32>
    %208 = arith.negf %207 : vector<16x128xf32>
    %209 = math.exp %208 : vector<16x128xf32>
    %cst_96 = arith.constant 1.000000e+00 : f32
    %210 = vector.broadcast %cst_96 : f32 to vector<16x128xf32>
    %211 = arith.addf %210, %209 : vector<16x128xf32>
    %212 = arith.divf %210, %211 : vector<16x128xf32>
    %213 = vector.extract_strided_slice %206 {offsets = [0, 128], sizes = [16, 128], strides = [1, 1]} : vector<16x512xf32> to vector<16x128xf32>
    %214 = arith.negf %213 : vector<16x128xf32>
    %215 = math.exp %214 : vector<16x128xf32>
    %cst_97 = arith.constant 1.000000e+00 : f32
    %216 = vector.broadcast %cst_97 : f32 to vector<16x128xf32>
    %217 = arith.addf %216, %215 : vector<16x128xf32>
    %218 = arith.divf %216, %217 : vector<16x128xf32>
    %219 = vector.extract_strided_slice %206 {offsets = [0, 256], sizes = [16, 128], strides = [1, 1]} : vector<16x512xf32> to vector<16x128xf32>
    %220 = math.tanh %219 : vector<16x128xf32>
    %221 = vector.extract_strided_slice %206 {offsets = [0, 384], sizes = [16, 128], strides = [1, 1]} : vector<16x512xf32> to vector<16x128xf32>
    %222 = arith.negf %221 : vector<16x128xf32>
    %223 = math.exp %222 : vector<16x128xf32>
    %cst_98 = arith.constant 1.000000e+00 : f32
    %224 = vector.broadcast %cst_98 : f32 to vector<16x128xf32>
    %225 = arith.addf %224, %223 : vector<16x128xf32>
    %226 = arith.divf %224, %225 : vector<16x128xf32>
    %c0_99 = arith.constant 0 : index
    %c0_100 = arith.constant 0 : index
    %227 = vector.load %arg13[%c0_99, %c0_100] : memref<16x128xf32, #tpu.memory_space<vmem>>, vector<16x128xf32>
    %228 = arith.mulf %218, %227 : vector<16x128xf32>
    %229 = arith.mulf %212, %220 : vector<16x128xf32>
    %230 = arith.addf %228, %229 : vector<16x128xf32>
    %231 = math.tanh %230 : vector<16x128xf32>
    %232 = arith.mulf %226, %231 : vector<16x128xf32>
    %233 = arith.truncf %232 : vector<16x128xf32> to vector<16x128xbf16>
    %c0_101 = arith.constant 0 : index
    %c0_102 = arith.constant 0 : index
    %234 = vector.load %arg13[%c0_101, %c0_102] : memref<16x128xf32, #tpu.memory_space<vmem>>, vector<16x128xf32>
    tpu.vector_store %arg13[%c0_101, %c0_102], %230 {strides = array<i32>} : memref<16x128xf32, #tpu.memory_space<vmem>>, vector<16x128xf32>,
    %c0_103 = arith.constant 0 : index
    %c0_104 = arith.constant 0 : index
    %235 = vector.load %arg12[%c0_103, %c0_104] : memref<16x128xbf16, #tpu.memory_space<vmem>>, vector<16x128xbf16>
    tpu.vector_store %arg12[%c0_103, %c0_104], %233 {strides = array<i32>} : memref<16x128xbf16, #tpu.memory_space<vmem>>, vector<16x128xbf16>,
    %c5_i32 = arith.constant 5 : i32
    %236 = arith.addi %11, %c5_i32 : i32
    %c16_i32_105 = arith.constant 16 : i32
    %237 = arith.muli %236, %c16_i32_105 : i32
    %238 = arith.index_cast %237 : i32 to index
    %c0_106 = arith.constant 0 : index
    %239 = vector.load %arg10[%238, %c0_106] : memref<160x128xbf16, #tpu.memory_space<vmem>>, vector<16x128xbf16>
    tpu.vector_store %arg10[%238, %c0_106], %233 {strides = array<i32>} : memref<160x128xbf16, #tpu.memory_space<vmem>>, vector<16x128xbf16>,
    %c96 = arith.constant 96 : index
    %c0_107 = arith.constant 0 : index
    %240 = vector.load %arg11[%c96, %c0_107] : memref<128x512xf32, #tpu.memory_space<vmem>>, vector<16x512xf32>
    %c0_108 = arith.constant 0 : index
    %c0_109 = arith.constant 0 : index
    %241 = vector.load %arg12[%c0_108, %c0_109] : memref<16x128xbf16, #tpu.memory_space<vmem>>, vector<16x128xbf16>
    %cst_110 = arith.constant dense<0.000000e+00> : vector<16x512xf32>
    %242 = tpu.matmul %241, %7, %cst_110 {dimension_numbers = #tpu.dot_dimension_numbers<[1], [0], [0], [1], [0, 0, 1, 1], [], []>} : vector<16x128xbf16>, vector<128x512xbf16>, vector<16x512xf32> -> vector<16x512xf32>
    %243 = arith.addf %240, %242 : vector<16x512xf32>
    %244 = vector.extract_strided_slice %243 {offsets = [0, 0], sizes = [16, 128], strides = [1, 1]} : vector<16x512xf32> to vector<16x128xf32>
    %245 = arith.negf %244 : vector<16x128xf32>
    %246 = math.exp %245 : vector<16x128xf32>
    %cst_111 = arith.constant 1.000000e+00 : f32
    %247 = vector.broadcast %cst_111 : f32 to vector<16x128xf32>
    %248 = arith.addf %247, %246 : vector<16x128xf32>
    %249 = arith.divf %247, %248 : vector<16x128xf32>
    %250 = vector.extract_strided_slice %243 {offsets = [0, 128], sizes = [16, 128], strides = [1, 1]} : vector<16x512xf32> to vector<16x128xf32>
    %251 = arith.negf %250 : vector<16x128xf32>
    %252 = math.exp %251 : vector<16x128xf32>
    %cst_112 = arith.constant 1.000000e+00 : f32
    %253 = vector.broadcast %cst_112 : f32 to vector<16x128xf32>
    %254 = arith.addf %253, %252 : vector<16x128xf32>
    %255 = arith.divf %253, %254 : vector<16x128xf32>
    %256 = vector.extract_strided_slice %243 {offsets = [0, 256], sizes = [16, 128], strides = [1, 1]} : vector<16x512xf32> to vector<16x128xf32>
    %257 = math.tanh %256 : vector<16x128xf32>
    %258 = vector.extract_strided_slice %243 {offsets = [0, 384], sizes = [16, 128], strides = [1, 1]} : vector<16x512xf32> to vector<16x128xf32>
    %259 = arith.negf %258 : vector<16x128xf32>
    %260 = math.exp %259 : vector<16x128xf32>
    %cst_113 = arith.constant 1.000000e+00 : f32
    %261 = vector.broadcast %cst_113 : f32 to vector<16x128xf32>
    %262 = arith.addf %261, %260 : vector<16x128xf32>
    %263 = arith.divf %261, %262 : vector<16x128xf32>
    %c0_114 = arith.constant 0 : index
    %c0_115 = arith.constant 0 : index
    %264 = vector.load %arg13[%c0_114, %c0_115] : memref<16x128xf32, #tpu.memory_space<vmem>>, vector<16x128xf32>
    %265 = arith.mulf %255, %264 : vector<16x128xf32>
    %266 = arith.mulf %249, %257 : vector<16x128xf32>
    %267 = arith.addf %265, %266 : vector<16x128xf32>
    %268 = math.tanh %267 : vector<16x128xf32>
    %269 = arith.mulf %263, %268 : vector<16x128xf32>
    %270 = arith.truncf %269 : vector<16x128xf32> to vector<16x128xbf16>
    %c0_116 = arith.constant 0 : index
    %c0_117 = arith.constant 0 : index
    %271 = vector.load %arg13[%c0_116, %c0_117] : memref<16x128xf32, #tpu.memory_space<vmem>>, vector<16x128xf32>
    tpu.vector_store %arg13[%c0_116, %c0_117], %267 {strides = array<i32>} : memref<16x128xf32, #tpu.memory_space<vmem>>, vector<16x128xf32>,
    %c0_118 = arith.constant 0 : index
    %c0_119 = arith.constant 0 : index
    %272 = vector.load %arg12[%c0_118, %c0_119] : memref<16x128xbf16, #tpu.memory_space<vmem>>, vector<16x128xbf16>
    tpu.vector_store %arg12[%c0_118, %c0_119], %270 {strides = array<i32>} : memref<16x128xbf16, #tpu.memory_space<vmem>>, vector<16x128xbf16>,
    %c6_i32 = arith.constant 6 : i32
    %273 = arith.addi %11, %c6_i32 : i32
    %c16_i32_120 = arith.constant 16 : i32
    %274 = arith.muli %273, %c16_i32_120 : i32
    %275 = arith.index_cast %274 : i32 to index
    %c0_121 = arith.constant 0 : index
    %276 = vector.load %arg10[%275, %c0_121] : memref<160x128xbf16, #tpu.memory_space<vmem>>, vector<16x128xbf16>
    tpu.vector_store %arg10[%275, %c0_121], %270 {strides = array<i32>} : memref<160x128xbf16, #tpu.memory_space<vmem>>, vector<16x128xbf16>,
    %c112 = arith.constant 112 : index
    %c0_122 = arith.constant 0 : index
    %277 = vector.load %arg11[%c112, %c0_122] : memref<128x512xf32, #tpu.memory_space<vmem>>, vector<16x512xf32>
    %c0_123 = arith.constant 0 : index
    %c0_124 = arith.constant 0 : index
    %278 = vector.load %arg12[%c0_123, %c0_124] : memref<16x128xbf16, #tpu.memory_space<vmem>>, vector<16x128xbf16>
    %cst_125 = arith.constant dense<0.000000e+00> : vector<16x512xf32>
    %279 = tpu.matmul %278, %7, %cst_125 {dimension_numbers = #tpu.dot_dimension_numbers<[1], [0], [0], [1], [0, 0, 1, 1], [], []>} : vector<16x128xbf16>, vector<128x512xbf16>, vector<16x512xf32> -> vector<16x512xf32>
    %280 = arith.addf %277, %279 : vector<16x512xf32>
    %281 = vector.extract_strided_slice %280 {offsets = [0, 0], sizes = [16, 128], strides = [1, 1]} : vector<16x512xf32> to vector<16x128xf32>
    %282 = arith.negf %281 : vector<16x128xf32>
    %283 = math.exp %282 : vector<16x128xf32>
    %cst_126 = arith.constant 1.000000e+00 : f32
    %284 = vector.broadcast %cst_126 : f32 to vector<16x128xf32>
    %285 = arith.addf %284, %283 : vector<16x128xf32>
    %286 = arith.divf %284, %285 : vector<16x128xf32>
    %287 = vector.extract_strided_slice %280 {offsets = [0, 128], sizes = [16, 128], strides = [1, 1]} : vector<16x512xf32> to vector<16x128xf32>
    %288 = arith.negf %287 : vector<16x128xf32>
    %289 = math.exp %288 : vector<16x128xf32>
    %cst_127 = arith.constant 1.000000e+00 : f32
    %290 = vector.broadcast %cst_127 : f32 to vector<16x128xf32>
    %291 = arith.addf %290, %289 : vector<16x128xf32>
    %292 = arith.divf %290, %291 : vector<16x128xf32>
    %293 = vector.extract_strided_slice %280 {offsets = [0, 256], sizes = [16, 128], strides = [1, 1]} : vector<16x512xf32> to vector<16x128xf32>
    %294 = math.tanh %293 : vector<16x128xf32>
    %295 = vector.extract_strided_slice %280 {offsets = [0, 384], sizes = [16, 128], strides = [1, 1]} : vector<16x512xf32> to vector<16x128xf32>
    %296 = arith.negf %295 : vector<16x128xf32>
    %297 = math.exp %296 : vector<16x128xf32>
    %cst_128 = arith.constant 1.000000e+00 : f32
    %298 = vector.broadcast %cst_128 : f32 to vector<16x128xf32>
    %299 = arith.addf %298, %297 : vector<16x128xf32>
    %300 = arith.divf %298, %299 : vector<16x128xf32>
    %c0_129 = arith.constant 0 : index
    %c0_130 = arith.constant 0 : index
    %301 = vector.load %arg13[%c0_129, %c0_130] : memref<16x128xf32, #tpu.memory_space<vmem>>, vector<16x128xf32>
    %302 = arith.mulf %292, %301 : vector<16x128xf32>
    %303 = arith.mulf %286, %294 : vector<16x128xf32>
    %304 = arith.addf %302, %303 : vector<16x128xf32>
    %305 = math.tanh %304 : vector<16x128xf32>
    %306 = arith.mulf %300, %305 : vector<16x128xf32>
    %307 = arith.truncf %306 : vector<16x128xf32> to vector<16x128xbf16>
    %c0_131 = arith.constant 0 : index
    %c0_132 = arith.constant 0 : index
    %308 = vector.load %arg13[%c0_131, %c0_132] : memref<16x128xf32, #tpu.memory_space<vmem>>, vector<16x128xf32>
    tpu.vector_store %arg13[%c0_131, %c0_132], %304 {strides = array<i32>} : memref<16x128xf32, #tpu.memory_space<vmem>>, vector<16x128xf32>,
    %c0_133 = arith.constant 0 : index
    %c0_134 = arith.constant 0 : index
    %309 = vector.load %arg12[%c0_133, %c0_134] : memref<16x128xbf16, #tpu.memory_space<vmem>>, vector<16x128xbf16>
    tpu.vector_store %arg12[%c0_133, %c0_134], %307 {strides = array<i32>} : memref<16x128xbf16, #tpu.memory_space<vmem>>, vector<16x128xbf16>,
    %c7_i32 = arith.constant 7 : i32
    %310 = arith.addi %11, %c7_i32 : i32
    %c16_i32_135 = arith.constant 16 : i32
    %311 = arith.muli %310, %c16_i32_135 : i32
    %312 = arith.index_cast %311 : i32 to index
    %c0_136 = arith.constant 0 : index
    %313 = vector.load %arg10[%312, %c0_136] : memref<160x128xbf16, #tpu.memory_space<vmem>>, vector<16x128xbf16>
    tpu.vector_store %arg10[%312, %c0_136], %307 {strides = array<i32>} : memref<160x128xbf16, #tpu.memory_space<vmem>>, vector<16x128xbf16>,
    %c1_i32_137 = arith.constant 1 : i32
    %c0_i32_138 = arith.constant 0 : i32
    %314 = arith.cmpi eq, %arg1, %c0_i32_138 : i32
    %315 = arith.extui %314 : i1 to i32
    %c0_i32_139 = arith.constant 0 : i32
    %316 = arith.cmpi ne, %315, %c0_i32_139 : i32
    scf.if %316 {
      %c8 = arith.constant 8 : index
      %c0_183 = arith.constant 0 : index
      %c0_184 = arith.constant 0 : index
      %399 = vector.load %arg2[%c8, %c0_183, %c0_184] : memref<10x16x128xbf16, #tpu.memory_space<vmem>>, vector<2x16x128xbf16>
      %400 = vector.shape_cast %399 : vector<2x16x128xbf16> to vector<32x128xbf16>
      %c0_185 = arith.constant 0 : index
      %c0_186 = arith.constant 0 : index
      %401 = vector.load %arg3[%c0_185, %c0_186] : memref<128x512xbf16, #tpu.memory_space<vmem>>, vector<128x512xbf16>
      %cst_187 = arith.constant dense<0.000000e+00> : vector<32x512xf32>
      %402 = tpu.matmul %400, %401, %cst_187 {dimension_numbers = #tpu.dot_dimension_numbers<[1], [0], [0], [1], [0, 0, 1, 1], [], []>} : vector<32x128xbf16>, vector<128x512xbf16>, vector<32x512xf32> -> vector<32x512xf32>
      %403 = vector.broadcast %5 : vector<1x512xf32> to vector<32x512xf32>
      %404 = arith.addf %402, %403 : vector<32x512xf32>
      %c0_188 = arith.constant 0 : index
      %c0_189 = arith.constant 0 : index
      %405 = vector.load %arg11[%c0_188, %c0_189] : memref<128x512xf32, #tpu.memory_space<vmem>>, vector<32x512xf32>
      tpu.vector_store %arg11[%c0_188, %c0_189], %404 {strides = array<i32>} : memref<128x512xf32, #tpu.memory_space<vmem>>, vector<32x512xf32>,
    } else {
    }
    %c0_i32_140 = arith.constant 0 : i32
    %317 = arith.cmpi sgt, %arg1, %c0_i32_140 : i32
    %318 = arith.extui %317 : i1 to i32
    %c0_i32_141 = arith.constant 0 : i32
    %319 = arith.cmpi ne, %318, %c0_i32_141 : i32
    scf.if %319 {
      %c128_183 = arith.constant 128 : index
      %c0_184 = arith.constant 0 : index
      %399 = vector.load %arg10[%c128_183, %c0_184] : memref<160x128xbf16, #tpu.memory_space<vmem>>, vector<32x128xbf16>
      %c0_185 = arith.constant 0 : index
      %c0_186 = arith.constant 0 : index
      %c0_187 = arith.constant 0 : index
      %400 = vector.load %arg4[%c0_185, %c0_186, %c0_187] : memref<1x128x512xbf16, #tpu.memory_space<vmem>>, vector<1x128x512xbf16>
      %401 = vector.shape_cast %400 : vector<1x128x512xbf16> to vector<128x512xbf16>
      %cst_188 = arith.constant dense<0.000000e+00> : vector<32x512xf32>
      %402 = tpu.matmul %399, %401, %cst_188 {dimension_numbers = #tpu.dot_dimension_numbers<[1], [0], [0], [1], [0, 0, 1, 1], [], []>} : vector<32x128xbf16>, vector<128x512xbf16>, vector<32x512xf32> -> vector<32x512xf32>
      %403 = vector.broadcast %5 : vector<1x512xf32> to vector<32x512xf32>
      %404 = arith.addf %402, %403 : vector<32x512xf32>
      %c0_189 = arith.constant 0 : index
      %c0_190 = arith.constant 0 : index
      %405 = vector.load %arg11[%c0_189, %c0_190] : memref<128x512xf32, #tpu.memory_space<vmem>>, vector<32x512xf32>
      tpu.vector_store %arg11[%c0_189, %c0_190], %404 {strides = array<i32>} : memref<128x512xf32, #tpu.memory_space<vmem>>, vector<32x512xf32>,
    } else {
    }
    %c0_142 = arith.constant 0 : index
    %c0_143 = arith.constant 0 : index
    %320 = vector.load %arg11[%c0_142, %c0_143] : memref<128x512xf32, #tpu.memory_space<vmem>>, vector<16x512xf32>
    %c0_144 = arith.constant 0 : index
    %c0_145 = arith.constant 0 : index
    %321 = vector.load %arg12[%c0_144, %c0_145] : memref<16x128xbf16, #tpu.memory_space<vmem>>, vector<16x128xbf16>
    %cst_146 = arith.constant dense<0.000000e+00> : vector<16x512xf32>
    %322 = tpu.matmul %321, %7, %cst_146 {dimension_numbers = #tpu.dot_dimension_numbers<[1], [0], [0], [1], [0, 0, 1, 1], [], []>} : vector<16x128xbf16>, vector<128x512xbf16>, vector<16x512xf32> -> vector<16x512xf32>
    %323 = arith.addf %320, %322 : vector<16x512xf32>
    %324 = vector.extract_strided_slice %323 {offsets = [0, 0], sizes = [16, 128], strides = [1, 1]} : vector<16x512xf32> to vector<16x128xf32>
    %325 = arith.negf %324 : vector<16x128xf32>
    %326 = math.exp %325 : vector<16x128xf32>
    %cst_147 = arith.constant 1.000000e+00 : f32
    %327 = vector.broadcast %cst_147 : f32 to vector<16x128xf32>
    %328 = arith.addf %327, %326 : vector<16x128xf32>
    %329 = arith.divf %327, %328 : vector<16x128xf32>
    %330 = vector.extract_strided_slice %323 {offsets = [0, 128], sizes = [16, 128], strides = [1, 1]} : vector<16x512xf32> to vector<16x128xf32>
    %331 = arith.negf %330 : vector<16x128xf32>
    %332 = math.exp %331 : vector<16x128xf32>
    %cst_148 = arith.constant 1.000000e+00 : f32
    %333 = vector.broadcast %cst_148 : f32 to vector<16x128xf32>
    %334 = arith.addf %333, %332 : vector<16x128xf32>
    %335 = arith.divf %333, %334 : vector<16x128xf32>
    %336 = vector.extract_strided_slice %323 {offsets = [0, 256], sizes = [16, 128], strides = [1, 1]} : vector<16x512xf32> to vector<16x128xf32>
    %337 = math.tanh %336 : vector<16x128xf32>
    %338 = vector.extract_strided_slice %323 {offsets = [0, 384], sizes = [16, 128], strides = [1, 1]} : vector<16x512xf32> to vector<16x128xf32>
    %339 = arith.negf %338 : vector<16x128xf32>
    %340 = math.exp %339 : vector<16x128xf32>
    %cst_149 = arith.constant 1.000000e+00 : f32
    %341 = vector.broadcast %cst_149 : f32 to vector<16x128xf32>
    %342 = arith.addf %341, %340 : vector<16x128xf32>
    %343 = arith.divf %341, %342 : vector<16x128xf32>
    %c0_150 = arith.constant 0 : index
    %c0_151 = arith.constant 0 : index
    %344 = vector.load %arg13[%c0_150, %c0_151] : memref<16x128xf32, #tpu.memory_space<vmem>>, vector<16x128xf32>
    %345 = arith.mulf %335, %344 : vector<16x128xf32>
    %346 = arith.mulf %329, %337 : vector<16x128xf32>
    %347 = arith.addf %345, %346 : vector<16x128xf32>
    %348 = math.tanh %347 : vector<16x128xf32>
    %349 = arith.mulf %343, %348 : vector<16x128xf32>
    %350 = arith.truncf %349 : vector<16x128xf32> to vector<16x128xbf16>
    %c0_152 = arith.constant 0 : index
    %c0_153 = arith.constant 0 : index
    %351 = vector.load %arg13[%c0_152, %c0_153] : memref<16x128xf32, #tpu.memory_space<vmem>>, vector<16x128xf32>
    tpu.vector_store %arg13[%c0_152, %c0_153], %347 {strides = array<i32>} : memref<16x128xf32, #tpu.memory_space<vmem>>, vector<16x128xf32>,
    %c0_154 = arith.constant 0 : index
    %c0_155 = arith.constant 0 : index
    %352 = vector.load %arg12[%c0_154, %c0_155] : memref<16x128xbf16, #tpu.memory_space<vmem>>, vector<16x128xbf16>
    tpu.vector_store %arg12[%c0_154, %c0_155], %350 {strides = array<i32>} : memref<16x128xbf16, #tpu.memory_space<vmem>>, vector<16x128xbf16>,
    %c128 = arith.constant 128 : index
    %c0_156 = arith.constant 0 : index
    %353 = vector.load %arg10[%c128, %c0_156] : memref<160x128xbf16, #tpu.memory_space<vmem>>, vector<16x128xbf16>
    tpu.vector_store %arg10[%c128, %c0_156], %350 {strides = array<i32>} : memref<160x128xbf16, #tpu.memory_space<vmem>>, vector<16x128xbf16>,
    %c16_157 = arith.constant 16 : index
    %c0_158 = arith.constant 0 : index
    %354 = vector.load %arg11[%c16_157, %c0_158] : memref<128x512xf32, #tpu.memory_space<vmem>>, vector<16x512xf32>
    %c0_159 = arith.constant 0 : index
    %c0_160 = arith.constant 0 : index
    %355 = vector.load %arg12[%c0_159, %c0_160] : memref<16x128xbf16, #tpu.memory_space<vmem>>, vector<16x128xbf16>
    %cst_161 = arith.constant dense<0.000000e+00> : vector<16x512xf32>
    %356 = tpu.matmul %355, %7, %cst_161 {dimension_numbers = #tpu.dot_dimension_numbers<[1], [0], [0], [1], [0, 0, 1, 1], [], []>} : vector<16x128xbf16>, vector<128x512xbf16>, vector<16x512xf32> -> vector<16x512xf32>
    %357 = arith.addf %354, %356 : vector<16x512xf32>
    %358 = vector.extract_strided_slice %357 {offsets = [0, 0], sizes = [16, 128], strides = [1, 1]} : vector<16x512xf32> to vector<16x128xf32>
    %359 = arith.negf %358 : vector<16x128xf32>
    %360 = math.exp %359 : vector<16x128xf32>
    %cst_162 = arith.constant 1.000000e+00 : f32
    %361 = vector.broadcast %cst_162 : f32 to vector<16x128xf32>
    %362 = arith.addf %361, %360 : vector<16x128xf32>
    %363 = arith.divf %361, %362 : vector<16x128xf32>
    %364 = vector.extract_strided_slice %357 {offsets = [0, 128], sizes = [16, 128], strides = [1, 1]} : vector<16x512xf32> to vector<16x128xf32>
    %365 = arith.negf %364 : vector<16x128xf32>
    %366 = math.exp %365 : vector<16x128xf32>
    %cst_163 = arith.constant 1.000000e+00 : f32
    %367 = vector.broadcast %cst_163 : f32 to vector<16x128xf32>
    %368 = arith.addf %367, %366 : vector<16x128xf32>
    %369 = arith.divf %367, %368 : vector<16x128xf32>
    %370 = vector.extract_strided_slice %357 {offsets = [0, 256], sizes = [16, 128], strides = [1, 1]} : vector<16x512xf32> to vector<16x128xf32>
    %371 = math.tanh %370 : vector<16x128xf32>
    %372 = vector.extract_strided_slice %357 {offsets = [0, 384], sizes = [16, 128], strides = [1, 1]} : vector<16x512xf32> to vector<16x128xf32>
    %373 = arith.negf %372 : vector<16x128xf32>
    %374 = math.exp %373 : vector<16x128xf32>
    %cst_164 = arith.constant 1.000000e+00 : f32
    %375 = vector.broadcast %cst_164 : f32 to vector<16x128xf32>
    %376 = arith.addf %375, %374 : vector<16x128xf32>
    %377 = arith.divf %375, %376 : vector<16x128xf32>
    %c0_165 = arith.constant 0 : index
    %c0_166 = arith.constant 0 : index
    %378 = vector.load %arg13[%c0_165, %c0_166] : memref<16x128xf32, #tpu.memory_space<vmem>>, vector<16x128xf32>
    %379 = arith.mulf %369, %378 : vector<16x128xf32>
    %380 = arith.mulf %363, %371 : vector<16x128xf32>
    %381 = arith.addf %379, %380 : vector<16x128xf32>
    %382 = math.tanh %381 : vector<16x128xf32>
    %383 = arith.mulf %377, %382 : vector<16x128xf32>
    %384 = arith.truncf %383 : vector<16x128xf32> to vector<16x128xbf16>
    %c0_167 = arith.constant 0 : index
    %c0_168 = arith.constant 0 : index
    %385 = vector.load %arg13[%c0_167, %c0_168] : memref<16x128xf32, #tpu.memory_space<vmem>>, vector<16x128xf32>
    tpu.vector_store %arg13[%c0_167, %c0_168], %381 {strides = array<i32>} : memref<16x128xf32, #tpu.memory_space<vmem>>, vector<16x128xf32>,
    %c0_169 = arith.constant 0 : index
    %c0_170 = arith.constant 0 : index
    %386 = vector.load %arg12[%c0_169, %c0_170] : memref<16x128xbf16, #tpu.memory_space<vmem>>, vector<16x128xbf16>
    tpu.vector_store %arg12[%c0_169, %c0_170], %384 {strides = array<i32>} : memref<16x128xbf16, #tpu.memory_space<vmem>>, vector<16x128xbf16>,
    %c144 = arith.constant 144 : index
    %c0_171 = arith.constant 0 : index
    %387 = vector.load %arg10[%c144, %c0_171] : memref<160x128xbf16, #tpu.memory_space<vmem>>, vector<16x128xbf16>
    tpu.vector_store %arg10[%c144, %c0_171], %384 {strides = array<i32>} : memref<160x128xbf16, #tpu.memory_space<vmem>>, vector<16x128xbf16>,
    %c0_172 = arith.constant 0 : index
    %c0_173 = arith.constant 0 : index
    %388 = vector.load %arg12[%c0_172, %c0_173] : memref<16x128xbf16, #tpu.memory_space<vmem>>, vector<16x128xbf16>
    %cst_174 = arith.constant 0.000000e+00 : bf16
    %389 = vector.broadcast %cst_174 : bf16 to vector<16x128xbf16>
    %390 = arith.maximumf %388, %389 : vector<16x128xbf16>
    %c0_175 = arith.constant 0 : index
    %c0_176 = arith.constant 0 : index
    %391 = vector.load %arg7[%c0_175, %c0_176] : memref<128x128xbf16, #tpu.memory_space<vmem>>, vector<128x128xbf16>
    %cst_177 = arith.constant dense<0.000000e+00> : vector<16x128xf32>
    %392 = tpu.matmul %390, %391, %cst_177 {dimension_numbers = #tpu.dot_dimension_numbers<[1], [0], [0], [1], [0, 0, 1, 1], [], []>} : vector<16x128xbf16>, vector<128x128xbf16>, vector<16x128xf32> -> vector<16x128xf32>
    %c0_178 = arith.constant 0 : index
    %c0_179 = arith.constant 0 : index
    %393 = vector.load %arg8[%c0_178, %c0_179] : memref<1x128xf32, #tpu.memory_space<vmem>>, vector<1x128xf32>
    %394 = vector.broadcast %393 : vector<1x128xf32> to vector<16x128xf32>
    %395 = arith.addf %392, %394 : vector<16x128xf32>
    %c0_180 = arith.constant 0 : index
    %c0_181 = arith.constant 0 : index
    %c0_182 = arith.constant 0 : index
    %396 = vector.load %arg9[%c0_180, %c0_181, %c0_182] : memref<1x16x128xf32, #tpu.memory_space<vmem>>, vector<1x16x128xf32>
    %397 = vector.shape_cast %396 : vector<1x16x128xf32> to vector<16x128xf32>
    %398 = vector.shape_cast %395 : vector<16x128xf32> to vector<1x16x128xf32>
    tpu.vector_store %arg9[%c0_180, %c0_181, %c0_182], %398 {strides = array<i32>} : memref<1x16x128xf32, #tpu.memory_space<vmem>>, vector<1x16x128xf32>,
    return
  }
  func.func @transform_0(%arg0: i32, %arg1: i32) -> (i32, i32, i32) {
    %c0_i32 = arith.constant 0 : i32
    %c0_i32_0 = arith.constant 0 : i32
    %c0_i32_1 = arith.constant 0 : i32
    return %c0_i32, %arg0, %c0_i32_0 : i32, i32, i32
  }
  func.func @transform_1(%arg0: i32, %arg1: i32) -> (i32, i32) {
    %c0_i32 = arith.constant 0 : i32
    %c0_i32_0 = arith.constant 0 : i32
    %c0_i32_1 = arith.constant 0 : i32
    return %c0_i32, %c0_i32_0 : i32, i32
  }
  func.func @transform_2(%arg0: i32, %arg1: i32) -> (i32, i32, i32) {
    %c0_i32 = arith.constant 0 : i32
    %c0_i32_0 = arith.constant 0 : i32
    %c0_i32_1 = arith.constant 0 : i32
    return %arg1, %c0_i32, %c0_i32_0 : i32, i32, i32
  }
  func.func @transform_3(%arg0: i32, %arg1: i32) -> (i32, i32, i32) {
    %c0_i32 = arith.constant 0 : i32
    %c0_i32_0 = arith.constant 0 : i32
    %c0_i32_1 = arith.constant 0 : i32
    return %arg1, %c0_i32, %c0_i32_0 : i32, i32, i32
  }
  func.func @transform_4(%arg0: i32, %arg1: i32) -> (i32, i32, i32) {
    %c0_i32 = arith.constant 0 : i32
    %c0_i32_0 = arith.constant 0 : i32
    %c0_i32_1 = arith.constant 0 : i32
    return %arg1, %c0_i32, %c0_i32_0 : i32, i32, i32
  }
  func.func @transform_5(%arg0: i32, %arg1: i32) -> (i32, i32) {
    %c0_i32 = arith.constant 0 : i32
    %c0_i32_0 = arith.constant 0 : i32
    %c0_i32_1 = arith.constant 0 : i32
    return %c0_i32, %c0_i32_0 : i32, i32
  }
  func.func @transform_6(%arg0: i32, %arg1: i32) -> (i32, i32) {
    %c0_i32 = arith.constant 0 : i32
    %c0_i32_0 = arith.constant 0 : i32
    %c0_i32_1 = arith.constant 0 : i32
    return %c0_i32, %c0_i32_0 : i32, i32
  }
  func.func @transform_7(%arg0: i32, %arg1: i32) -> (i32, i32, i32) {
    %c0_i32 = arith.constant 0 : i32
    %c0_i32_0 = arith.constant 0 : i32
    return %arg1, %arg0, %c0_i32 : i32, i32, i32
  }
}

</mosaic_0001>

<bundles_post_ra>
// kernel: tpu_custom_call.1
= control target key start
LH: loop header
LB: loop body
LE: loop exit
PB: predicated region body
PF: predicated region fallthrough
CT: control target
= control target key end

     0   :  { %s7097_s0 = inlined_call_operand.hbm [shape: bf16[10,32,128], index: 0, kind: input, shape index: {}]   ;;  %s7098_s1 = inlined_call_operand.hbm [shape: bf16[128,512], index: 1, kind: input, shape index: {}]   ;;  %s7099_s2 = inlined_call_operand.hbm [shape: bf16[2,128,512], index: 2, kind: input, shape index: {}]   ;;  %s7100_s3 = inlined_call_operand.hbm [shape: bf16[2,128,512], index: 3, kind: input, shape index: {}]   ;;  %s7101_s4 = inlined_call_operand.vmem [shape: f32[2,1,512], index: 4, kind: input, shape index: {}]   ;;  %s7102_s5 = inlined_call_operand.hbm [shape: bf16[128,128], index: 5, kind: input, shape index: {}]   ;;  %s7103_s6 = inlined_call_operand.vmem [shape: f32[1,128], index: 6, kind: input, shape index: {}]   ;;  %s7104_s7 = inlined_call_operand.hbm [shape: f32[2,32,128], index: 7, kind: output, shape index: {}]  }
   0x1   :  { %7126 = sst [smem:[#allocation36_spill]] %s7101_s4 }
   0x2   :  { %7127 = sst [smem:[#allocation37_spill]] %s7103_s6 }
   0x3   :  { %7128 = sst [smem:[#allocation38_spill]] %s7104_s7 }
   0x4   :  { %12 = vsyncpa [#allocation7], 0 }
   0x5   :  { %14 = vsyncpa [#allocation7 + $0x1], 0 }
   0x6   :  { %15 = vsyncpa [#allocation10], 0 }
   0x7   :  { %16 = vsyncpa [#allocation8], 0 }
   0x8   :  { %18 = vsyncpa [#allocation8 + $0x1], 0  ;;  %s5731_s24 = smov 0   ;;  %s5733_s25 = smov 0  }
   0x9   :  { %s5735_s26 = smov 0   ;;  %s5737_s27 = smov 0  }
   0xa   :  { %s5739_s28 = smov 0   ;;  %s5741_s29 = smov 0  }
   0xb   :  { %s5743_s30 = smov 0   ;;  %s5745_s8 = smov 0  }
   0xc   :  { %s5747_s9 = smov 0   ;;  %s5749_s10 = smov 0  }
   0xd   :  { %s5751_s11 = smov 0   ;;  %s5753_s12 = smov 0  }
   0xe   :  { %s5755_s13 = smov 0   ;;  %s5757_s14 = smov 0  }
   0xf LB: > { %7129 = sst [smem:[#allocation23_spill]] %s5611_s24  ;;  %s5800_s15 = sadd.s32 4294967295, %s5663_s14   ;;  %s5663_s14 = sphi %s5757_s14, %s24_s14   ;;  %s5659_s13 = sphi %s5755_s13, %s7196_s13   ;;  %s5655_s12 = sphi %s5753_s12, %s7195_s12   ;;  %s5651_s11 = sphi %s5751_s11, %s7194_s11   ;;  %s5647_s10 = sphi %s5749_s10, %s7193_s10   ;;  %s5643_s9 = sphi %s5747_s9, %s7192_s9   ;;  %s5639_s8 = sphi %s5745_s8, %s7191_s8   ;;  %s5635_s30 = sphi %s5743_s30, %s7190_s30   ;;  %s5631_s29 = sphi %s5741_s29, %s7189_s29   ;;  %s5627_s28 = sphi %s5739_s28, %s7188_s28   ;;  %s5623_s27 = sphi %s5737_s27, %s7187_s27   ;;  %s5619_s26 = sphi %s5735_s26, %s7182_s26   ;;  %s5615_s25 = sphi %s5733_s25, %s7181_s25   ;;  %s5611_s24 = sphi %s5731_s24, %s7180_s24  }
  0x10   : > { %7130 = sst [smem:[#allocation24_spill]] %s5615_s25  ;;  %s33_s17 = sadd.s32 1, %s5655_s12 }
  0x11   : > { %7131 = sst [smem:[#allocation25_spill]] %s5619_s26  ;;  %s36_s18 = sadd.s32 1, %s5659_s13 }
  0x12   : > { %7132 = sst [smem:[#allocation26_spill]] %s5647_s10  ;;  %p34_p0 = scmp.ge.s32.totalorder %s33_s17, 2 }
  0x13   : > { %7133 = sst [smem:[#allocation27_spill]] %s5651_s11  ;;  %s43_s19 = sadd.s32 1, %s5643_s9 }
  0x14   : > { %p50_p1 = scmp.ne.s32.totalorder %s5643_s9, %s5639_s8  ;;  %p51_p2 = scmp.eq.s32.totalorder %s5663_s14, 0 }
  0x15   : > { %s7198_s17 = smov (%p34_p0, %s33_s17), 0  ;;  %s7200_s18 = smov (!%p34_p0, %s36_s18), %s5659_s13 }
  0x16   : > { %7134 = sst [smem:[#allocation28_spill]] %s7198_s17  ;;  %p5814_p3 = por %p51_p2, %p50_p1 }
  0x17   : > { %p56_p4 = scmp.ne.s32.totalorder %s5639_s8, %s5635_s30  ;;  %p38_p5 = scmp.ge.s32.totalorder %s7200_s18, 2 }
  0x18   : > { %s7135_s20 = scalar_select %p5814_p3, 1, 0 }
  0x19   : > { %p7108_p6 = scmp.eq.s32.totalorder %s5800_s15, 0  ;;  %s87_s21 = ssub.s32 %s5655_s12, %s7198_s17 }
  0x1a   : > { %s90_s22 = sadd.s32 1, %s5631_s29  ;;  %s7202_s18 = smov (%p38_p5, %s7200_s18), 0 }
  0x1b   : > { %7136 = sst [smem:[#allocation29_spill]] %s7202_s18  ;;  %p5827_p7 = por %p7108_p6, %p56_p4 }
  0x1c   : > { %p88_p8 = scmp.eq.s32.totalorder %s87_s21, 0  ;;  %s40_s30 = ssub.s32 %s5659_s13, %s7202_s18 }
  0x1d   : > { %s7137_s23 = scalar_select %p5827_p7, 1, 0 }
  0x1e   : > { %p97_p9 = scmp.ne.s32.totalorder %s5631_s29, %s5627_s28  ;;  %p41_p10 = scmp.eq.s32.totalorder %s40_s30, 0 }
  0x1f   : > { %p103_p11 = scmp.ne.s32.totalorder %s5627_s28, %s5623_s27  ;;  %s209_s18 = sor.u32 %s87_s21, %s40_s30 }
  0x20   : > { %s5838_s16 = scalar_select %p88_p8, %s5631_s29, %s90_s22  }
  0x21   : > { %s5841_s17 = scalar_select %p41_p10, %s5643_s9, %s43_s19  }
  0x22   : > { %7138 = sst [smem:[#allocation30_spill]] %s5838_s16  ;;  %p5845_p12 = por %p97_p9, %p51_p2 }
  0x23   : > { %7139 = sst [smem:[#allocation31_spill]] %s5841_s17  ;;  %p5851_p13 = por %p103_p11, %p7108_p6 }
  0x24   : > { %s7140_s7 = scalar_select %p5845_p12, 1, 0 }
  0x25   : > { %s7141_s6 = scalar_select %p5851_p13, 1, 0 }
  0x26   : > { %s212_s11 = sadd.s32 1, %s5619_s26  ;;  %p210_p0 = scmp.eq.s32.totalorder %s209_s18, 0 }
  0x27   : > { %7142 = sst [smem:[#allocation32_spill]] %s7141_s6  ;;  %p222_p1 = scmp.ne.s32.totalorder %s5619_s26, %s5615_s25 }
  0x28   : > { %p223_p4 = scmp.eq.s32.totalorder %s5800_s15, 3  ;;  %p228_p5 = scmp.ne.s32.totalorder %s5615_s25, %s5611_s24 }
  0x29   : > { %s5862_s27 = scalar_select %p210_p0, %s5619_s26, %s212_s11  }
  0x2a   : > { %p5864_p8 = por %p223_p4, %p222_p1  ;;  %s7146_s22 = sadd.s32 4294967294, %s5663_s14  }
  0x2b   : > { %7143 = sst [smem:[#allocation33_spill]] %s5862_s27  ;;  %p229_p2 = scmp.eq.s32.totalorder %s7146_s22, 3 }
  0x2c   : > { %s7144_s19 = scalar_select %p5864_p8, 1, 0 }
  0x2d   : > { %p4381_p9 = scmp.ge.s32.totalorder %s5663_s14, 1  ;;  %p236_p10 = scmp.lt.s32.totalorder %s5663_s14, 5 }
  0x2e   : > { %7145 = sst [smem:[#allocation34_spill]] %s7144_s19  ;;  %p5872_p11 = por %p229_p2, %p228_p5 }
  0x2f   : > { %p5876_p6 = pnand %p4381_p9, %p236_p10  ;;  %s5665_s18 = smov [#allocation9]  }
  0x30   : > { %s7147_s17 = scalar_select %p5872_p11, 1, 0 }
  0x31   : > { %s7149_s21 = scalar_select %p5876_p6, 1, 0 }
  0x32   : > { %7148 = sst [smem:[#allocation35_spill]] %s7147_s17  ;;  %s248_s11 = sshll.u32 %s5665_s18, 4  ;;  %s249_s11 = int_to_ptr.vmem [resolvable:$true] %s248_s11 }
  0x33   : > { %p4712_p0 = pneg %p5876_p6  ;;  %p7150_p1 = scmp.eq.s32.totalorder %s5800_s15, 0 }
  0x34   : > { %s5666_s22 = smov [#allocation13]   ;;  %s5393_s17 = scalar_lea.hbm %s7098_s1, 4096 }
  0x35   : > { %p5884_p4 = pnand %p4712_p0, %p7150_p1  ;;  %s261_s16 = sshll.u32 %s5666_s22, 4  ;;  %s5888_s16 = int_to_ptr.vmem [resolvable:$true] %s261_s16 }
  0x36   : > { %p5394_p5 = scmp.ne.s32.totalorder %s7098_s1, %s5393_s17  ;;  %p5400_p0 = scmp.lt.u32.totalorder %s5393_s17, %s7098_s1 }
  0x37   : > { %p5395_p2 = pneg %p5884_p4 }
  0x39   : > { %p5396_p9 = pnand %p5395_p2, %p5394_p5 }
  0x3b   : > { %p5397_p10 = pneg %p5396_p9 }
  0x3d   : > { %p5402_p1 = pnand %p5400_p0, %p5397_p10 }
  0x3f   : > { %5405 = shalt.err (!%p5402_p1)
}
  0x40   : > { %s5406_s22 = scalar_lea.vmem %s249_s11, 4096  ;;  %p5414_p7 = scmp.lt.s32.totalorder %s249_s11, %s249_s11 }
  0x41   : > { %p5407_p11 = scmp.ne.s32.totalorder %s249_s11, %s5406_s22  ;;  %p5415_p6 = scmp.lt.s32.totalorder %s5406_s22, %s5406_s22 }
  0x43   : > { %p5409_p8 = pnand %p5407_p11, %p5395_p2  ;;  %p5416_p12 = por %p5415_p6, %p5414_p7 }
  0x45   : > { %p5410_p13 = pneg %p5409_p8 }
  0x47   : > { %p5417_p3 = pnand %p5416_p12, %p5410_p13 }
  0x49   : > { %5420 = shalt.err (!%p5417_p3)
}
  0x4a   : > { %s5667_s24 = smov 256   ;;  %s5668_s26 = smov 16  }
  0x4b   : > { %4715 = dma.hbm_to_vmem [thread:$0]  (!%p5884_p4), %s7098_s1, 4096, %s249_s11, [#allocation10], %s5667_s24, %s5667_s24, %s5668_s26  }
  0x4c   : > { %s5421_s18 = scalar_lea.hbm %s7102_s5, 1024 }
  0x4d   : > { %p5422_p8 = scmp.ne.s32.totalorder %s7102_s5, %s5421_s18  ;;  %p5428_p7 = scmp.lt.u32.totalorder %s5421_s18, %s7102_s5 }
  0x4f   : > { %p5424_p3 = pnand %p5422_p8, %p5395_p2 }
  0x51   : > { %p5425_p6 = pneg %p5424_p3 }
  0x53   : > { %p5430_p12 = pnand %p5428_p7, %p5425_p6 }
  0x55   : > { %5433 = shalt.err (!%p5430_p12)
}
  0x56   : > { %s5434_s11 = scalar_lea.vmem %s5888_s16, 1024  ;;  %p5442_p9 = scmp.lt.s32.totalorder %s5888_s16, %s5888_s16 }
  0x57   : > { %p5435_p13 = scmp.ne.s32.totalorder %s5888_s16, %s5434_s11  ;;  %p5443_p10 = scmp.lt.s32.totalorder %s5434_s11, %s5434_s11 }
  0x59   : > { %p5437_p11 = pnand %p5435_p13, %p5395_p2  ;;  %p5444_p0 = por %p5443_p10, %p5442_p9 }
  0x5b   : > { %p5438_p5 = pneg %p5437_p11 }
  0x5d   : > { %p5445_p1 = pnand %p5444_p0, %p5438_p5 }
  0x5f   : > { %5448 = shalt.err (!%p5445_p1)
}
  0x60   : > { %s5669_s6 = smov 64   ;;  %s5670_s25 = smov 4  }
  0x61   : > { %4718 = dma.hbm_to_vmem [thread:$0]  (!%p5884_p4), %s7102_s5, 1024, %s5888_s16, [#allocation10], %s5669_s6, %s5669_s6, %s5670_s25  }
  0x62   : > { %p4384_p8 = scmp.ge.s32.totalorder %s5663_s14, 4 }
  0x64   : > { %274 = sbr.rel (%p4384_p8) target bundleno = 170 (0xaa), region = 28 }
  0x6b   : > { %s278_s26 = sand.u32 1, %s5663_s14   ;;  %s280_s4 = sand.u32 1, %s5643_s9  }
  0x6c   : > { %s4687_s17 = smul.u32 80, %s280_s4  ;;  %s4655_s30 = sshll.u32 %s5659_s13, 7 }
  0x6d   : > { %p7152_p2 = scmp.ne.s32.totalorder %s7135_s20, 0  ;;  %s288_s18 = scalar_lea.hbm %s7097_s0, %s4655_s30 }
  0x6e   : > { %s5671_s22 = smov 256   ;;  %s282_s6 = scalar_lea.vmem [#allocation6], %s4687_s17 }
  0x6f   : > { %s4693_s27 = scalar_select %p7152_p2, [#allocation0], [#allocation17] }
  0x70   : > { %4694 = sst [smem:[#allocation16]] (%p7152_p2), %s5671_s22  ;;  %s301_s25 = sshll.u32 %s282_s6, 4  ;;  %s302_s25 = int_to_ptr.vmem [resolvable:$true] %s301_s25 }
  0x71   : > { %s293_s11 = sld [smem:[%s4693_s27]]   ;;  %s5672_s10 = smov 128  }
  0x72   : > { %4695 = sst [smem:[#allocation16 + $0x1]] (%p7152_p2), %s5672_s10  ;;  %s5673_s24 = smov 2  }
  0x73   : > { %4696 = sst [smem:[#allocation16 + $0x2]] (%p7152_p2), %s5673_s24  ;;  %s5674_s4 = smov 64  }
  0x74   : > { %4697 = sst [smem:[#allocation16 + $0x3]] (%p7152_p2), %s5674_s4  ;;  %s5675_s19 = smov 4  }
  0x75   : > { %4698 = sst [smem:[#allocation16 + $0x4]] (%p7152_p2), %s5674_s4  ;;  %s5958_s17 = scalar_lea.sflag [#allocation7], %s278_s26 }
  0x76   : > { %4699 = sst [smem:[#allocation16 + $0x5]] (%p7152_p2), %s5675_s19  ;;  %s5676_s16 = smov [#allocation15]  }
  0x77   : > { %s4387_s30 = sshll.u32 %s293_s11, 26  ;;  %s326_s22 = sand.u32 1, %s5631_s29  }
  0x78   : > { %s4388_s27 = sadd.s32 134217728, %s4387_s30  ;;  %s4656_s6 = sshll.u32 %s5655_s12, 12 }
  0x79   : > { %4700 = dma.general (%p7152_p2), %s288_s18, 1280, %s302_s25, %s5958_s17, %s5676_s16, [#allocation16], %s4388_s27, 0  }
  0x7a   : > { %s5965_s10 = sshll.u32 %s326_s22, 8  ;;  %s5972_s4 = scalar_lea.hbm %s7099_s2, %s4656_s6 }
  0x7b   : > { %s328_s20 = scalar_lea.vmem [#allocation11], %s5965_s10  ;;  %s5449_s18 = scalar_lea.hbm %s5972_s4, 4096 }
  0x7c   : > { %s335_s26 = sshll.u32 %s328_s20, 4  ;;  %p5450_p4 = scmp.ne.s32.totalorder %s5972_s4, %s5449_s18  ;;  %s5975_s26 = int_to_ptr.vmem [resolvable:$true] %s335_s26 }
  0x7d   : > { %p7153_p3 = scmp.ne.s32.totalorder %s7140_s7, 0  ;;  %s5453_s19 = scalar_lea.hbm %s7099_s2, 8192 }
  0x7e   : > { %p5454_p12 = scmp.lt.u32.totalorder %s5972_s4, %s7099_s2  ;;  %p5455_p13 = scmp.lt.u32.totalorder %s5453_s19, %s5449_s18 }
  0x7f   : > { %p5451_p6 = pnand %p5450_p4, %p7153_p3  ;;  %p5457_p5 = scmp.lt.u32.totalorder %s5449_s18, %s5972_s4 }
  0x80   : > { %p5456_p11 = por %p5455_p13, %p5454_p12 }
  0x81   : > { %p5452_p7 = pneg %p5451_p6 }
  0x82   : > { %p5458_p9 = por %p5457_p5, %p5456_p11 }
  0x84   : > { %p5459_p10 = pnand %p5458_p9, %p5452_p7 }
  0x86   : > { %5462 = shalt.err (!%p5459_p10)
}
  0x87   : > { %s5463_s22 = scalar_lea.vmem %s5975_s26, 4096  ;;  %s5677_s11 = smov [#allocation11]  }
  0x88   : > { %p5464_p0 = scmp.ne.s32.totalorder %s5975_s26, %s5463_s22  ;;  %s5467_s24 = sshll.u32 %s5677_s11, 4  ;;  %s5468_s24 = int_to_ptr.vmem [resolvable:$false] %s5467_s24 }
  0x89   : > { %s5469_s20 = scalar_lea.vmem %s5468_s24, 8192  ;;  %p5470_p2 = scmp.lt.s32.totalorder %s5975_s26, %s5468_s24 }
  0x8a   : > { %p5465_p1 = pnand %p5464_p0, %p7153_p3  ;;  %p5471_p4 = scmp.lt.s32.totalorder %s5469_s20, %s5463_s22 }
  0x8c   : > { %p5466_p8 = pneg %p5465_p1  ;;  %p5472_p6 = por %p5471_p4, %p5470_p2 }
  0x8e   : > { %p5473_p12 = pnand %p5472_p6, %p5466_p8 }
  0x90   : > { %5476 = shalt.err (!%p5473_p12)
}
  0x91   : > { %s5678_s18 = smov 256   ;;  %s5679_s25 = smov 16  }
  0x92   : > { %4701 = dma.hbm_to_vmem [thread:$0]  (%p7153_p3), %s5972_s4, 4096, %s5975_s26, %s5958_s17, %s5678_s18, %s5678_s18, %s5679_s25  }
  0x93   : > { %s6007_s27 = scalar_lea.hbm %s7100_s3, %s4656_s6  ;;  %s349_s16 = scalar_lea.vmem [#allocation12], %s5965_s10 }
  0x94   : > { %s356_s22 = sshll.u32 %s349_s16, 4  ;;  %s5477_s11 = scalar_lea.hbm %s6007_s27, 4096  ;;  %s6010_s22 = int_to_ptr.vmem [resolvable:$true] %s356_s22 }
  0x95   : > { %p5478_p7 = scmp.ne.s32.totalorder %s6007_s27, %s5477_s11  ;;  %s5481_s24 = scalar_lea.hbm %s7100_s3, 8192 }
  0x96   : > { %p5482_p5 = scmp.lt.u32.totalorder %s6007_s27, %s7100_s3  ;;  %p5483_p9 = scmp.lt.u32.totalorder %s5481_s24, %s5477_s11 }
  0x97   : > { %p5479_p13 = pnand %p5478_p7, %p7153_p3  ;;  %p5485_p0 = scmp.lt.u32.totalorder %s5477_s11, %s6007_s27 }
  0x98   : > { %p5484_p10 = por %p5483_p9, %p5482_p5 }
  0x99   : > { %p5480_p11 = pneg %p5479_p13 }
  0x9a   : > { %p5486_p1 = por %p5485_p0, %p5484_p10 }
  0x9c   : > { %p5487_p8 = pnand %p5486_p1, %p5480_p11 }
  0x9e   : > { %5490 = shalt.err (!%p5487_p8)
}
  0x9f   : > { %s5491_s10 = scalar_lea.vmem %s6010_s22, 4096  ;;  %s5680_s30 = smov [#allocation12]  }
  0xa0   : > { %p5492_p2 = scmp.ne.s32.totalorder %s6010_s22, %s5491_s10  ;;  %s5495_s19 = sshll.u32 %s5680_s30, 4  ;;  %s5496_s19 = int_to_ptr.vmem [resolvable:$false] %s5495_s19 }
  0xa1   : > { %s5497_s16 = scalar_lea.vmem %s5496_s19, 8192  ;;  %p5498_p12 = scmp.lt.s32.totalorder %s6010_s22, %s5496_s19 }
  0xa2   : > { %p5493_p4 = pnand %p5492_p2, %p7153_p3  ;;  %p5499_p7 = scmp.lt.s32.totalorder %s5497_s16, %s5491_s10 }
  0xa4   : > { %p5494_p6 = pneg %p5493_p4  ;;  %p5500_p13 = por %p5499_p7, %p5498_p12 }
  0xa6   : > { %p5501_p5 = pnand %p5500_p13, %p5494_p6 }
  0xa8   : > { %5504 = shalt.err (!%p5501_p5)
}
  0xa9   : > { %4702 = dma.hbm_to_vmem [thread:$0]  (%p7153_p3), %s6007_s27, 4096, %s6010_s22, %s5958_s17, %s5678_s18, %s5678_s18, %s5679_s25  }
  0xaa PF: > { %p7154_p11 = scmp.ne.s32.totalorder %s7149_s21, 0 }
  0xab   : > { %s377_s11 = sand.u32 (!%p7154_p11), 1, %s5800_s15   ;;  %s379_s4 = sand.u32 (!%p7154_p11), 1, %s5639_s8  }
  0xac   : > { %375 = sbr.rel (%p7154_p11) target bundleno = 4256 (0x10a0), region = 48  ;;  %s378_s24 = scalar_lea.sflag (!%p7154_p11), [#allocation7], %s377_s11 }
  0xad   : > { %s4688_s26 = smul.u32 (!%p7154_p11), 80, %s379_s4  ;;  %p7155_p9 = scmp.ne.s32.totalorder (!%p7154_p11), %s7137_s23, 0 }
  0xaf   : > { %s6041_s20 = scalar_lea.vmem (!%p7154_p11), [#allocation6], %s4688_s26 }
  0xb3   : > { %5590 = dma.done.wait (%p7155_p9), %s378_s24, 1280  }
  0xb4   : > { %5592 = vsyncadd (%p7155_p9), %s378_s24, 4294966016  ;;  %p7156_p3 = scmp.eq.s32.totalorder %s5800_s15, 0 }
  0xb6   : > { %5594 = dma.done.wait (%p7156_p3), [#allocation10], 4096   ;;  %p7157_p10 = pmov %p7156_p3 }
  0xb7   : > { %s7158_s7 = sld [smem:[#allocation32_spill]]  ;;  %s392_s21 = sand.u32 1, %s5627_s28  }
  0xb8   : > { %5596 = vsyncadd (%p7157_p10), [#allocation10], 4294963200  ;;  %s4397_s17 = sshll.u32 %s392_s21, 8 }
  0xb9   : > { %s6052_s18 = scalar_lea.vmem [#allocation11], %s4397_s17 }
  0xbd   : > { %p7159_p0 = scmp.ne.s32.totalorder %s7158_s7, 0 }
  0xbf   : > { %5598 = dma.done.wait (%p7159_p0), %s378_s24, 8192  }
  0xc0   : > { %5600 = vsyncadd (%p7159_p0), %s378_s24, 4294959104  ;;  %s6058_s23 = scalar_lea.vmem [#allocation12], %s4397_s17  ;;  %p7160_p1 = pmov %p7156_p3 }
  0xc2   : > { %5602 = dma.done.wait (%p7160_p1), [#allocation10], 1024   ;;  %p7161_p8 = pmov %p7160_p1 }
  0xc3   : > { %s7162_s25 = sld [smem:[#allocation26_spill]]  ;;  %v5681_v0 = vmov 0   ;;  %v5682_v1 = vmov 0.0   ;;  %s7164_s16 = sld [smem:[#allocation36_spill]]  ;;  %v6080_v3 = vld [vmem:[%s6058_s23] sm:$0xff]  ;;  %v6083_v4 = vld [vmem:[%s6058_s23 + $0x8] sm:$0xff] }
  0xc4   : > { %5604 = vsyncadd (%p7161_p8), [#allocation10], 4294966272  ;;  %s7163_s27 = sld [smem:[#allocation24_spill]]  ;;  %459 = vst [vmem:[#allocation4] sm:$0xff] %v5681_v0  ;;  %v6086_v5 = vld [vmem:[%s6058_s23 + $0x10] sm:$0xff]  ;;  %v6089_v6 = vld [vmem:[%s6058_s23 + $0x18] sm:$0xff] }
  0xc5   : > { %460 = vst [vmem:[#allocation5] sm:$0xff] %v5682_v1  ;;  %461 = vst [vmem:[#allocation5 + $0x8] sm:$0xff] %v5682_v1  ;;  %v6092_v7 = vld [vmem:[%s6058_s23 + $0x20] sm:$0xff]  ;;  %v6095_v8 = vld [vmem:[%s6058_s23 + $0x28] sm:$0xff] }
  0xc6   : > { %v6098_v9 = vld [vmem:[%s6058_s23 + $0x30] sm:$0xff]  ;;  %v6101_v10 = vld [vmem:[%s6058_s23 + $0x38] sm:$0xff]  ;;  %v6104_v11 = vld [vmem:[%s6058_s23 + $0x40] sm:$0xff] }
  0xc7   : > { %v6107_v12 = vld [vmem:[%s6058_s23 + $0x48] sm:$0xff]  ;;  %v6110_v13 = vld [vmem:[%s6058_s23 + $0x50] sm:$0xff]  ;;  %v6113_v14 = vld [vmem:[%s6058_s23 + $0x58] sm:$0xff] }
  0xc8   : > { %v6116_v15 = vld [vmem:[%s6058_s23 + $0x60] sm:$0xff]  ;;  %v6119_v16 = vld [vmem:[%s6058_s23 + $0x68] sm:$0xff]  ;;  %v6122_v17 = vld [vmem:[%s6058_s23 + $0x70] sm:$0xff] }
  0xc9   : > { %p453_p2 = scmp.lt.s32.totalorder %s7162_s25, 1  ;;  %v6125_v18 = vld [vmem:[%s6058_s23 + $0x78] sm:$0xff]  ;;  %v6128_v19 = vld [vmem:[%s6058_s23 + $0x80] sm:$0xff]  ;;  %v6131_v20 = vld [vmem:[%s6058_s23 + $0x88] sm:$0xff]  ;;  %p4402_p4 = scmp.ne.s32.totalorder %s7162_s25, 0 }
  0xca   : > { %s449_s22 = sand.u32 1, %s7163_s27   ;;  %v6134_v21 = vld [vmem:[%s6058_s23 + $0x90] sm:$0xff]  ;;  %v6137_v22 = vld [vmem:[%s6058_s23 + $0x98] sm:$0xff]  ;;  %v6140_v23 = vld [vmem:[%s6058_s23 + $0xa0] sm:$0xff]  ;;  %v5683_v37 = vmov (!%p4402_p4), 0  }
  0xcb   : > { %s6068_s6 = sshll.u32 %s449_s22, 4  ;;  %v6143_v24 = vld [vmem:[%s6058_s23 + $0xa8] sm:$0xff]  ;;  %v6146_v25 = vld [vmem:[%s6058_s23 + $0xb0] sm:$0xff]  ;;  %v6149_v26 = vld [vmem:[%s6058_s23 + $0xb8] sm:$0xff]  ;;  %498 = sbr.rel (%p4402_p4) target bundleno = 515 (0x203), region = 72  ;;  %811 = vmatprep.mubr.bf16.mxu0 (!%p4402_p4), %v5683_v37  ;;  %924 = vmatprep.mubr.bf16.mxu1 (!%p4402_p4), %v5683_v37 }
  0xcc   : > { %s454_s15 = scalar_select %p453_p2, %s7162_s25, 1  ;;  %v6152_v27 = vld [vmem:[%s6058_s23 + $0xc0] sm:$0xff]  ;;  %v6155_v28 = vld [vmem:[%s6058_s23 + $0xc8] sm:$0xff]  ;;  %v6158_v29 = vld [vmem:[%s6058_s23 + $0xd0] sm:$0xff] }
  0xcd   : > { %v6161_v30 = vld [vmem:[%s6058_s23 + $0xd8] sm:$0xff]  ;;  %v6164_v31 = vld [vmem:[%s6058_s23 + $0xe0] sm:$0xff]  ;;  %v6167_v32 = vld [vmem:[%s6058_s23 + $0xe8] sm:$0xff]  ;;  %s6176_s4 = scalar_lea.vmem [#allocation14], %s6068_s6 }
  0xce   : > { %s4401_s10 = sshll.u32 %s454_s15, 2  ;;  %v6170_v33 = vld [vmem:[%s6058_s23 + $0xf0] sm:$0xff]  ;;  %v6173_v34 = vld [vmem:[%s6058_s23 + $0xf8] sm:$0xff] }
  0xcf   : > { %s456_s11 = scalar_lea.vmem %s7164_s16, %s4401_s10  ;;  %v4863_v35 = vld [vmem:[#allocation9 + $0x4] ss:$16 sps:$4 sm:$0xff] (!%p4402_p4)   ;;  %v4865_v36 = vld [vmem:[#allocation9 + $0xc] ss:$16 sps:$4 sm:$0xff] (!%p4402_p4)   ;;  %v4867_v38 = vld [vmem:[#allocation9] ss:$16 sps:$4 sm:$0xff] (!%p4402_p4)  }
  0xd0   : > { %v6077_v2 = vld [vmem:[%s456_s11] sm:$0xf]  ;;  %779 = vmatprep.subr.bf16.mxu0 (!%p4402_p4), %v4863_v35  ;;  %892 = vmatprep.subr.bf16.mxu1 (!%p4402_p4), %v4865_v36  ;;  %v4869_v40 = vld [vmem:[#allocation9 + $0x24] ss:$16 sps:$4 sm:$0xff] (!%p4402_p4)   ;;  %v4871_v41 = vld [vmem:[#allocation9 + $0x2c] ss:$16 sps:$4 sm:$0xff] (!%p4402_p4)  }
  0xd1   : > { %v4868_v39 = vld [vmem:[#allocation9 + $0x8] ss:$16 sps:$4 sm:$0xff] (!%p4402_p4)   ;;  %780 = vmatpush1.bf16.msra.mxu0 (!%p4402_p4), %v4867_v38  ;;  %v4873_v42 = vld [vmem:[#allocation9 + $0x20] ss:$16 sps:$4 sm:$0xff] (!%p4402_p4)   ;;  %v4875_v44 = vld [vmem:[#allocation9 + $0x44] ss:$16 sps:$4 sm:$0xff] (!%p4402_p4)  }
  0xd2   : > { %893 = vmatpush1.bf16.msra.mxu1 %v4868_v39  ;;  %781 = vmatprep.subr.bf16.mxu0 %v4869_v40  ;;  %v4874_v43 = vld [vmem:[#allocation9 + $0x28] ss:$16 sps:$4 sm:$0xff]   ;;  %v4877_v45 = vld [vmem:[#allocation9 + $0x4c] ss:$16 sps:$4 sm:$0xff]   ;;  %v4879_v46 = vld [vmem:[#allocation9 + $0x40] ss:$16 sps:$4 sm:$0xff]  }
  0xd3   : > { %894 = vmatprep.subr.bf16.mxu1 %v4871_v41  ;;  %v4880_v47 = vld [vmem:[#allocation9 + $0x48] ss:$16 sps:$4 sm:$0xff]   ;;  %v4881_v48 = vld [vmem:[#allocation9 + $0x64] ss:$16 sps:$4 sm:$0xff]   ;;  %v4883_v49 = vld [vmem:[#allocation9 + $0x6c] ss:$16 sps:$4 sm:$0xff]  }
  0xd4   : > { %v4885_v50 = vld [vmem:[#allocation9 + $0x60] ss:$16 sps:$4 sm:$0xff]   ;;  %v4886_v51 = vld [vmem:[#allocation9 + $0x68] ss:$16 sps:$4 sm:$0xff]   ;;  %v4887_v52 = vld [vmem:[#allocation9 + $0x84] ss:$16 sps:$4 sm:$0xff]  }
  0xd5   : > { %782 = vmatpush1.bf16.msra.mxu0 %v4873_v42  ;;  %v4889_v53 = vld [vmem:[#allocation9 + $0x8c] ss:$16 sps:$4 sm:$0xff]   ;;  %v4891_v54 = vld [vmem:[#allocation9 + $0x80] ss:$16 sps:$4 sm:$0xff]   ;;  %v4892_v55 = vld [vmem:[#allocation9 + $0x88] ss:$16 sps:$4 sm:$0xff]  }
  0xd6   : > { %895 = vmatpush1.bf16.msra.mxu1 %v4874_v43  ;;  %783 = vmatprep.subr.bf16.mxu0 %v4875_v44  ;;  %v4893_v56 = vld [vmem:[#allocation9 + $0xa4] ss:$16 sps:$4 sm:$0xff]   ;;  %v4895_v57 = vld [vmem:[#allocation9 + $0xac] ss:$16 sps:$4 sm:$0xff]   ;;  %v4897_v58 = vld [vmem:[#allocation9 + $0xa0] ss:$16 sps:$4 sm:$0xff]  }
  0xd7   : > { %896 = vmatprep.subr.bf16.mxu1 %v4877_v45  ;;  %v4898_v59 = vld [vmem:[#allocation9 + $0xa8] ss:$16 sps:$4 sm:$0xff]   ;;  %v4899_v60 = vld [vmem:[#allocation9 + $0xc4] ss:$16 sps:$4 sm:$0xff]   ;;  %v4901_v61 = vld [vmem:[#allocation9 + $0xcc] ss:$16 sps:$4 sm:$0xff]  }
  0xd8   : > { %v4903_v62 = vld [vmem:[#allocation9 + $0xc0] ss:$16 sps:$4 sm:$0xff]   ;;  %v4904_v63 = vld [vmem:[#allocation9 + $0xc8] ss:$16 sps:$4 sm:$0xff]   ;;  %v4905_v35 = vld [vmem:[#allocation9 + $0xe4] ss:$16 sps:$4 sm:$0xff]  }
  0xd9   : > { %784 = vmatpush1.bf16.msra.mxu0 %v4879_v46  ;;  %v4907_v36 = vld [vmem:[#allocation9 + $0xec] ss:$16 sps:$4 sm:$0xff]   ;;  %v4909_v38 = vld [vmem:[#allocation9 + $0xe0] ss:$16 sps:$4 sm:$0xff]   ;;  %v4910_v39 = vld [vmem:[#allocation9 + $0xe8] ss:$16 sps:$4 sm:$0xff]  }
  0xda   : > { %897 = vmatpush1.bf16.msra.mxu1 %v4880_v47  ;;  %785 = vmatprep.subr.bf16.mxu0 %v4881_v48  ;;  %v4911_v40 = vld [vmem:[%s6041_s20] sm:$0xff]   ;;  %v4912_v41 = vld [vmem:[%s6041_s20 + $0x8] sm:$0xff]   ;;  %v4913_v42 = vld [vmem:[%s6041_s20 + $0x10] sm:$0xff]   ;;  %v551_v48 = vlaneseq }
  0xdb   : > { %898 = vmatprep.subr.bf16.mxu1 %v4883_v49  ;;  %v4914_v43 = vld [vmem:[%s6041_s20 + $0x18] sm:$0xff]   ;;  %v4915_v44 = vld [vmem:[%s6041_s20 + $0x20] sm:$0xff]   ;;  %v4916_v45 = vld [vmem:[%s6041_s20 + $0x28] sm:$0xff]  }
  0xdc   : > { %v4917_v46 = vld [vmem:[%s6041_s20 + $0x30] sm:$0xff]   ;;  %v4918_v47 = vld [vmem:[%s6041_s20 + $0x38] sm:$0xff]   ;;  %v552_v49 = vshrl.u32 %v551_v48, 7 }
  0xdd   : > { %786 = vmatpush1.bf16.msra.mxu0 %v4885_v50 }
  0xde   : > { %899 = vmatpush1.bf16.msra.mxu1 %v4886_v51  ;;  %787 = vmatprep.subr.bf16.mxu0 %v4887_v52  ;;  %v553_v50 = vsub.s32 0, %v552_v49  ;;  %v561_v51 = vsub.s32 2, %v552_v49  ;;  %v557_v52 = vsub.s32 1, %v552_v49 }
  0xdf   : > { %900 = vmatprep.subr.bf16.mxu1 %v4889_v53  ;;  %v565_v53 = vsub.s32 3, %v552_v49 }
  0xe1   : > { %788 = vmatpush1.bf16.msra.mxu0 %v4891_v54  ;;  %v6206_v54 = vrot.slane %v6077_v2, %v553_v50 }
  0xe2   : > { %901 = vmatpush1.bf16.msra.mxu1 %v4892_v55  ;;  %789 = vmatprep.subr.bf16.mxu0 %v4893_v56  ;;  %v6209_v55 = vrot.slane %v6077_v2, %v561_v51  ;;  %v6212_v56 = vrot.slane %v6077_v2, %v557_v52 }
  0xe3   : > { %902 = vmatprep.subr.bf16.mxu1 %v4895_v57 }
  0xe5   : > { %790 = vmatpush1.bf16.msra.mxu0 %v4897_v58 }
  0xe6   : > { %903 = vmatpush1.bf16.msra.mxu1 %v4898_v59  ;;  %791 = vmatprep.subr.bf16.mxu0 %v4899_v60 }
  0xe7   : > { %904 = vmatprep.subr.bf16.mxu1 %v4901_v61 }
  0xe9   : > { %792 = vmatpush1.bf16.msra.mxu0 %v4903_v62 }
  0xea   : > { %905 = vmatpush1.bf16.msra.mxu1 %v4904_v63  ;;  %793 = vmatprep.subr.bf16.mxu0 %v4905_v35 }
  0xeb   : > { %906 = vmatprep.subr.bf16.mxu1 %v4907_v36 }
  0xed   : > { %794 = vmatpush1.bf16.msra.mxu0 %v4909_v38 }
  0xee   : > { %907 = vmatpush1.bf16.msra.mxu1 %v4910_v39 }
  0xf0   : > { %812 = vmatmul.mubr.bf16.vlgmr.msra.gmra.mrb[0].mxu0 %v4911_v40 }
  0xf1   : > { %925 = vmatmul.mubr.bf16.vlgmr.msra.gmra.mrb[0].mxu1 %v4911_v40  ;;  %821 = vmatprep.mubr.bf16.mxu0 %v5683_v37 }
  0xf2   : > { %934 = vmatprep.mubr.bf16.mxu1 %v5683_v37 }
  0xf8   : > { %822 = vmatmul.mubr.bf16.gmra.mrb[4].mxu0 %v4912_v41 }
  0xf9   : > { %935 = vmatmul.mubr.bf16.gmra.mrb[4].mxu1 %v4912_v41  ;;  %831 = vmatprep.mubr.bf16.mxu0 %v5683_v37 }
  0xfa   : > { %944 = vmatprep.mubr.bf16.mxu1 %v5683_v37 }
 0x100   : > { %832 = vmatmul.mubr.bf16.gmra.mrb[8].mxu0 %v4913_v42 }
 0x101   : > { %945 = vmatmul.mubr.bf16.gmra.mrb[8].mxu1 %v4913_v42  ;;  %841 = vmatprep.mubr.bf16.mxu0 %v5683_v37 }
 0x102   : > { %954 = vmatprep.mubr.bf16.mxu1 %v5683_v37 }
 0x108   : > { %842 = vmatmul.mubr.bf16.gmra.mrb[12].mxu0 %v4914_v43 }
 0x109   : > { %955 = vmatmul.mubr.bf16.gmra.mrb[12].mxu1 %v4914_v43  ;;  %851 = vmatprep.mubr.bf16.mxu0 %v5683_v37 }
 0x10a   : > { %964 = vmatprep.mubr.bf16.mxu1 %v5683_v37 }
 0x110   : > { %852 = vmatmul.mubr.bf16.gmra.mrb[16].mxu0 %v4915_v44 }
 0x111   : > { %965 = vmatmul.mubr.bf16.gmra.mrb[16].mxu1 %v4915_v44  ;;  %861 = vmatprep.mubr.bf16.mxu0 %v5683_v37 }
 0x112   : > { %974 = vmatprep.mubr.bf16.mxu1 %v5683_v37 }
 0x118   : > { %862 = vmatmul.mubr.bf16.gmra.mrb[20].mxu0 %v4916_v45 }
 0x119   : > { %975 = vmatmul.mubr.bf16.gmra.mrb[20].mxu1 %v4916_v45  ;;  %871 = vmatprep.mubr.bf16.mxu0 %v5683_v37 }
 0x11a   : > { %984 = vmatprep.mubr.bf16.mxu1 %v5683_v37 }
 0x120   : > { %872 = vmatmul.mubr.bf16.gmra.mrb[24].mxu0 %v4917_v46 }
 0x121   : > { %985 = vmatmul.mubr.bf16.gmra.mrb[24].mxu1 %v4917_v46  ;;  %881 = vmatprep.mubr.bf16.mxu0 %v5683_v37 }
 0x122   : > { %994 = vmatprep.mubr.bf16.mxu1 %v5683_v37  ;;  %v6215_v37 = vrot.slane %v6077_v2, %v565_v53 }
 0x128   : > { %882 = vmatmul.mubr.bf16.gmra.mrb[28].mxu0 %v4918_v47 }
 0x129   : > { %995 = vmatmul.mubr.bf16.gmra.mrb[28].mxu1 %v4918_v47 }
 0x1c3   : > { %v813_v57 = vpop.f32.mrb[0].mxu0 }
 0x1c4   : > { %v926_v58 = vpop.f32.mrb[0].mxu1  ;;  %v814_v59 = vadd.f32 %v813_v57, %v6206_v54  ;;  %v815_v61 = vpop.f32.mrb[1].mxu0 }
 0x1c5   : > { %v927_v60 = vadd.f32 %v926_v58, %v6209_v55  ;;  %v928_v62 = vpop.f32.mrb[1].mxu1  ;;  %v816_v63 = vadd.f32 %v815_v61, %v6212_v56  ;;  %v817_v36 = vpop.f32.mrb[2].mxu0 }
 0x1c6   : > { %v929_v35 = vadd.f32 %v928_v62, %v6215_v37  ;;  %v930_v38 = vpop.f32.mrb[2].mxu1  ;;  %1005 = vst [vmem:[#allocation3] sm:$0xff] %v814_v59  ;;  %v818_v39 = vadd.f32 %v817_v36, %v6206_v54  ;;  %v819_v41 = vpop.f32.mrb[3].mxu0 }
 0x1c7   : > { %1007 = vst [vmem:[#allocation3 + $0x10] sm:$0xff] %v927_v60  ;;  %v931_v40 = vadd.f32 %v930_v38, %v6209_v55  ;;  %v932_v42 = vpop.f32.mrb[3].mxu1  ;;  %1006 = vst [vmem:[#allocation3 + $0x8] sm:$0xff] %v816_v63  ;;  %v820_v43 = vadd.f32 %v819_v41, %v6212_v56 }
 0x1c8   : > { %1008 = vst [vmem:[#allocation3 + $0x18] sm:$0xff] %v929_v35  ;;  %v933_v44 = vadd.f32 %v932_v42, %v6215_v37  ;;  %1009 = vst [vmem:[#allocation3 + $0x20] sm:$0xff] %v818_v39 }
 0x1c9   : > { %1011 = vst [vmem:[#allocation3 + $0x30] sm:$0xff] %v931_v40  ;;  %1010 = vst [vmem:[#allocation3 + $0x28] sm:$0xff] %v820_v43 }
 0x1ca   : > { %1012 = vst [vmem:[#allocation3 + $0x38] sm:$0xff] %v933_v44 }
 0x1cb   : > { %v823_v45 = vpop.f32.mrb[4].mxu0 }
 0x1cc   : > { %v936_v46 = vpop.f32.mrb[4].mxu1  ;;  %v824_v47 = vadd.f32 %v823_v45, %v6206_v54  ;;  %v825_v49 = vpop.f32.mrb[5].mxu0 }
 0x1cd   : > { %v937_v48 = vadd.f32 %v936_v46, %v6209_v55  ;;  %v938_v50 = vpop.f32.mrb[5].mxu1  ;;  %v826_v51 = vadd.f32 %v825_v49, %v6212_v56  ;;  %v827_v53 = vpop.f32.mrb[6].mxu0 }
 0x1ce   : > { %v939_v52 = vadd.f32 %v938_v50, %v6215_v37  ;;  %v940_v57 = vpop.f32.mrb[6].mxu1  ;;  %1013 = vst [vmem:[#allocation3 + $0x40] sm:$0xff] %v824_v47  ;;  %v828_v58 = vadd.f32 %v827_v53, %v6206_v54  ;;  %v829_v60 = vpop.f32.mrb[7].mxu0 }
 0x1cf   : > { %1015 = vst [vmem:[#allocation3 + $0x50] sm:$0xff] %v937_v48  ;;  %v941_v59 = vadd.f32 %v940_v57, %v6209_v55  ;;  %v942_v61 = vpop.f32.mrb[7].mxu1  ;;  %1014 = vst [vmem:[#allocation3 + $0x48] sm:$0xff] %v826_v51  ;;  %v830_v62 = vadd.f32 %v829_v60, %v6212_v56 }
 0x1d0   : > { %1016 = vst [vmem:[#allocation3 + $0x58] sm:$0xff] %v939_v52  ;;  %v943_v63 = vadd.f32 %v942_v61, %v6215_v37  ;;  %1017 = vst [vmem:[#allocation3 + $0x60] sm:$0xff] %v828_v58 }
 0x1d1   : > { %1019 = vst [vmem:[#allocation3 + $0x70] sm:$0xff] %v941_v59  ;;  %1018 = vst [vmem:[#allocation3 + $0x68] sm:$0xff] %v830_v62 }
 0x1d2   : > { %1020 = vst [vmem:[#allocation3 + $0x78] sm:$0xff] %v943_v63 }
 0x1d3   : > { %v833_v35 = vpop.f32.mrb[8].mxu0 }
 0x1d4   : > { %v946_v36 = vpop.f32.mrb[8].mxu1  ;;  %v834_v38 = vadd.f32 %v833_v35, %v6206_v54  ;;  %v835_v40 = vpop.f32.mrb[9].mxu0 }
 0x1d5   : > { %v947_v39 = vadd.f32 %v946_v36, %v6209_v55  ;;  %v948_v41 = vpop.f32.mrb[9].mxu1  ;;  %v836_v42 = vadd.f32 %v835_v40, %v6212_v56  ;;  %v837_v44 = vpop.f32.mrb[10].mxu0 }
 0x1d6   : > { %v949_v43 = vadd.f32 %v948_v41, %v6215_v37  ;;  %v950_v45 = vpop.f32.mrb[10].mxu1  ;;  %1021 = vst [vmem:[#allocation3 + $0x80] sm:$0xff] %v834_v38  ;;  %v838_v46 = vadd.f32 %v837_v44, %v6206_v54  ;;  %v839_v48 = vpop.f32.mrb[11].mxu0 }
 0x1d7   : > { %1023 = vst [vmem:[#allocation3 + $0x90] sm:$0xff] %v947_v39  ;;  %v951_v47 = vadd.f32 %v950_v45, %v6209_v55  ;;  %v952_v49 = vpop.f32.mrb[11].mxu1  ;;  %1022 = vst [vmem:[#allocation3 + $0x88] sm:$0xff] %v836_v42  ;;  %v840_v50 = vadd.f32 %v839_v48, %v6212_v56 }
 0x1d8   : > { %1024 = vst [vmem:[#allocation3 + $0x98] sm:$0xff] %v949_v43  ;;  %v953_v51 = vadd.f32 %v952_v49, %v6215_v37  ;;  %1025 = vst [vmem:[#allocation3 + $0xa0] sm:$0xff] %v838_v46 }
 0x1d9   : > { %1027 = vst [vmem:[#allocation3 + $0xb0] sm:$0xff] %v951_v47  ;;  %1026 = vst [vmem:[#allocation3 + $0xa8] sm:$0xff] %v840_v50 }
 0x1da   : > { %1028 = vst [vmem:[#allocation3 + $0xb8] sm:$0xff] %v953_v51 }
 0x1db   : > { %v843_v52 = vpop.f32.mrb[12].mxu0 }
 0x1dc   : > { %v956_v53 = vpop.f32.mrb[12].mxu1  ;;  %v844_v57 = vadd.f32 %v843_v52, %v6206_v54  ;;  %v845_v59 = vpop.f32.mrb[13].mxu0 }
 0x1dd   : > { %v957_v58 = vadd.f32 %v956_v53, %v6209_v55  ;;  %v958_v60 = vpop.f32.mrb[13].mxu1  ;;  %v846_v61 = vadd.f32 %v845_v59, %v6212_v56  ;;  %v847_v63 = vpop.f32.mrb[14].mxu0 }
 0x1de   : > { %v959_v62 = vadd.f32 %v958_v60, %v6215_v37  ;;  %v960_v35 = vpop.f32.mrb[14].mxu1  ;;  %1029 = vst [vmem:[#allocation3 + $0xc0] sm:$0xff] %v844_v57  ;;  %v848_v36 = vadd.f32 %v847_v63, %v6206_v54  ;;  %v849_v39 = vpop.f32.mrb[15].mxu0 }
 0x1df   : > { %1031 = vst [vmem:[#allocation3 + $0xd0] sm:$0xff] %v957_v58  ;;  %v961_v38 = vadd.f32 %v960_v35, %v6209_v55  ;;  %v962_v40 = vpop.f32.mrb[15].mxu1  ;;  %1030 = vst [vmem:[#allocation3 + $0xc8] sm:$0xff] %v846_v61  ;;  %v850_v41 = vadd.f32 %v849_v39, %v6212_v56 }
 0x1e0   : > { %1032 = vst [vmem:[#allocation3 + $0xd8] sm:$0xff] %v959_v62  ;;  %v963_v42 = vadd.f32 %v962_v40, %v6215_v37  ;;  %1033 = vst [vmem:[#allocation3 + $0xe0] sm:$0xff] %v848_v36 }
 0x1e1   : > { %1035 = vst [vmem:[#allocation3 + $0xf0] sm:$0xff] %v961_v38  ;;  %1034 = vst [vmem:[#allocation3 + $0xe8] sm:$0xff] %v850_v41 }
 0x1e2   : > { %1036 = vst [vmem:[#allocation3 + $0xf8] sm:$0xff] %v963_v42 }
 0x1e3   : > { %v853_v43 = vpop.f32.mrb[16].mxu0 }
 0x1e4   : > { %v966_v44 = vpop.f32.mrb[16].mxu1  ;;  %v854_v45 = vadd.f32 %v853_v43, %v6206_v54  ;;  %v855_v47 = vpop.f32.mrb[17].mxu0 }
 0x1e5   : > { %v967_v46 = vadd.f32 %v966_v44, %v6209_v55  ;;  %v968_v48 = vpop.f32.mrb[17].mxu1  ;;  %v856_v49 = vadd.f32 %v855_v47, %v6212_v56  ;;  %v857_v51 = vpop.f32.mrb[18].mxu0 }
 0x1e6   : > { %v969_v50 = vadd.f32 %v968_v48, %v6215_v37  ;;  %v970_v52 = vpop.f32.mrb[18].mxu1  ;;  %1037 = vst [vmem:[#allocation3 + $0x100] sm:$0xff] %v854_v45  ;;  %v858_v53 = vadd.f32 %v857_v51, %v6206_v54  ;;  %v859_v58 = vpop.f32.mrb[19].mxu0 }
 0x1e7   : > { %1039 = vst [vmem:[#allocation3 + $0x110] sm:$0xff] %v967_v46  ;;  %v971_v57 = vadd.f32 %v970_v52, %v6209_v55  ;;  %v972_v59 = vpop.f32.mrb[19].mxu1  ;;  %1038 = vst [vmem:[#allocation3 + $0x108] sm:$0xff] %v856_v49  ;;  %v860_v60 = vadd.f32 %v859_v58, %v6212_v56 }
 0x1e8   : > { %1040 = vst [vmem:[#allocation3 + $0x118] sm:$0xff] %v969_v50  ;;  %v973_v61 = vadd.f32 %v972_v59, %v6215_v37  ;;  %1041 = vst [vmem:[#allocation3 + $0x120] sm:$0xff] %v858_v53 }
 0x1e9   : > { %1043 = vst [vmem:[#allocation3 + $0x130] sm:$0xff] %v971_v57  ;;  %1042 = vst [vmem:[#allocation3 + $0x128] sm:$0xff] %v860_v60 }
 0x1ea   : > { %1044 = vst [vmem:[#allocation3 + $0x138] sm:$0xff] %v973_v61 }
 0x1eb   : > { %v863_v62 = vpop.f32.mrb[20].mxu0 }
 0x1ec   : > { %v976_v63 = vpop.f32.mrb[20].mxu1  ;;  %v864_v35 = vadd.f32 %v863_v62, %v6206_v54  ;;  %v865_v38 = vpop.f32.mrb[21].mxu0 }
 0x1ed   : > { %v977_v36 = vadd.f32 %v976_v63, %v6209_v55  ;;  %v978_v39 = vpop.f32.mrb[21].mxu1  ;;  %v866_v40 = vadd.f32 %v865_v38, %v6212_v56  ;;  %v867_v42 = vpop.f32.mrb[22].mxu0 }
 0x1ee   : > { %v979_v41 = vadd.f32 %v978_v39, %v6215_v37  ;;  %v980_v43 = vpop.f32.mrb[22].mxu1  ;;  %1045 = vst [vmem:[#allocation3 + $0x140] sm:$0xff] %v864_v35  ;;  %v868_v44 = vadd.f32 %v867_v42, %v6206_v54  ;;  %v869_v46 = vpop.f32.mrb[23].mxu0 }
 0x1ef   : > { %1047 = vst [vmem:[#allocation3 + $0x150] sm:$0xff] %v977_v36  ;;  %v981_v45 = vadd.f32 %v980_v43, %v6209_v55  ;;  %v982_v47 = vpop.f32.mrb[23].mxu1  ;;  %1046 = vst [vmem:[#allocation3 + $0x148] sm:$0xff] %v866_v40  ;;  %v870_v48 = vadd.f32 %v869_v46, %v6212_v56 }
 0x1f0   : > { %1048 = vst [vmem:[#allocation3 + $0x158] sm:$0xff] %v979_v41  ;;  %v983_v49 = vadd.f32 %v982_v47, %v6215_v37  ;;  %1049 = vst [vmem:[#allocation3 + $0x160] sm:$0xff] %v868_v44 }
 0x1f1   : > { %1051 = vst [vmem:[#allocation3 + $0x170] sm:$0xff] %v981_v45  ;;  %1050 = vst [vmem:[#allocation3 + $0x168] sm:$0xff] %v870_v48 }
 0x1f2   : > { %1052 = vst [vmem:[#allocation3 + $0x178] sm:$0xff] %v983_v49 }
 0x1f3   : > { %v873_v50 = vpop.f32.mrb[24].mxu0 }
 0x1f4   : > { %v986_v51 = vpop.f32.mrb[24].mxu1  ;;  %v874_v52 = vadd.f32 %v873_v50, %v6206_v54  ;;  %v875_v57 = vpop.f32.mrb[25].mxu0 }
 0x1f5   : > { %v987_v53 = vadd.f32 %v986_v51, %v6209_v55  ;;  %v988_v58 = vpop.f32.mrb[25].mxu1  ;;  %v876_v59 = vadd.f32 %v875_v57, %v6212_v56  ;;  %v877_v61 = vpop.f32.mrb[26].mxu0 }
 0x1f6   : > { %v989_v60 = vadd.f32 %v988_v58, %v6215_v37  ;;  %v990_v62 = vpop.f32.mrb[26].mxu1  ;;  %1053 = vst [vmem:[#allocation3 + $0x180] sm:$0xff] %v874_v52  ;;  %v878_v63 = vadd.f32 %v877_v61, %v6206_v54  ;;  %v879_v36 = vpop.f32.mrb[27].mxu0 }
 0x1f7   : > { %1055 = vst [vmem:[#allocation3 + $0x190] sm:$0xff] %v987_v53  ;;  %v991_v35 = vadd.f32 %v990_v62, %v6209_v55  ;;  %v992_v38 = vpop.f32.mrb[27].mxu1  ;;  %1054 = vst [vmem:[#allocation3 + $0x188] sm:$0xff] %v876_v59  ;;  %v880_v39 = vadd.f32 %v879_v36, %v6212_v56 }
 0x1f8   : > { %1056 = vst [vmem:[#allocation3 + $0x198] sm:$0xff] %v989_v60  ;;  %v993_v40 = vadd.f32 %v992_v38, %v6215_v37  ;;  %1057 = vst [vmem:[#allocation3 + $0x1a0] sm:$0xff] %v878_v63 }
 0x1f9   : > { %1059 = vst [vmem:[#allocation3 + $0x1b0] sm:$0xff] %v991_v35  ;;  %1058 = vst [vmem:[#allocation3 + $0x1a8] sm:$0xff] %v880_v39 }
 0x1fa   : > { %1060 = vst [vmem:[#allocation3 + $0x1b8] sm:$0xff] %v993_v40 }
 0x1fb   : > { %v883_v41 = vpop.f32.mrb[28].mxu0 }
 0x1fc   : > { %v996_v42 = vpop.f32.mrb[28].mxu1  ;;  %v884_v43 = vadd.f32 %v883_v41, %v6206_v54  ;;  %v885_v45 = vpop.f32.mrb[29].mxu0 }
 0x1fd   : > { %v997_v44 = vadd.f32 %v996_v42, %v6209_v55  ;;  %v998_v46 = vpop.f32.mrb[29].mxu1  ;;  %v886_v47 = vadd.f32 %v885_v45, %v6212_v56  ;;  %v887_v49 = vpop.f32.mrb[30].mxu0 }
 0x1fe   : > { %v999_v48 = vadd.f32 %v998_v46, %v6215_v37  ;;  %v1000_v50 = vpop.f32.mrb[30].mxu1  ;;  %1061 = vst [vmem:[#allocation3 + $0x1c0] sm:$0xff] %v884_v43  ;;  %v888_v51 = vadd.f32 %v887_v49, %v6206_v54  ;;  %v889_v53 = vpop.f32.mrb[31].mxu0 }
 0x1ff   : > { %1063 = vst [vmem:[#allocation3 + $0x1d0] sm:$0xff] %v997_v44  ;;  %v1001_v52 = vadd.f32 %v1000_v50, %v6209_v55  ;;  %v1002_v57 = vpop.f32.mrb[31].mxu1  ;;  %1062 = vst [vmem:[#allocation3 + $0x1c8] sm:$0xff] %v886_v47  ;;  %v890_v58 = vadd.f32 %v889_v53, %v6212_v56 }
 0x200   : > { %1064 = vst [vmem:[#allocation3 + $0x1d8] sm:$0xff] %v999_v48  ;;  %v1003_v59 = vadd.f32 %v1002_v57, %v6215_v37  ;;  %1065 = vst [vmem:[#allocation3 + $0x1e0] sm:$0xff] %v888_v51 }
 0x201   : > { %1067 = vst [vmem:[#allocation3 + $0x1f0] sm:$0xff] %v1001_v52  ;;  %1066 = vst [vmem:[#allocation3 + $0x1e8] sm:$0xff] %v890_v58 }
 0x202   : > { %1068 = vst [vmem:[#allocation3 + $0x1f8] sm:$0xff] %v1003_v59 }
 0x203 PF: > { %s7165_s26 = sld [smem:[#allocation26_spill]] }
 0x209   : > { %p4443_p6 = scmp.le.s32.totalorder %s7165_s26, 0 }
 0x20a   : > { %v4919_v54 = vld [vmem:[%s6052_s18 + $0x4] ss:$16 sps:$4 sm:$0xff] (!%p4443_p6)   ;;  %v4921_v55 = vld [vmem:[%s6052_s18 + $0xc] ss:$16 sps:$4 sm:$0xff] (!%p4443_p6)   ;;  %v5684_v56 = vmov (!%p4443_p6), 0  }
 0x20b   : > { %1072 = sbr.rel (%p4443_p6) target bundleno = 830 (0x33e), region = 76  ;;  %1331 = vmatprep.mubr.bf16.mxu0 (!%p4443_p6), %v5684_v56  ;;  %1444 = vmatprep.mubr.bf16.mxu1 (!%p4443_p6), %v5684_v56  ;;  %v4923_v37 = vld [vmem:[%s6052_s18] ss:$16 sps:$4 sm:$0xff] (!%p4443_p6)   ;;  %v4924_v60 = vld [vmem:[%s6052_s18 + $0x8] ss:$16 sps:$4 sm:$0xff] (!%p4443_p6)  }
 0x20c   : > { %1299 = vmatprep.subr.bf16.mxu0 (!%p4443_p6), %v4919_v54  ;;  %1412 = vmatprep.subr.bf16.mxu1 (!%p4443_p6), %v4921_v55  ;;  %v4925_v61 = vld [vmem:[%s6052_s18 + $0x24] ss:$16 sps:$4 sm:$0xff] (!%p4443_p6)   ;;  %v4927_v62 = vld [vmem:[%s6052_s18 + $0x2c] ss:$16 sps:$4 sm:$0xff] (!%p4443_p6)   ;;  %v4929_v63 = vld [vmem:[%s6052_s18 + $0x20] ss:$16 sps:$4 sm:$0xff] (!%p4443_p6)  }
 0x20d   : > { %1300 = vmatpush1.bf16.msra.mxu0 (!%p4443_p6), %v4923_v37  ;;  %1413 = vmatpush1.bf16.msra.mxu1 (!%p4443_p6), %v4924_v60  ;;  %v4930_v35 = vld [vmem:[%s6052_s18 + $0x28] ss:$16 sps:$4 sm:$0xff] (!%p4443_p6)   ;;  %v4931_v36 = vld [vmem:[%s6052_s18 + $0x44] ss:$16 sps:$4 sm:$0xff] (!%p4443_p6)   ;;  %v4933_v38 = vld [vmem:[%s6052_s18 + $0x4c] ss:$16 sps:$4 sm:$0xff] (!%p4443_p6)  }
 0x20e   : > { %1301 = vmatprep.subr.bf16.mxu0 (!%p4443_p6), %v4925_v61  ;;  %1414 = vmatprep.subr.bf16.mxu1 (!%p4443_p6), %v4927_v62  ;;  %v4935_v39 = vld [vmem:[%s6052_s18 + $0x40] ss:$16 sps:$4 sm:$0xff] (!%p4443_p6)   ;;  %v4936_v40 = vld [vmem:[%s6052_s18 + $0x48] ss:$16 sps:$4 sm:$0xff] (!%p4443_p6)   ;;  %v4937_v41 = vld [vmem:[%s6052_s18 + $0x64] ss:$16 sps:$4 sm:$0xff] (!%p4443_p6)  }
 0x20f   : > { %v4939_v42 = vld [vmem:[%s6052_s18 + $0x6c] ss:$16 sps:$4 sm:$0xff] (!%p4443_p6)   ;;  %v4941_v43 = vld [vmem:[%s6052_s18 + $0x60] ss:$16 sps:$4 sm:$0xff] (!%p4443_p6)   ;;  %v4942_v44 = vld [vmem:[%s6052_s18 + $0x68] ss:$16 sps:$4 sm:$0xff] (!%p4443_p6)  }
 0x210   : > { %v4943_v45 = vld [vmem:[%s6052_s18 + $0x84] ss:$16 sps:$4 sm:$0xff] (!%p4443_p6)   ;;  %v4945_v46 = vld [vmem:[%s6052_s18 + $0x8c] ss:$16 sps:$4 sm:$0xff] (!%p4443_p6)   ;;  %v4947_v47 = vld [vmem:[%s6052_s18 + $0x80] ss:$16 sps:$4 sm:$0xff] (!%p4443_p6)  }
 0x211   : > { %1302 = vmatpush1.bf16.msra.mxu0 (!%p4443_p6), %v4929_v63  ;;  %1415 = vmatpush1.bf16.msra.mxu1 (!%p4443_p6), %v4930_v35  ;;  %v4948_v48 = vld [vmem:[%s6052_s18 + $0x88] ss:$16 sps:$4 sm:$0xff] (!%p4443_p6)   ;;  %v4949_v49 = vld [vmem:[%s6052_s18 + $0xa4] ss:$16 sps:$4 sm:$0xff] (!%p4443_p6)   ;;  %v4951_v50 = vld [vmem:[%s6052_s18 + $0xac] ss:$16 sps:$4 sm:$0xff] (!%p4443_p6)  }
 0x212   : > { %1303 = vmatprep.subr.bf16.mxu0 %v4931_v36  ;;  %1416 = vmatprep.subr.bf16.mxu1 %v4933_v38  ;;  %v4953_v51 = vld [vmem:[%s6052_s18 + $0xa0] ss:$16 sps:$4 sm:$0xff]   ;;  %v4954_v52 = vld [vmem:[%s6052_s18 + $0xa8] ss:$16 sps:$4 sm:$0xff]   ;;  %v4955_v53 = vld [vmem:[%s6052_s18 + $0xc4] ss:$16 sps:$4 sm:$0xff]  }
 0x213   : > { %v4957_v57 = vld [vmem:[%s6052_s18 + $0xcc] ss:$16 sps:$4 sm:$0xff]   ;;  %v4959_v58 = vld [vmem:[%s6052_s18 + $0xc0] ss:$16 sps:$4 sm:$0xff]   ;;  %v4960_v59 = vld [vmem:[%s6052_s18 + $0xc8] ss:$16 sps:$4 sm:$0xff]  }
 0x214   : > { %v4961_v54 = vld [vmem:[%s6052_s18 + $0xe4] ss:$16 sps:$4 sm:$0xff]   ;;  %v4963_v55 = vld [vmem:[%s6052_s18 + $0xec] ss:$16 sps:$4 sm:$0xff]   ;;  %v4965_v37 = vld [vmem:[%s6052_s18 + $0xe0] ss:$16 sps:$4 sm:$0xff]  }
 0x215   : > { %1304 = vmatpush1.bf16.msra.mxu0 %v4935_v39  ;;  %1417 = vmatpush1.bf16.msra.mxu1 %v4936_v40  ;;  %v4966_v60 = vld [vmem:[%s6052_s18 + $0xe8] ss:$16 sps:$4 sm:$0xff]   ;;  %v1079_v62 = vld [vmem:[#allocation2 + $0x8] sm:$0xff]  ;;  %v1081_v35 = vld [vmem:[#allocation2 + $0x18] sm:$0xff] }
 0x216   : > { %1305 = vmatprep.subr.bf16.mxu0 %v4937_v41  ;;  %1418 = vmatprep.subr.bf16.mxu1 %v4939_v42  ;;  %v1078_v61 = vld [vmem:[#allocation2] sm:$0xff]  ;;  %v1080_v63 = vld [vmem:[#allocation2 + $0x10] sm:$0xff]  ;;  %v1083_v38 = vld [vmem:[#allocation2 + $0x28] sm:$0xff]  ;;  %v1119_v41 = vlaneseq }
 0x217   : > { %v1082_v36 = vld [vmem:[#allocation2 + $0x20] sm:$0xff]  ;;  %v1084_v39 = vld [vmem:[#allocation2 + $0x30] sm:$0xff]  ;;  %v1085_v40 = vld [vmem:[#allocation2 + $0x38] sm:$0xff] }
 0x218   : > { %v1120_v42 = vshrl.u32 %v1119_v41, 7 }
 0x219   : > { %1306 = vmatpush1.bf16.msra.mxu0 %v4941_v43  ;;  %1419 = vmatpush1.bf16.msra.mxu1 %v4942_v44 }
 0x21a   : > { %1307 = vmatprep.subr.bf16.mxu0 %v4943_v45  ;;  %1420 = vmatprep.subr.bf16.mxu1 %v4945_v46  ;;  %v1121_v43 = vsub.s32 0, %v1120_v42  ;;  %v1129_v44 = vsub.s32 2, %v1120_v42  ;;  %v1125_v45 = vsub.s32 1, %v1120_v42  ;;  %v1133_v46 = vsub.s32 3, %v1120_v42 }
 0x21d   : > { %1308 = vmatpush1.bf16.msra.mxu0 %v4947_v47  ;;  %1421 = vmatpush1.bf16.msra.mxu1 %v4948_v48  ;;  %v6333_v47 = vrot.slane %v6077_v2, %v1121_v43  ;;  %v6336_v48 = vrot.slane %v6077_v2, %v1129_v44 }
 0x21e   : > { %1309 = vmatprep.subr.bf16.mxu0 %v4949_v49  ;;  %1422 = vmatprep.subr.bf16.mxu1 %v4951_v50  ;;  %v6339_v49 = vrot.slane %v6077_v2, %v1125_v45 }
 0x221   : > { %1310 = vmatpush1.bf16.msra.mxu0 %v4953_v51  ;;  %1423 = vmatpush1.bf16.msra.mxu1 %v4954_v52 }
 0x222   : > { %1311 = vmatprep.subr.bf16.mxu0 %v4955_v53  ;;  %1424 = vmatprep.subr.bf16.mxu1 %v4957_v57 }
 0x225   : > { %1312 = vmatpush1.bf16.msra.mxu0 %v4959_v58  ;;  %1425 = vmatpush1.bf16.msra.mxu1 %v4960_v59 }
 0x226   : > { %1313 = vmatprep.subr.bf16.mxu0 %v4961_v54  ;;  %1426 = vmatprep.subr.bf16.mxu1 %v4963_v55 }
 0x229   : > { %1314 = vmatpush1.bf16.msra.mxu0 %v4965_v37  ;;  %1427 = vmatpush1.bf16.msra.mxu1 %v4966_v60 }
 0x22c   : > { %1332 = vmatmul.mubr.bf16.vlgmr.msra.gmra.mrb[0].mxu0 %v1078_v61  ;;  %1445 = vmatmul.mubr.bf16.vlgmr.msra.gmra.mrb[0].mxu1 %v1078_v61 }
 0x22d   : > { %1341 = vmatprep.mubr.bf16.mxu0 %v5684_v56  ;;  %1454 = vmatprep.mubr.bf16.mxu1 %v5684_v56 }
 0x234   : > { %1342 = vmatmul.mubr.bf16.gmra.mrb[4].mxu0 %v1079_v62  ;;  %1455 = vmatmul.mubr.bf16.gmra.mrb[4].mxu1 %v1079_v62 }
 0x235   : > { %1351 = vmatprep.mubr.bf16.mxu0 %v5684_v56  ;;  %1464 = vmatprep.mubr.bf16.mxu1 %v5684_v56 }
 0x23c   : > { %1352 = vmatmul.mubr.bf16.gmra.mrb[8].mxu0 %v1080_v63  ;;  %1465 = vmatmul.mubr.bf16.gmra.mrb[8].mxu1 %v1080_v63 }
 0x23d   : > { %1361 = vmatprep.mubr.bf16.mxu0 %v5684_v56  ;;  %1474 = vmatprep.mubr.bf16.mxu1 %v5684_v56 }
 0x244   : > { %1362 = vmatmul.mubr.bf16.gmra.mrb[12].mxu0 %v1081_v35  ;;  %1475 = vmatmul.mubr.bf16.gmra.mrb[12].mxu1 %v1081_v35 }
 0x245   : > { %1371 = vmatprep.mubr.bf16.mxu0 %v5684_v56  ;;  %1484 = vmatprep.mubr.bf16.mxu1 %v5684_v56 }
 0x24c   : > { %1372 = vmatmul.mubr.bf16.gmra.mrb[16].mxu0 %v1082_v36  ;;  %1485 = vmatmul.mubr.bf16.gmra.mrb[16].mxu1 %v1082_v36 }
 0x24d   : > { %1381 = vmatprep.mubr.bf16.mxu0 %v5684_v56  ;;  %1494 = vmatprep.mubr.bf16.mxu1 %v5684_v56 }
 0x254   : > { %1382 = vmatmul.mubr.bf16.gmra.mrb[20].mxu0 %v1083_v38  ;;  %1495 = vmatmul.mubr.bf16.gmra.mrb[20].mxu1 %v1083_v38 }
 0x255   : > { %1391 = vmatprep.mubr.bf16.mxu0 %v5684_v56  ;;  %1504 = vmatprep.mubr.bf16.mxu1 %v5684_v56 }
 0x25c   : > { %1392 = vmatmul.mubr.bf16.gmra.mrb[24].mxu0 %v1084_v39  ;;  %1505 = vmatmul.mubr.bf16.gmra.mrb[24].mxu1 %v1084_v39 }
 0x25d   : > { %1401 = vmatprep.mubr.bf16.mxu0 %v5684_v56  ;;  %1514 = vmatprep.mubr.bf16.mxu1 %v5684_v56  ;;  %v6342_v56 = vrot.slane %v6077_v2, %v1133_v46 }
 0x264   : > { %1402 = vmatmul.mubr.bf16.gmra.mrb[28].mxu0 %v1085_v40  ;;  %1515 = vmatmul.mubr.bf16.gmra.mrb[28].mxu1 %v1085_v40 }
 0x2ff   : > { %v1333_v50 = vpop.f32.mrb[0].mxu0  ;;  %v1446_v51 = vpop.f32.mrb[0].mxu1 }
 0x300   : > { %v1334_v52 = vadd.f32 %v1333_v50, %v6333_v47  ;;  %v1447_v53 = vadd.f32 %v1446_v51, %v6336_v48  ;;  %v1335_v57 = vpop.f32.mrb[1].mxu0  ;;  %v1448_v58 = vpop.f32.mrb[1].mxu1 }
 0x301   : > { %v1336_v59 = vadd.f32 %v1335_v57, %v6339_v49  ;;  %v1449_v54 = vadd.f32 %v1448_v58, %v6342_v56  ;;  %v1337_v55 = vpop.f32.mrb[2].mxu0  ;;  %v1450_v37 = vpop.f32.mrb[2].mxu1 }
 0x302   : > { %1525 = vst [vmem:[#allocation3] sm:$0xff] %v1334_v52  ;;  %1527 = vst [vmem:[#allocation3 + $0x10] sm:$0xff] %v1447_v53  ;;  %v1338_v60 = vadd.f32 %v1337_v55, %v6333_v47  ;;  %v1451_v61 = vadd.f32 %v1450_v37, %v6336_v48  ;;  %v1339_v62 = vpop.f32.mrb[3].mxu0  ;;  %v1452_v63 = vpop.f32.mrb[3].mxu1 }
 0x303   : > { %1526 = vst [vmem:[#allocation3 + $0x8] sm:$0xff] %v1336_v59  ;;  %1528 = vst [vmem:[#allocation3 + $0x18] sm:$0xff] %v1449_v54  ;;  %v1340_v35 = vadd.f32 %v1339_v62, %v6339_v49  ;;  %v1453_v36 = vadd.f32 %v1452_v63, %v6342_v56 }
 0x304   : > { %1529 = vst [vmem:[#allocation3 + $0x20] sm:$0xff] %v1338_v60  ;;  %1531 = vst [vmem:[#allocation3 + $0x30] sm:$0xff] %v1451_v61 }
 0x305   : > { %1530 = vst [vmem:[#allocation3 + $0x28] sm:$0xff] %v1340_v35  ;;  %1532 = vst [vmem:[#allocation3 + $0x38] sm:$0xff] %v1453_v36 }
 0x307   : > { %v1343_v38 = vpop.f32.mrb[4].mxu0  ;;  %v1456_v39 = vpop.f32.mrb[4].mxu1 }
 0x308   : > { %v1344_v40 = vadd.f32 %v1343_v38, %v6333_v47  ;;  %v1457_v41 = vadd.f32 %v1456_v39, %v6336_v48  ;;  %v1345_v42 = vpop.f32.mrb[5].mxu0  ;;  %v1458_v43 = vpop.f32.mrb[5].mxu1 }
 0x309   : > { %v1346_v44 = vadd.f32 %v1345_v42, %v6339_v49  ;;  %v1459_v45 = vadd.f32 %v1458_v43, %v6342_v56  ;;  %v1347_v46 = vpop.f32.mrb[6].mxu0  ;;  %v1460_v50 = vpop.f32.mrb[6].mxu1 }
 0x30a   : > { %1533 = vst [vmem:[#allocation3 + $0x40] sm:$0xff] %v1344_v40  ;;  %1535 = vst [vmem:[#allocation3 + $0x50] sm:$0xff] %v1457_v41  ;;  %v1348_v51 = vadd.f32 %v1347_v46, %v6333_v47  ;;  %v1461_v52 = vadd.f32 %v1460_v50, %v6336_v48  ;;  %v1349_v53 = vpop.f32.mrb[7].mxu0  ;;  %v1462_v57 = vpop.f32.mrb[7].mxu1 }
 0x30b   : > { %1534 = vst [vmem:[#allocation3 + $0x48] sm:$0xff] %v1346_v44  ;;  %1536 = vst [vmem:[#allocation3 + $0x58] sm:$0xff] %v1459_v45  ;;  %v1350_v58 = vadd.f32 %v1349_v53, %v6339_v49  ;;  %v1463_v59 = vadd.f32 %v1462_v57, %v6342_v56 }
 0x30c   : > { %1537 = vst [vmem:[#allocation3 + $0x60] sm:$0xff] %v1348_v51  ;;  %1539 = vst [vmem:[#allocation3 + $0x70] sm:$0xff] %v1461_v52 }
 0x30d   : > { %1538 = vst [vmem:[#allocation3 + $0x68] sm:$0xff] %v1350_v58  ;;  %1540 = vst [vmem:[#allocation3 + $0x78] sm:$0xff] %v1463_v59 }
 0x30f   : > { %v1353_v54 = vpop.f32.mrb[8].mxu0  ;;  %v1466_v55 = vpop.f32.mrb[8].mxu1 }
 0x310   : > { %v1354_v37 = vadd.f32 %v1353_v54, %v6333_v47  ;;  %v1467_v60 = vadd.f32 %v1466_v55, %v6336_v48  ;;  %v1355_v61 = vpop.f32.mrb[9].mxu0  ;;  %v1468_v62 = vpop.f32.mrb[9].mxu1 }
 0x311   : > { %v1356_v63 = vadd.f32 %v1355_v61, %v6339_v49  ;;  %v1469_v35 = vadd.f32 %v1468_v62, %v6342_v56  ;;  %v1357_v36 = vpop.f32.mrb[10].mxu0  ;;  %v1470_v38 = vpop.f32.mrb[10].mxu1 }
 0x312   : > { %1541 = vst [vmem:[#allocation3 + $0x80] sm:$0xff] %v1354_v37  ;;  %1543 = vst [vmem:[#allocation3 + $0x90] sm:$0xff] %v1467_v60  ;;  %v1358_v39 = vadd.f32 %v1357_v36, %v6333_v47  ;;  %v1471_v40 = vadd.f32 %v1470_v38, %v6336_v48  ;;  %v1359_v41 = vpop.f32.mrb[11].mxu0  ;;  %v1472_v42 = vpop.f32.mrb[11].mxu1 }
 0x313   : > { %1542 = vst [vmem:[#allocation3 + $0x88] sm:$0xff] %v1356_v63  ;;  %1544 = vst [vmem:[#allocation3 + $0x98] sm:$0xff] %v1469_v35  ;;  %v1360_v43 = vadd.f32 %v1359_v41, %v6339_v49  ;;  %v1473_v44 = vadd.f32 %v1472_v42, %v6342_v56 }
 0x314   : > { %1545 = vst [vmem:[#allocation3 + $0xa0] sm:$0xff] %v1358_v39  ;;  %1547 = vst [vmem:[#allocation3 + $0xb0] sm:$0xff] %v1471_v40 }
 0x315   : > { %1546 = vst [vmem:[#allocation3 + $0xa8] sm:$0xff] %v1360_v43  ;;  %1548 = vst [vmem:[#allocation3 + $0xb8] sm:$0xff] %v1473_v44 }
 0x317   : > { %v1363_v45 = vpop.f32.mrb[12].mxu0  ;;  %v1476_v46 = vpop.f32.mrb[12].mxu1 }
 0x318   : > { %v1364_v50 = vadd.f32 %v1363_v45, %v6333_v47  ;;  %v1477_v51 = vadd.f32 %v1476_v46, %v6336_v48  ;;  %v1365_v52 = vpop.f32.mrb[13].mxu0  ;;  %v1478_v53 = vpop.f32.mrb[13].mxu1 }
 0x319   : > { %v1366_v57 = vadd.f32 %v1365_v52, %v6339_v49  ;;  %v1479_v58 = vadd.f32 %v1478_v53, %v6342_v56  ;;  %v1367_v59 = vpop.f32.mrb[14].mxu0  ;;  %v1480_v54 = vpop.f32.mrb[14].mxu1 }
 0x31a   : > { %1549 = vst [vmem:[#allocation3 + $0xc0] sm:$0xff] %v1364_v50  ;;  %1551 = vst [vmem:[#allocation3 + $0xd0] sm:$0xff] %v1477_v51  ;;  %v1368_v55 = vadd.f32 %v1367_v59, %v6333_v47  ;;  %v1481_v37 = vadd.f32 %v1480_v54, %v6336_v48  ;;  %v1369_v60 = vpop.f32.mrb[15].mxu0  ;;  %v1482_v61 = vpop.f32.mrb[15].mxu1 }
 0x31b   : > { %1550 = vst [vmem:[#allocation3 + $0xc8] sm:$0xff] %v1366_v57  ;;  %1552 = vst [vmem:[#allocation3 + $0xd8] sm:$0xff] %v1479_v58  ;;  %v1370_v62 = vadd.f32 %v1369_v60, %v6339_v49  ;;  %v1483_v63 = vadd.f32 %v1482_v61, %v6342_v56 }
 0x31c   : > { %1553 = vst [vmem:[#allocation3 + $0xe0] sm:$0xff] %v1368_v55  ;;  %1555 = vst [vmem:[#allocation3 + $0xf0] sm:$0xff] %v1481_v37 }
 0x31d   : > { %1554 = vst [vmem:[#allocation3 + $0xe8] sm:$0xff] %v1370_v62  ;;  %1556 = vst [vmem:[#allocation3 + $0xf8] sm:$0xff] %v1483_v63 }
 0x31f   : > { %v1373_v35 = vpop.f32.mrb[16].mxu0  ;;  %v1486_v36 = vpop.f32.mrb[16].mxu1 }
 0x320   : > { %v1374_v38 = vadd.f32 %v1373_v35, %v6333_v47  ;;  %v1487_v39 = vadd.f32 %v1486_v36, %v6336_v48  ;;  %v1375_v40 = vpop.f32.mrb[17].mxu0  ;;  %v1488_v41 = vpop.f32.mrb[17].mxu1 }
 0x321   : > { %v1376_v42 = vadd.f32 %v1375_v40, %v6339_v49  ;;  %v1489_v43 = vadd.f32 %v1488_v41, %v6342_v56  ;;  %v1377_v44 = vpop.f32.mrb[18].mxu0  ;;  %v1490_v45 = vpop.f32.mrb[18].mxu1 }
 0x322   : > { %1557 = vst [vmem:[#allocation3 + $0x100] sm:$0xff] %v1374_v38  ;;  %1559 = vst [vmem:[#allocation3 + $0x110] sm:$0xff] %v1487_v39  ;;  %v1378_v46 = vadd.f32 %v1377_v44, %v6333_v47  ;;  %v1491_v50 = vadd.f32 %v1490_v45, %v6336_v48  ;;  %v1379_v51 = vpop.f32.mrb[19].mxu0  ;;  %v1492_v52 = vpop.f32.mrb[19].mxu1 }
 0x323   : > { %1558 = vst [vmem:[#allocation3 + $0x108] sm:$0xff] %v1376_v42  ;;  %1560 = vst [vmem:[#allocation3 + $0x118] sm:$0xff] %v1489_v43  ;;  %v1380_v53 = vadd.f32 %v1379_v51, %v6339_v49  ;;  %v1493_v57 = vadd.f32 %v1492_v52, %v6342_v56 }
 0x324   : > { %1561 = vst [vmem:[#allocation3 + $0x120] sm:$0xff] %v1378_v46  ;;  %1563 = vst [vmem:[#allocation3 + $0x130] sm:$0xff] %v1491_v50 }
 0x325   : > { %1562 = vst [vmem:[#allocation3 + $0x128] sm:$0xff] %v1380_v53  ;;  %1564 = vst [vmem:[#allocation3 + $0x138] sm:$0xff] %v1493_v57 }
 0x327   : > { %v1383_v58 = vpop.f32.mrb[20].mxu0  ;;  %v1496_v59 = vpop.f32.mrb[20].mxu1 }
 0x328   : > { %v1384_v54 = vadd.f32 %v1383_v58, %v6333_v47  ;;  %v1497_v55 = vadd.f32 %v1496_v59, %v6336_v48  ;;  %v1385_v37 = vpop.f32.mrb[21].mxu0  ;;  %v1498_v60 = vpop.f32.mrb[21].mxu1 }
 0x329   : > { %v1386_v61 = vadd.f32 %v1385_v37, %v6339_v49  ;;  %v1499_v62 = vadd.f32 %v1498_v60, %v6342_v56  ;;  %v1387_v63 = vpop.f32.mrb[22].mxu0  ;;  %v1500_v35 = vpop.f32.mrb[22].mxu1 }
 0x32a   : > { %1565 = vst [vmem:[#allocation3 + $0x140] sm:$0xff] %v1384_v54  ;;  %1567 = vst [vmem:[#allocation3 + $0x150] sm:$0xff] %v1497_v55  ;;  %v1388_v36 = vadd.f32 %v1387_v63, %v6333_v47  ;;  %v1501_v38 = vadd.f32 %v1500_v35, %v6336_v48  ;;  %v1389_v39 = vpop.f32.mrb[23].mxu0  ;;  %v1502_v40 = vpop.f32.mrb[23].mxu1 }
 0x32b   : > { %1566 = vst [vmem:[#allocation3 + $0x148] sm:$0xff] %v1386_v61  ;;  %1568 = vst [vmem:[#allocation3 + $0x158] sm:$0xff] %v1499_v62  ;;  %v1390_v41 = vadd.f32 %v1389_v39, %v6339_v49  ;;  %v1503_v42 = vadd.f32 %v1502_v40, %v6342_v56 }
 0x32c   : > { %1569 = vst [vmem:[#allocation3 + $0x160] sm:$0xff] %v1388_v36  ;;  %1571 = vst [vmem:[#allocation3 + $0x170] sm:$0xff] %v1501_v38 }
 0x32d   : > { %1570 = vst [vmem:[#allocation3 + $0x168] sm:$0xff] %v1390_v41  ;;  %1572 = vst [vmem:[#allocation3 + $0x178] sm:$0xff] %v1503_v42 }
 0x32f   : > { %v1393_v43 = vpop.f32.mrb[24].mxu0  ;;  %v1506_v44 = vpop.f32.mrb[24].mxu1 }
 0x330   : > { %v1394_v45 = vadd.f32 %v1393_v43, %v6333_v47  ;;  %v1507_v46 = vadd.f32 %v1506_v44, %v6336_v48  ;;  %v1395_v50 = vpop.f32.mrb[25].mxu0  ;;  %v1508_v51 = vpop.f32.mrb[25].mxu1 }
 0x331   : > { %v1396_v52 = vadd.f32 %v1395_v50, %v6339_v49  ;;  %v1509_v53 = vadd.f32 %v1508_v51, %v6342_v56  ;;  %v1397_v57 = vpop.f32.mrb[26].mxu0  ;;  %v1510_v58 = vpop.f32.mrb[26].mxu1 }
 0x332   : > { %1573 = vst [vmem:[#allocation3 + $0x180] sm:$0xff] %v1394_v45  ;;  %1575 = vst [vmem:[#allocation3 + $0x190] sm:$0xff] %v1507_v46  ;;  %v1398_v59 = vadd.f32 %v1397_v57, %v6333_v47  ;;  %v1511_v54 = vadd.f32 %v1510_v58, %v6336_v48  ;;  %v1399_v55 = vpop.f32.mrb[27].mxu0  ;;  %v1512_v37 = vpop.f32.mrb[27].mxu1 }
 0x333   : > { %1574 = vst [vmem:[#allocation3 + $0x188] sm:$0xff] %v1396_v52  ;;  %1576 = vst [vmem:[#allocation3 + $0x198] sm:$0xff] %v1509_v53  ;;  %v1400_v60 = vadd.f32 %v1399_v55, %v6339_v49  ;;  %v1513_v61 = vadd.f32 %v1512_v37, %v6342_v56 }
 0x334   : > { %1577 = vst [vmem:[#allocation3 + $0x1a0] sm:$0xff] %v1398_v59  ;;  %1579 = vst [vmem:[#allocation3 + $0x1b0] sm:$0xff] %v1511_v54 }
 0x335   : > { %1578 = vst [vmem:[#allocation3 + $0x1a8] sm:$0xff] %v1400_v60  ;;  %1580 = vst [vmem:[#allocation3 + $0x1b8] sm:$0xff] %v1513_v61 }
 0x337   : > { %v1403_v62 = vpop.f32.mrb[28].mxu0  ;;  %v1516_v63 = vpop.f32.mrb[28].mxu1 }
 0x338   : > { %v1404_v35 = vadd.f32 %v1403_v62, %v6333_v47  ;;  %v1517_v36 = vadd.f32 %v1516_v63, %v6336_v48  ;;  %v1405_v38 = vpop.f32.mrb[29].mxu0  ;;  %v1518_v39 = vpop.f32.mrb[29].mxu1 }
 0x339   : > { %v1406_v40 = vadd.f32 %v1405_v38, %v6339_v49  ;;  %v1519_v41 = vadd.f32 %v1518_v39, %v6342_v56  ;;  %v1407_v42 = vpop.f32.mrb[30].mxu0  ;;  %v1520_v43 = vpop.f32.mrb[30].mxu1 }
 0x33a   : > { %1581 = vst [vmem:[#allocation3 + $0x1c0] sm:$0xff] %v1404_v35  ;;  %1583 = vst [vmem:[#allocation3 + $0x1d0] sm:$0xff] %v1517_v36  ;;  %v1408_v44 = vadd.f32 %v1407_v42, %v6333_v47  ;;  %v1521_v45 = vadd.f32 %v1520_v43, %v6336_v48  ;;  %v1409_v46 = vpop.f32.mrb[31].mxu0  ;;  %v1522_v50 = vpop.f32.mrb[31].mxu1 }
 0x33b   : > { %1582 = vst [vmem:[#allocation3 + $0x1c8] sm:$0xff] %v1406_v40  ;;  %1584 = vst [vmem:[#allocation3 + $0x1d8] sm:$0xff] %v1519_v41  ;;  %v1410_v51 = vadd.f32 %v1409_v46, %v6339_v49  ;;  %v1523_v52 = vadd.f32 %v1522_v50, %v6342_v56 }
 0x33c   : > { %1585 = vst [vmem:[#allocation3 + $0x1e0] sm:$0xff] %v1408_v44  ;;  %1587 = vst [vmem:[#allocation3 + $0x1f0] sm:$0xff] %v1521_v45 }
 0x33d   : > { %1586 = vst [vmem:[#allocation3 + $0x1e8] sm:$0xff] %v1410_v51  ;;  %1588 = vst [vmem:[#allocation3 + $0x1f8] sm:$0xff] %v1523_v52 }
 0x33e PF: > { %v6410_v53 = vcombine.high %v6080_v3, %v6086_v5  ;;  %v6414_v47 = vcombine.low %v6080_v3, %v6086_v5  ;;  %v6418_v48 = vcombine.high %v6092_v7, %v6098_v9  ;;  %1790 = vmatprep.mubr.bf16.mxu0 %v5681_v0  ;;  %v6423_v49 = vcombine.high %v6083_v4, %v6089_v6  ;;  %v1594_v59 = vld [vmem:[#allocation3 + $0x28] sm:$0xff]  ;;  %v1592_v39 = vld [vmem:[#allocation3 + $0x18] sm:$0xff]  ;;  %v1591_v44 = vld [vmem:[#allocation3 + $0x10] sm:$0xff] }
 0x33f   : > { %1833 = vmatprep.mubr.bf16.mxu1 %v5681_v0  ;;  %v6429_v56 = vcombine.low %v6083_v4, %v6089_v6  ;;  %v6433_v3 = vcombine.high %v6095_v8, %v6101_v10  ;;  %v6438_v5 = vcombine.low %v6092_v7, %v6098_v9  ;;  %v6444_v57 = vcombine.high %v6104_v11, %v6110_v13  ;;  %v1596_v43 = vld [vmem:[#allocation3 + $0x38] sm:$0xff]  ;;  %v1595_v46 = vld [vmem:[#allocation3 + $0x30] sm:$0xff] }
 0x340   : > { %1758 = vmatprep.subr.bf16.mxu0 %v6410_v53  ;;  %1801 = vmatprep.subr.bf16.mxu1 %v6423_v49  ;;  %v6449_v4 = vcombine.low %v6095_v8, %v6101_v10  ;;  %v6454_v6 = vcombine.high %v6107_v12, %v6113_v14  ;;  %v6459_v7 = vcombine.low %v6104_v11, %v6110_v13 }
 0x341   : > { %1759 = vmatpush1.bf16.msra.mxu0 %v6414_v47  ;;  %1802 = vmatpush1.bf16.msra.mxu1 %v6429_v56  ;;  %v6464_v9 = vcombine.high %v6116_v15, %v6122_v17  ;;  %v6469_v8 = vcombine.low %v6107_v12, %v6113_v14  ;;  %v6474_v10 = vcombine.high %v6119_v16, %v6125_v18 }
 0x342   : > { %1760 = vmatprep.subr.bf16.mxu0 %v6418_v48  ;;  %1803 = vmatprep.subr.bf16.mxu1 %v6433_v3  ;;  %v6479_v11 = vcombine.low %v6116_v15, %v6122_v17  ;;  %v6484_v13 = vcombine.high %v6128_v19, %v6134_v21  ;;  %v6489_v12 = vcombine.low %v6119_v16, %v6125_v18 }
 0x343   : > { %v6494_v14 = vcombine.high %v6131_v20, %v6137_v22  ;;  %v6499_v15 = vcombine.low %v6128_v19, %v6134_v21  ;;  %v6504_v17 = vcombine.high %v6140_v23, %v6146_v25  ;;  %v6509_v16 = vcombine.low %v6131_v20, %v6137_v22 }
 0x344   : > { %v6514_v18 = vcombine.high %v6143_v24, %v6149_v26  ;;  %v6519_v19 = vcombine.low %v6140_v23, %v6146_v25  ;;  %v6524_v21 = vcombine.high %v6152_v27, %v6158_v29  ;;  %v6529_v20 = vcombine.low %v6143_v24, %v6149_v26 }
 0x345   : > { %1761 = vmatpush1.bf16.msra.mxu0 %v6438_v5  ;;  %1804 = vmatpush1.bf16.msra.mxu1 %v6449_v4  ;;  %v6534_v22 = vcombine.high %v6155_v28, %v6161_v30  ;;  %v6539_v23 = vcombine.low %v6152_v27, %v6158_v29  ;;  %v6544_v25 = vcombine.high %v6164_v31, %v6170_v33  ;;  %v1597_v29 = vld [vmem:[#allocation4] sm:$0xff] }
 0x346   : > { %1762 = vmatprep.subr.bf16.mxu0 %v6444_v57  ;;  %1805 = vmatprep.subr.bf16.mxu1 %v6454_v6  ;;  %v6549_v24 = vcombine.low %v6155_v28, %v6161_v30  ;;  %v6554_v26 = vcombine.high %v6167_v32, %v6173_v34  ;;  %v6559_v27 = vcombine.low %v6164_v31, %v6170_v33  ;;  %v1589_v30 = vld [vmem:[#allocation3] sm:$0xff]  ;;  %v1590_v31 = vld [vmem:[#allocation3 + $0x8] sm:$0xff] }
 0x347   : > { %v6565_v28 = vcombine.low %v6167_v32, %v6173_v34  ;;  %v1593_v33 = vld [vmem:[#allocation3 + $0x20] sm:$0xff] }
 0x349   : > { %1763 = vmatpush1.bf16.msra.mxu0 %v6459_v7  ;;  %1806 = vmatpush1.bf16.msra.mxu1 %v6469_v8 }
 0x34a   : > { %1764 = vmatprep.subr.bf16.mxu0 %v6464_v9  ;;  %1807 = vmatprep.subr.bf16.mxu1 %v6474_v10 }
 0x34d   : > { %1765 = vmatpush1.bf16.msra.mxu0 %v6479_v11  ;;  %1808 = vmatpush1.bf16.msra.mxu1 %v6489_v12 }
 0x34e   : > { %1766 = vmatprep.subr.bf16.mxu0 %v6484_v13  ;;  %1809 = vmatprep.subr.bf16.mxu1 %v6494_v14 }
 0x351   : > { %1767 = vmatpush1.bf16.msra.mxu0 %v6499_v15  ;;  %1810 = vmatpush1.bf16.msra.mxu1 %v6509_v16 }
 0x352   : > { %1768 = vmatprep.subr.bf16.mxu0 %v6504_v17  ;;  %1811 = vmatprep.subr.bf16.mxu1 %v6514_v18 }
 0x355   : > { %1769 = vmatpush1.bf16.msra.mxu0 %v6519_v19  ;;  %1812 = vmatpush1.bf16.msra.mxu1 %v6529_v20 }
 0x356   : > { %1770 = vmatprep.subr.bf16.mxu0 %v6524_v21  ;;  %1813 = vmatprep.subr.bf16.mxu1 %v6534_v22 }
 0x359   : > { %1771 = vmatpush1.bf16.msra.mxu0 %v6539_v23  ;;  %1814 = vmatpush1.bf16.msra.mxu1 %v6549_v24 }
 0x35a   : > { %1772 = vmatprep.subr.bf16.mxu0 %v6544_v25  ;;  %1815 = vmatprep.subr.bf16.mxu1 %v6554_v26 }
 0x35d   : > { %1773 = vmatpush1.bf16.msra.mxu0 %v6559_v27  ;;  %1816 = vmatpush1.bf16.msra.mxu1 %v6565_v28 }
 0x35e   : > { %1921 = vmatprep.subr.bf16.mxu0 %v6410_v53  ;;  %1964 = vmatprep.subr.bf16.mxu1 %v6423_v49 }
 0x360   : > { %1791 = vmatmul.mubr.bf16.vlgmr.msra.gmra.mrb[0].mxu0 %v1597_v29  ;;  %1834 = vmatmul.mubr.bf16.vlgmr.msra.gmra.mrb[0].mxu1 %v1597_v29 }
 0x361   : > { %1922 = vmatpush1.bf16.msra.mxu0 %v6414_v47  ;;  %1965 = vmatpush1.bf16.msra.mxu1 %v6429_v56 }
 0x362   : > { %1923 = vmatprep.subr.bf16.mxu0 %v6418_v48  ;;  %1966 = vmatprep.subr.bf16.mxu1 %v6433_v3 }
 0x363   : > { %1953 = vmatprep.mubr.bf16.mxu0 %v5681_v0  ;;  %1996 = vmatprep.mubr.bf16.mxu1 %v5681_v0 }
 0x365   : > { %1924 = vmatpush1.bf16.msra.mxu0 %v6438_v5  ;;  %1967 = vmatpush1.bf16.msra.mxu1 %v6449_v4 }
 0x366   : > { %1925 = vmatprep.subr.bf16.mxu0 %v6444_v57  ;;  %1968 = vmatprep.subr.bf16.mxu1 %v6454_v6 }
 0x369   : > { %1926 = vmatpush1.bf16.msra.mxu0 %v6459_v7  ;;  %1969 = vmatpush1.bf16.msra.mxu1 %v6469_v8 }
 0x36a   : > { %1927 = vmatprep.subr.bf16.mxu0 %v6464_v9  ;;  %1970 = vmatprep.subr.bf16.mxu1 %v6474_v10 }
 0x36d   : > { %1928 = vmatpush1.bf16.msra.mxu0 %v6479_v11  ;;  %1971 = vmatpush1.bf16.msra.mxu1 %v6489_v12 }
 0x36e   : > { %1929 = vmatprep.subr.bf16.mxu0 %v6484_v13  ;;  %1972 = vmatprep.subr.bf16.mxu1 %v6494_v14 }
 0x371   : > { %1930 = vmatpush1.bf16.msra.mxu0 %v6499_v15  ;;  %1973 = vmatpush1.bf16.msra.mxu1 %v6509_v16 }
 0x372   : > { %1931 = vmatprep.subr.bf16.mxu0 %v6504_v17  ;;  %1974 = vmatprep.subr.bf16.mxu1 %v6514_v18 }
 0x375   : > { %1932 = vmatpush1.bf16.msra.mxu0 %v6519_v19  ;;  %1975 = vmatpush1.bf16.msra.mxu1 %v6529_v20 }
 0x376   : > { %1933 = vmatprep.subr.bf16.mxu0 %v6524_v21  ;;  %1976 = vmatprep.subr.bf16.mxu1 %v6534_v22 }
 0x379   : > { %1934 = vmatpush1.bf16.msra.mxu0 %v6539_v23  ;;  %1977 = vmatpush1.bf16.msra.mxu1 %v6549_v24 }
 0x37a   : > { %1935 = vmatprep.subr.bf16.mxu0 %v6544_v25  ;;  %1978 = vmatprep.subr.bf16.mxu1 %v6554_v26 }
 0x37d   : > { %1936 = vmatpush1.bf16.msra.mxu0 %v6559_v27  ;;  %1979 = vmatpush1.bf16.msra.mxu1 %v6565_v28 }
 0x37e   : > { %2085 = vmatprep.subr.bf16.mxu0 %v6410_v53  ;;  %2128 = vmatprep.subr.bf16.mxu1 %v6423_v49 }
 0x433   : > { %v1792_v32 = vpop.f32.mrb[0].mxu0  ;;  %v1835_v54 = vpop.f32.mrb[0].mxu1 }
 0x434   : > { %v1844_v34 = vadd.f32 %v1792_v32, %v1589_v30  ;;  %v1794_v58 = vpop.f32.mrb[1].mxu0  ;;  %v1837_v60 = vpop.f32.mrb[1].mxu1  ;;  %v1846_v51 = vadd.f32 %v1835_v54, %v1591_v44 }
 0x435   : > { %v1845_v55 = vadd.f32 %v1794_v58, %v1590_v31  ;;  %v1796_v37 = vpop.f32.mrb[2].mxu0  ;;  %v1839_v35 = vpop.f32.mrb[2].mxu1  ;;  %v1847_v45 = vadd.f32 %v1837_v60, %v1592_v39 }
 0x436   : > { %v4508_v61 = vmul.f32 -1.442695, %v1844_v34  ;;  %v1848_v62 = vadd.f32 %v1796_v37, %v1593_v33  ;;  %v1798_v63 = vpop.f32.mrb[3].mxu0  ;;  %v1841_v40 = vpop.f32.mrb[3].mxu1  ;;  %v1850_v29 = vadd.f32 %v1839_v35, %v1595_v46 }
 0x437   : > { %v4510_v36 = vmul.f32 -1.442695, %v1845_v55  ;;  %v1849_v38 = vadd.f32 %v1798_v63, %v1594_v59  ;;  %v1851_v50 = vadd.f32 %v1841_v40, %v1596_v43  ;;  %v4512_v52 = vmul.f32 -1.442695, %v1847_v45  ;;  %v1890_v63 = vld [vmem:[#allocation5] sm:$0xff] }
 0x438   : > { %4967 = vpow2.f32 %v4508_v61  ;;  %v4509_v41 = vmul.f32 -1.442695, %v1848_v62 }
 0x439   : > { %4969 = vpow2.f32 %v4510_v36  ;;  %v4511_v42 = vmul.f32 -1.442695, %v1849_v38  ;;  %v4513_v30 = vmul.f32 -1.442695, %v1851_v50  ;;  %v1891_v38 = vld [vmem:[#allocation5 + $0x8] sm:$0xff] }
 0x43a   : > { %4971 = vpow2.f32 %v4509_v41 }
 0x43b   : > { %4973 = vpow2.f32 %v4511_v42 }
 0x43c   : > { %4975 = vtanh.f32 %v1846_v51 }
 0x43d   : > { %4977 = vpow2.f32 %v4512_v52 }
 0x43e   : > { %4979 = vtanh.f32 %v1850_v29 }
 0x43f   : > { %4981 = vpow2.f32 %v4513_v30 }
 0x442   : > { %v4968_v31 = vpop.eup %4967 }
 0x443   : > { %v4970_v32 = vpop.eup %4969  ;;  %v1858_v33 = vadd.f32 1.0, %v4968_v31 }
 0x444   : > { %v4972_v34 = vpop.eup %4971  ;;  %v1870_v58 = vadd.f32 1.0, %v4970_v32 }
 0x445   : > { %v4974_v59 = vpop.eup %4973  ;;  %4983 = vrcp.f32 %v1858_v33  ;;  %v1859_v55 = vadd.f32 1.0, %v4972_v34 }
 0x446   : > { %4985 = vrcp.f32 %v1870_v58  ;;  %v1871_v37 = vadd.f32 1.0, %v4974_v59  ;;  %v4976_v54 = vpop.eup %4975  ;;  %v1912_v58 = vld [vmem:[#allocation3 + $0x40] sm:$0xff]  ;;  %v1913_v59 = vld [vmem:[#allocation3 + $0x48] sm:$0xff] }
 0x447   : > { %4987 = vrcp.f32 %v1859_v55  ;;  %v4978_v60 = vpop.eup %4977 }
 0x448   : > { %4989 = vrcp.f32 %v1871_v37  ;;  %v4980_v61 = vpop.eup %4979  ;;  %v1884_v40 = vadd.f32 1.0, %v4978_v60 }
 0x449   : > { %v4982_v62 = vpop.eup %4981 }
 0x44a   : > { %v1885_v45 = vadd.f32 1.0, %v4982_v62  ;;  %4991 = vrcp.f32 %v1884_v40 }
 0x44f   : > { %v4984_v35 = vpop.eup %4983 }
 0x450   : > { %v4986_v36 = vpop.eup %4985  ;;  %v1894_v39 = vmul.f32 %v4984_v35, %v4976_v54  ;;  %v1916_v54 = vld [vmem:[#allocation3 + $0x60] sm:$0xff] }
 0x451   : > { %v4988_v41 = vpop.eup %4987  ;;  %v1892_v42 = vmul.f32 %v4986_v36, %v1890_v63  ;;  %v1917_v63 = vld [vmem:[#allocation3 + $0x68] sm:$0xff] }
 0x452   : > { %v4990_v43 = vpop.eup %4989  ;;  %v1895_v44 = vmul.f32 %v4988_v41, %v4980_v61 }
 0x453   : > { %v1893_v46 = vmul.f32 %v4990_v43, %v1891_v38  ;;  %v6606_v50 = vadd.f32 %v1894_v39, %v1892_v42 }
 0x454   : > { %v4992_v52 = vpop.eup %4991 }
 0x455   : > { %4993 = vtanh.f32 %v6606_v50  ;;  %v6609_v51 = vadd.f32 %v1895_v44, %v1893_v46 }
 0x456   : > { %4995 = vrcp.f32 %v1885_v45  ;;  %v1915_v45 = vld [vmem:[#allocation3 + $0x58] sm:$0xff] }
 0x457   : > { %4997 = vtanh.f32 %v6609_v51 }
 0x45f   : > { %v4994_v29 = vpop.eup %4993 }
 0x460   : > { %v4996_v30 = vpop.eup %4995  ;;  %v1900_v32 = vmul.f32 %v4994_v29, %v4992_v52  ;;  %v1914_v29 = vld [vmem:[#allocation3 + $0x50] sm:$0xff] }
 0x461   : > { %v4998_v31 = vpop.eup %4997 }
 0x462   : > { %v1901_v33 = vmul.f32 %v4998_v31, %v4996_v30  ;;  %v1919_v31 = vld [vmem:[#allocation3 + $0x78] sm:$0xff] }
 0x464   : > { %v1902_v34 = vpack.c.bf16 %v1901_v33, %v1900_v32  ;;  %v1918_v32 = vld [vmem:[#allocation3 + $0x70] sm:$0xff] }
 0x466   : > { %1911 = vst [vmem:[#allocation2] sm:$0xff] %v1902_v34  ;;  %1954 = vmatmul.mubr.bf16.vlgmr.msra.gmra.mrb[4].mxu0 %v1902_v34  ;;  %1997 = vmatmul.mubr.bf16.vlgmr.msra.gmra.mrb[4].mxu1 %v1902_v34 }
 0x467   : > { %2086 = vmatpush1.bf16.msra.mxu0 %v6414_v47  ;;  %2129 = vmatpush1.bf16.msra.mxu1 %v6429_v56 }
 0x468   : > { %2087 = vmatprep.subr.bf16.mxu0 %v6418_v48  ;;  %2130 = vmatprep.subr.bf16.mxu1 %v6433_v3 }
 0x469   : > { %2117 = vmatprep.mubr.bf16.mxu0 %v5681_v0  ;;  %2160 = vmatprep.mubr.bf16.mxu1 %v5681_v0 }
 0x46b   : > { %2088 = vmatpush1.bf16.msra.mxu0 %v6438_v5  ;;  %2131 = vmatpush1.bf16.msra.mxu1 %v6449_v4 }
 0x46c   : > { %2089 = vmatprep.subr.bf16.mxu0 %v6444_v57  ;;  %2132 = vmatprep.subr.bf16.mxu1 %v6454_v6 }
 0x46f   : > { %2090 = vmatpush1.bf16.msra.mxu0 %v6459_v7  ;;  %2133 = vmatpush1.bf16.msra.mxu1 %v6469_v8 }
 0x470   : > { %2091 = vmatprep.subr.bf16.mxu0 %v6464_v9  ;;  %2134 = vmatprep.subr.bf16.mxu1 %v6474_v10 }
 0x473   : > { %2092 = vmatpush1.bf16.msra.mxu0 %v6479_v11  ;;  %2135 = vmatpush1.bf16.msra.mxu1 %v6489_v12 }
 0x474   : > { %2093 = vmatprep.subr.bf16.mxu0 %v6484_v13  ;;  %2136 = vmatprep.subr.bf16.mxu1 %v6494_v14 }
 0x477   : > { %2094 = vmatpush1.bf16.msra.mxu0 %v6499_v15  ;;  %2137 = vmatpush1.bf16.msra.mxu1 %v6509_v16 }
 0x478   : > { %2095 = vmatprep.subr.bf16.mxu0 %v6504_v17  ;;  %2138 = vmatprep.subr.bf16.mxu1 %v6514_v18 }
 0x47b   : > { %2096 = vmatpush1.bf16.msra.mxu0 %v6519_v19  ;;  %2139 = vmatpush1.bf16.msra.mxu1 %v6529_v20 }
 0x47c   : > { %2097 = vmatprep.subr.bf16.mxu0 %v6524_v21  ;;  %2140 = vmatprep.subr.bf16.mxu1 %v6534_v22 }
 0x47f   : > { %2098 = vmatpush1.bf16.msra.mxu0 %v6539_v23  ;;  %2141 = vmatpush1.bf16.msra.mxu1 %v6549_v24 }
 0x480   : > { %2099 = vmatprep.subr.bf16.mxu0 %v6544_v25  ;;  %2142 = vmatprep.subr.bf16.mxu1 %v6554_v26 }
 0x483   : > { %2100 = vmatpush1.bf16.msra.mxu0 %v6559_v27  ;;  %2143 = vmatpush1.bf16.msra.mxu1 %v6565_v28 }
 0x484   : > { %2249 = vmatprep.subr.bf16.mxu0 %v6410_v53  ;;  %2292 = vmatprep.subr.bf16.mxu1 %v6423_v49 }
 0x539   : > { %v1955_v55 = vpop.f32.mrb[4].mxu0  ;;  %v1998_v37 = vpop.f32.mrb[4].mxu1 }
 0x53a   : > { %v2007_v60 = vadd.f32 %v1955_v55, %v1912_v58  ;;  %v1957_v61 = vpop.f32.mrb[5].mxu0  ;;  %v2000_v62 = vpop.f32.mrb[5].mxu1  ;;  %v2009_v33 = vadd.f32 %v1998_v37, %v1914_v29 }
 0x53b   : > { %v2008_v35 = vadd.f32 %v1957_v61, %v1913_v59  ;;  %v1959_v36 = vpop.f32.mrb[6].mxu0  ;;  %v2002_v38 = vpop.f32.mrb[6].mxu1  ;;  %v2010_v30 = vadd.f32 %v2000_v62, %v1915_v45 }
 0x53c   : > { %v4514_v39 = vmul.f32 -1.442695, %v2007_v60  ;;  %v2011_v40 = vadd.f32 %v1959_v36, %v1916_v54  ;;  %v1961_v41 = vpop.f32.mrb[7].mxu0  ;;  %v2004_v42 = vpop.f32.mrb[7].mxu1  ;;  %v2013_v59 = vadd.f32 %v2002_v38, %v1918_v32 }
 0x53d   : > { %v4516_v43 = vmul.f32 -1.442695, %v2008_v35  ;;  %v2012_v44 = vadd.f32 %v1961_v41, %v1917_v63  ;;  %v4518_v34 = vmul.f32 -1.442695, %v2010_v30  ;;  %v2014_v58 = vadd.f32 %v2004_v42, %v1919_v31 }
 0x53e   : > { %4999 = vpow2.f32 %v4514_v39  ;;  %v4515_v46 = vmul.f32 -1.442695, %v2011_v40 }
 0x53f   : > { %5001 = vpow2.f32 %v4516_v43  ;;  %v4517_v52 = vmul.f32 -1.442695, %v2012_v44  ;;  %v4519_v61 = vmul.f32 -1.442695, %v2014_v58 }
 0x540   : > { %5003 = vpow2.f32 %v4515_v46 }
 0x541   : > { %5005 = vpow2.f32 %v4517_v52 }
 0x542   : > { %5007 = vtanh.f32 %v2009_v33 }
 0x543   : > { %5009 = vpow2.f32 %v4518_v34 }
 0x544   : > { %5011 = vtanh.f32 %v2013_v59 }
 0x548   : > { %v5000_v55 = vpop.eup %4999 }
 0x549   : > { %v5002_v54 = vpop.eup %5001  ;;  %v2021_v60 = vadd.f32 1.0, %v5000_v55 }
 0x54a   : > { %v2033_v63 = vadd.f32 1.0, %v5002_v54  ;;  %v5004_v35 = vpop.eup %5003 }
 0x54b   : > { %5013 = vrcp.f32 %v2021_v60  ;;  %v2022_v62 = vadd.f32 1.0, %v5004_v35  ;;  %v5006_v36 = vpop.eup %5005 }
 0x54c   : > { %5015 = vrcp.f32 %v2033_v63  ;;  %v2034_v39 = vadd.f32 1.0, %v5006_v36  ;;  %v5008_v37 = vpop.eup %5007  ;;  %v2077_v63 = vld [vmem:[#allocation3 + $0x88] sm:$0xff]  ;;  %v2080_v36 = vld [vmem:[#allocation3 + $0xa0] sm:$0xff] }
 0x54d   : > { %5017 = vpow2.f32 %v4519_v61  ;;  %v5010_v40 = vpop.eup %5009 }
 0x54e   : > { %5019 = vrcp.f32 %v2022_v62  ;;  %v5012_v38 = vpop.eup %5011  ;;  %v2047_v52 = vadd.f32 1.0, %v5010_v40 }
 0x54f   : > { %5021 = vrcp.f32 %v2034_v39 }
 0x550   : > { %5023 = vrcp.f32 %v2047_v52 }
 0x555   : > { %v5014_v41 = vpop.eup %5013 }
 0x556   : > { %v5016_v42 = vpop.eup %5015  ;;  %v2057_v43 = vmul.f32 %v5014_v41, %v5008_v37 }
 0x557   : > { %v5018_v44 = vpop.eup %5017  ;;  %v2055_v45 = vmul.f32 %v5016_v42, %v6606_v50 }
 0x558   : > { %v5020_v46 = vpop.eup %5019  ;;  %v2048_v32 = vadd.f32 1.0, %v5018_v44 }
 0x559   : > { %v6647_v29 = vadd.f32 %v2057_v43, %v2055_v45  ;;  %v2058_v30 = vmul.f32 %v5020_v46, %v5012_v38  ;;  %v5022_v31 = vpop.eup %5021  ;;  %v2081_v38 = vld [vmem:[#allocation3 + $0xa8] sm:$0xff] }
 0x55a   : > { %v2056_v33 = vmul.f32 %v5022_v31, %v6609_v51  ;;  %v5024_v58 = vpop.eup %5023  ;;  %v2076_v51 = vld [vmem:[#allocation3 + $0x80] sm:$0xff] }
 0x55b   : > { %5025 = vtanh.f32 %v6647_v29 }
 0x55c   : > { %v6651_v34 = vadd.f32 %v2058_v30, %v2056_v33  ;;  %5027 = vrcp.f32 %v2048_v32  ;;  %v2079_v32 = vld [vmem:[#allocation3 + $0x98] sm:$0xff] }
 0x55e   : > { %5029 = vtanh.f32 %v6651_v34 }
 0x565   : > { %v5026_v59 = vpop.eup %5025 }
 0x566   : > { %v5028_v50 = vpop.eup %5027  ;;  %v2063_v54 = vmul.f32 %v5026_v59, %v5024_v58  ;;  %v2078_v59 = vld [vmem:[#allocation3 + $0x90] sm:$0xff] }
 0x568   : > { %v5030_v55 = vpop.eup %5029 }
 0x569   : > { %v2064_v60 = vmul.f32 %v5030_v55, %v5028_v50  ;;  %v2083_v55 = vld [vmem:[#allocation3 + $0xb8] sm:$0xff] }
 0x56b   : > { %v2065_v61 = vpack.c.bf16 %v2064_v60, %v2063_v54  ;;  %v2082_v54 = vld [vmem:[#allocation3 + $0xb0] sm:$0xff] }
 0x56d   : > { %2075 = vst [vmem:[#allocation2 + $0x8] sm:$0xff] %v2065_v61  ;;  %2118 = vmatmul.mubr.bf16.vlgmr.msra.gmra.mrb[8].mxu0 %v2065_v61  ;;  %2161 = vmatmul.mubr.bf16.vlgmr.msra.gmra.mrb[8].mxu1 %v2065_v61 }
 0x56e   : > { %2250 = vmatpush1.bf16.msra.mxu0 %v6414_v47  ;;  %2293 = vmatpush1.bf16.msra.mxu1 %v6429_v56 }
 0x56f   : > { %2251 = vmatprep.subr.bf16.mxu0 %v6418_v48  ;;  %2294 = vmatprep.subr.bf16.mxu1 %v6433_v3 }
 0x570   : > { %2281 = vmatprep.mubr.bf16.mxu0 %v5681_v0  ;;  %2324 = vmatprep.mubr.bf16.mxu1 %v5681_v0 }
 0x572   : > { %2252 = vmatpush1.bf16.msra.mxu0 %v6438_v5  ;;  %2295 = vmatpush1.bf16.msra.mxu1 %v6449_v4 }
 0x573   : > { %2253 = vmatprep.subr.bf16.mxu0 %v6444_v57  ;;  %2296 = vmatprep.subr.bf16.mxu1 %v6454_v6 }
 0x576   : > { %2254 = vmatpush1.bf16.msra.mxu0 %v6459_v7  ;;  %2297 = vmatpush1.bf16.msra.mxu1 %v6469_v8 }
 0x577   : > { %2255 = vmatprep.subr.bf16.mxu0 %v6464_v9  ;;  %2298 = vmatprep.subr.bf16.mxu1 %v6474_v10 }
 0x57a   : > { %2256 = vmatpush1.bf16.msra.mxu0 %v6479_v11  ;;  %2299 = vmatpush1.bf16.msra.mxu1 %v6489_v12 }
 0x57b   : > { %2257 = vmatprep.subr.bf16.mxu0 %v6484_v13  ;;  %2300 = vmatprep.subr.bf16.mxu1 %v6494_v14 }
 0x57e   : > { %2258 = vmatpush1.bf16.msra.mxu0 %v6499_v15  ;;  %2301 = vmatpush1.bf16.msra.mxu1 %v6509_v16 }
 0x57f   : > { %2259 = vmatprep.subr.bf16.mxu0 %v6504_v17  ;;  %2302 = vmatprep.subr.bf16.mxu1 %v6514_v18 }
 0x582   : > { %2260 = vmatpush1.bf16.msra.mxu0 %v6519_v19  ;;  %2303 = vmatpush1.bf16.msra.mxu1 %v6529_v20 }
 0x583   : > { %2261 = vmatprep.subr.bf16.mxu0 %v6524_v21  ;;  %2304 = vmatprep.subr.bf16.mxu1 %v6534_v22 }
 0x586   : > { %2262 = vmatpush1.bf16.msra.mxu0 %v6539_v23  ;;  %2305 = vmatpush1.bf16.msra.mxu1 %v6549_v24 }
 0x587   : > { %2263 = vmatprep.subr.bf16.mxu0 %v6544_v25  ;;  %2306 = vmatprep.subr.bf16.mxu1 %v6554_v26 }
 0x58a   : > { %2264 = vmatpush1.bf16.msra.mxu0 %v6559_v27  ;;  %2307 = vmatpush1.bf16.msra.mxu1 %v6565_v28 }
 0x58b   : > { %2413 = vmatprep.subr.bf16.mxu0 %v6410_v53  ;;  %2456 = vmatprep.subr.bf16.mxu1 %v6423_v49 }
 0x640   : > { %v2119_v35 = vpop.f32.mrb[8].mxu0  ;;  %v2162_v62 = vpop.f32.mrb[8].mxu1 }
 0x641   : > { %v2171_v39 = vadd.f32 %v2119_v35, %v2076_v51  ;;  %v2121_v37 = vpop.f32.mrb[9].mxu0  ;;  %v2164_v40 = vpop.f32.mrb[9].mxu1  ;;  %v2173_v60 = vadd.f32 %v2162_v62, %v2078_v59 }
 0x642   : > { %v2172_v41 = vadd.f32 %v2121_v37, %v2077_v63  ;;  %v2123_v42 = vpop.f32.mrb[10].mxu0  ;;  %v2166_v43 = vpop.f32.mrb[10].mxu1  ;;  %v2174_v50 = vadd.f32 %v2164_v40, %v2079_v32 }
 0x643   : > { %v4520_v44 = vmul.f32 -1.442695, %v2171_v39  ;;  %v2175_v45 = vadd.f32 %v2123_v42, %v2080_v36  ;;  %v2125_v46 = vpop.f32.mrb[11].mxu0  ;;  %v2168_v52 = vpop.f32.mrb[11].mxu1  ;;  %v2177_v63 = vadd.f32 %v2166_v43, %v2082_v54 }
 0x644   : > { %v4522_v30 = vmul.f32 -1.442695, %v2172_v41  ;;  %v2176_v31 = vadd.f32 %v2125_v46, %v2081_v38  ;;  %v4524_v61 = vmul.f32 -1.442695, %v2174_v50  ;;  %v2178_v51 = vadd.f32 %v2168_v52, %v2083_v55 }
 0x645   : > { %5031 = vpow2.f32 %v4520_v44  ;;  %v4521_v33 = vmul.f32 -1.442695, %v2175_v45 }
 0x646   : > { %5033 = vpow2.f32 %v4522_v30  ;;  %v4523_v58 = vmul.f32 -1.442695, %v2176_v31  ;;  %v4525_v37 = vmul.f32 -1.442695, %v2178_v51 }
 0x647   : > { %5035 = vpow2.f32 %v4521_v33 }
 0x648   : > { %5037 = vpow2.f32 %v4523_v58 }
 0x649   : > { %5039 = vtanh.f32 %v2173_v60 }
 0x64a   : > { %5041 = vpow2.f32 %v4524_v61 }
 0x64b   : > { %5043 = vtanh.f32 %v2177_v63 }
 0x64f   : > { %v5032_v35 = vpop.eup %5031 }
 0x650   : > { %v5034_v36 = vpop.eup %5033  ;;  %v2185_v39 = vadd.f32 1.0, %v5032_v35 }
 0x651   : > { %v2197_v38 = vadd.f32 1.0, %v5034_v36  ;;  %v5036_v41 = vpop.eup %5035 }
 0x652   : > { %5045 = vrcp.f32 %v2185_v39  ;;  %v2186_v40 = vadd.f32 1.0, %v5036_v41  ;;  %v5038_v42 = vpop.eup %5037 }
 0x653   : > { %5047 = vrcp.f32 %v2197_v38  ;;  %v2198_v44 = vadd.f32 1.0, %v5038_v42  ;;  %v5040_v62 = vpop.eup %5039  ;;  %v2241_v38 = vld [vmem:[#allocation3 + $0xc8] sm:$0xff]  ;;  %v2244_v42 = vld [vmem:[#allocation3 + $0xe0] sm:$0xff] }
 0x654   : > { %5049 = vpow2.f32 %v4525_v37  ;;  %v5042_v45 = vpop.eup %5041 }
 0x655   : > { %5051 = vrcp.f32 %v2186_v40  ;;  %v5044_v43 = vpop.eup %5043  ;;  %v2211_v58 = vadd.f32 1.0, %v5042_v45 }
 0x656   : > { %5053 = vrcp.f32 %v2198_v44 }
 0x657   : > { %5055 = vrcp.f32 %v2211_v58 }
 0x65c   : > { %v5046_v46 = vpop.eup %5045 }
 0x65d   : > { %v5048_v52 = vpop.eup %5047  ;;  %v2221_v30 = vmul.f32 %v5046_v46, %v5040_v62 }
 0x65e   : > { %v5050_v31 = vpop.eup %5049  ;;  %v2219_v32 = vmul.f32 %v5048_v52, %v6647_v29 }
 0x65f   : > { %v5052_v33 = vpop.eup %5051  ;;  %v2212_v54 = vadd.f32 1.0, %v5050_v31 }
 0x660   : > { %v6689_v59 = vadd.f32 %v2221_v30, %v2219_v32  ;;  %v2222_v50 = vmul.f32 %v5052_v33, %v5044_v43  ;;  %v5054_v55 = vpop.eup %5053  ;;  %v2245_v43 = vld [vmem:[#allocation3 + $0xe8] sm:$0xff] }
 0x661   : > { %v2220_v60 = vmul.f32 %v5054_v55, %v6651_v34  ;;  %v5056_v51 = vpop.eup %5055  ;;  %v2240_v34 = vld [vmem:[#allocation3 + $0xc0] sm:$0xff] }
 0x662   : > { %5057 = vtanh.f32 %v6689_v59 }
 0x663   : > { %v6693_v61 = vadd.f32 %v2222_v50, %v2220_v60  ;;  %5059 = vrcp.f32 %v2212_v54  ;;  %v2243_v54 = vld [vmem:[#allocation3 + $0xd8] sm:$0xff] }
 0x665   : > { %5061 = vtanh.f32 %v6693_v61 }
 0x66c   : > { %v5058_v63 = vpop.eup %5057 }
 0x66d   : > { %v5060_v29 = vpop.eup %5059  ;;  %v2227_v36 = vmul.f32 %v5058_v63, %v5056_v51  ;;  %v2242_v63 = vld [vmem:[#allocation3 + $0xd0] sm:$0xff] }
 0x66f   : > { %v5062_v35 = vpop.eup %5061 }
 0x670   : > { %v2228_v39 = vmul.f32 %v5062_v35, %v5060_v29  ;;  %v2247_v35 = vld [vmem:[#allocation3 + $0xf8] sm:$0xff] }
 0x672   : > { %v2229_v37 = vpack.c.bf16 %v2228_v39, %v2227_v36  ;;  %v2246_v36 = vld [vmem:[#allocation3 + $0xf0] sm:$0xff] }
 0x674   : > { %2239 = vst [vmem:[#allocation2 + $0x10] sm:$0xff] %v2229_v37  ;;  %2282 = vmatmul.mubr.bf16.vlgmr.msra.gmra.mrb[12].mxu0 %v2229_v37  ;;  %2325 = vmatmul.mubr.bf16.vlgmr.msra.gmra.mrb[12].mxu1 %v2229_v37 }
 0x675   : > { %2414 = vmatpush1.bf16.msra.mxu0 %v6414_v47  ;;  %2457 = vmatpush1.bf16.msra.mxu1 %v6429_v56 }
 0x676   : > { %2415 = vmatprep.subr.bf16.mxu0 %v6418_v48  ;;  %2458 = vmatprep.subr.bf16.mxu1 %v6433_v3 }
 0x677   : > { %2445 = vmatprep.mubr.bf16.mxu0 %v5681_v0  ;;  %2488 = vmatprep.mubr.bf16.mxu1 %v5681_v0 }
 0x679   : > { %2416 = vmatpush1.bf16.msra.mxu0 %v6438_v5  ;;  %2459 = vmatpush1.bf16.msra.mxu1 %v6449_v4 }
 0x67a   : > { %2417 = vmatprep.subr.bf16.mxu0 %v6444_v57  ;;  %2460 = vmatprep.subr.bf16.mxu1 %v6454_v6 }
 0x67d   : > { %2418 = vmatpush1.bf16.msra.mxu0 %v6459_v7  ;;  %2461 = vmatpush1.bf16.msra.mxu1 %v6469_v8 }
 0x67e   : > { %2419 = vmatprep.subr.bf16.mxu0 %v6464_v9  ;;  %2462 = vmatprep.subr.bf16.mxu1 %v6474_v10 }
 0x681   : > { %2420 = vmatpush1.bf16.msra.mxu0 %v6479_v11  ;;  %2463 = vmatpush1.bf16.msra.mxu1 %v6489_v12 }
 0x682   : > { %2421 = vmatprep.subr.bf16.mxu0 %v6484_v13  ;;  %2464 = vmatprep.subr.bf16.mxu1 %v6494_v14 }
 0x685   : > { %2422 = vmatpush1.bf16.msra.mxu0 %v6499_v15  ;;  %2465 = vmatpush1.bf16.msra.mxu1 %v6509_v16 }
 0x686   : > { %2423 = vmatprep.subr.bf16.mxu0 %v6504_v17  ;;  %2466 = vmatprep.subr.bf16.mxu1 %v6514_v18 }
 0x689   : > { %2424 = vmatpush1.bf16.msra.mxu0 %v6519_v19  ;;  %2467 = vmatpush1.bf16.msra.mxu1 %v6529_v20 }
 0x68a   : > { %2425 = vmatprep.subr.bf16.mxu0 %v6524_v21  ;;  %2468 = vmatprep.subr.bf16.mxu1 %v6534_v22 }
 0x68d   : > { %2426 = vmatpush1.bf16.msra.mxu0 %v6539_v23  ;;  %2469 = vmatpush1.bf16.msra.mxu1 %v6549_v24 }
 0x68e   : > { %2427 = vmatprep.subr.bf16.mxu0 %v6544_v25  ;;  %2470 = vmatprep.subr.bf16.mxu1 %v6554_v26 }
 0x691   : > { %2428 = vmatpush1.bf16.msra.mxu0 %v6559_v27  ;;  %2471 = vmatpush1.bf16.msra.mxu1 %v6565_v28 }
 0x692   : > { %2577 = vmatprep.subr.bf16.mxu0 %v6410_v53  ;;  %2620 = vmatprep.subr.bf16.mxu1 %v6423_v49 }
 0x747   : > { %v2283_v41 = vpop.f32.mrb[12].mxu0  ;;  %v2326_v40 = vpop.f32.mrb[12].mxu1 }
 0x748   : > { %v2335_v44 = vadd.f32 %v2283_v41, %v2240_v34  ;;  %v2285_v62 = vpop.f32.mrb[13].mxu0  ;;  %v2328_v45 = vpop.f32.mrb[13].mxu1  ;;  %v2337_v39 = vadd.f32 %v2326_v40, %v2242_v63 }
 0x749   : > { %v2336_v46 = vadd.f32 %v2285_v62, %v2241_v38  ;;  %v2287_v52 = vpop.f32.mrb[14].mxu0  ;;  %v2330_v30 = vpop.f32.mrb[14].mxu1  ;;  %v2338_v29 = vadd.f32 %v2328_v45, %v2243_v54 }
 0x74a   : > { %v4526_v31 = vmul.f32 -1.442695, %v2335_v44  ;;  %v2339_v32 = vadd.f32 %v2287_v52, %v2244_v42  ;;  %v2289_v33 = vpop.f32.mrb[15].mxu0  ;;  %v2332_v58 = vpop.f32.mrb[15].mxu1  ;;  %v2341_v38 = vadd.f32 %v2330_v30, %v2246_v36 }
 0x74b   : > { %v4528_v50 = vmul.f32 -1.442695, %v2336_v46  ;;  %v2340_v55 = vadd.f32 %v2289_v33, %v2245_v43  ;;  %v4530_v37 = vmul.f32 -1.442695, %v2338_v29  ;;  %v2342_v34 = vadd.f32 %v2332_v58, %v2247_v35 }
 0x74c   : > { %5063 = vpow2.f32 %v4526_v31  ;;  %v4527_v60 = vmul.f32 -1.442695, %v2339_v32 }
 0x74d   : > { %5065 = vpow2.f32 %v4528_v50  ;;  %v4529_v51 = vmul.f32 -1.442695, %v2340_v55  ;;  %v4531_v62 = vmul.f32 -1.442695, %v2342_v34 }
 0x74e   : > { %5067 = vpow2.f32 %v4527_v60 }
 0x74f   : > { %5069 = vpow2.f32 %v4529_v51 }
 0x750   : > { %5071 = vtanh.f32 %v2337_v39 }
 0x751   : > { %5073 = vpow2.f32 %v4530_v37 }
 0x752   : > { %5075 = vtanh.f32 %v2341_v38 }
 0x756   : > { %v5064_v41 = vpop.eup %5063 }
 0x757   : > { %v5066_v42 = vpop.eup %5065  ;;  %v2349_v44 = vadd.f32 1.0, %v5064_v41 }
 0x758   : > { %v2361_v43 = vadd.f32 1.0, %v5066_v42  ;;  %v5068_v46 = vpop.eup %5067 }
 0x759   : > { %5077 = vrcp.f32 %v2349_v44  ;;  %v2350_v45 = vadd.f32 1.0, %v5068_v46  ;;  %v5070_v52 = vpop.eup %5069 }
 0x75a   : > { %5079 = vrcp.f32 %v2361_v43  ;;  %v2362_v31 = vadd.f32 1.0, %v5070_v52  ;;  %v5072_v40 = vpop.eup %5071  ;;  %v2405_v43 = vld [vmem:[#allocation3 + $0x108] sm:$0xff]  ;;  %v2408_v52 = vld [vmem:[#allocation3 + $0x120] sm:$0xff] }
 0x75b   : > { %5081 = vpow2.f32 %v4531_v62  ;;  %v5074_v32 = vpop.eup %5073 }
 0x75c   : > { %5083 = vrcp.f32 %v2350_v45  ;;  %v5076_v30 = vpop.eup %5075  ;;  %v2375_v51 = vadd.f32 1.0, %v5074_v32 }
 0x75d   : > { %5085 = vrcp.f32 %v2362_v31 }
 0x75e   : > { %5087 = vrcp.f32 %v2375_v51 }
 0x763   : > { %v5078_v33 = vpop.eup %5077 }
 0x764   : > { %v5080_v58 = vpop.eup %5079  ;;  %v2385_v50 = vmul.f32 %v5078_v33, %v5072_v40 }
 0x765   : > { %v5082_v55 = vpop.eup %5081  ;;  %v2383_v54 = vmul.f32 %v5080_v58, %v6689_v59 }
 0x766   : > { %v5084_v60 = vpop.eup %5083  ;;  %v2376_v36 = vadd.f32 1.0, %v5082_v55 }
 0x767   : > { %v6731_v63 = vadd.f32 %v2385_v50, %v2383_v54  ;;  %v2386_v29 = vmul.f32 %v5084_v60, %v5076_v30  ;;  %v5086_v35 = vpop.eup %5085  ;;  %v2409_v30 = vld [vmem:[#allocation3 + $0x128] sm:$0xff] }
 0x768   : > { %v2384_v39 = vmul.f32 %v5086_v35, %v6693_v61  ;;  %v5088_v34 = vpop.eup %5087  ;;  %v2404_v61 = vld [vmem:[#allocation3 + $0x100] sm:$0xff] }
 0x769   : > { %5089 = vtanh.f32 %v6731_v63 }
 0x76a   : > { %v6735_v37 = vadd.f32 %v2386_v29, %v2384_v39  ;;  %5091 = vrcp.f32 %v2376_v36  ;;  %v2407_v36 = vld [vmem:[#allocation3 + $0x118] sm:$0xff] }
 0x76c   : > { %5093 = vtanh.f32 %v6735_v37 }
 0x773   : > { %v5090_v38 = vpop.eup %5089 }
 0x774   : > { %v5092_v59 = vpop.eup %5091  ;;  %v2391_v42 = vmul.f32 %v5090_v38, %v5088_v34  ;;  %v2406_v38 = vld [vmem:[#allocation3 + $0x110] sm:$0xff] }
 0x776   : > { %v5094_v41 = vpop.eup %5093 }
 0x777   : > { %v2392_v44 = vmul.f32 %v5094_v41, %v5092_v59  ;;  %v2411_v41 = vld [vmem:[#allocation3 + $0x138] sm:$0xff] }
 0x779   : > { %v2393_v62 = vpack.c.bf16 %v2392_v44, %v2391_v42  ;;  %v2410_v42 = vld [vmem:[#allocation3 + $0x130] sm:$0xff] }
 0x77b   : > { %2403 = vst [vmem:[#allocation2 + $0x18] sm:$0xff] %v2393_v62  ;;  %2446 = vmatmul.mubr.bf16.vlgmr.msra.gmra.mrb[16].mxu0 %v2393_v62  ;;  %2489 = vmatmul.mubr.bf16.vlgmr.msra.gmra.mrb[16].mxu1 %v2393_v62 }
 0x77c   : > { %2578 = vmatpush1.bf16.msra.mxu0 %v6414_v47  ;;  %2621 = vmatpush1.bf16.msra.mxu1 %v6429_v56 }
 0x77d   : > { %2579 = vmatprep.subr.bf16.mxu0 %v6418_v48  ;;  %2622 = vmatprep.subr.bf16.mxu1 %v6433_v3 }
 0x77e   : > { %2609 = vmatprep.mubr.bf16.mxu0 %v5681_v0  ;;  %2652 = vmatprep.mubr.bf16.mxu1 %v5681_v0 }
 0x780   : > { %2580 = vmatpush1.bf16.msra.mxu0 %v6438_v5  ;;  %2623 = vmatpush1.bf16.msra.mxu1 %v6449_v4 }
 0x781   : > { %2581 = vmatprep.subr.bf16.mxu0 %v6444_v57  ;;  %2624 = vmatprep.subr.bf16.mxu1 %v6454_v6 }
 0x784   : > { %2582 = vmatpush1.bf16.msra.mxu0 %v6459_v7  ;;  %2625 = vmatpush1.bf16.msra.mxu1 %v6469_v8 }
 0x785   : > { %2583 = vmatprep.subr.bf16.mxu0 %v6464_v9  ;;  %2626 = vmatprep.subr.bf16.mxu1 %v6474_v10 }
 0x788   : > { %2584 = vmatpush1.bf16.msra.mxu0 %v6479_v11  ;;  %2627 = vmatpush1.bf16.msra.mxu1 %v6489_v12 }
 0x789   : > { %2585 = vmatprep.subr.bf16.mxu0 %v6484_v13  ;;  %2628 = vmatprep.subr.bf16.mxu1 %v6494_v14 }
 0x78c   : > { %2586 = vmatpush1.bf16.msra.mxu0 %v6499_v15  ;;  %2629 = vmatpush1.bf16.msra.mxu1 %v6509_v16 }
 0x78d   : > { %2587 = vmatprep.subr.bf16.mxu0 %v6504_v17  ;;  %2630 = vmatprep.subr.bf16.mxu1 %v6514_v18 }
 0x790   : > { %2588 = vmatpush1.bf16.msra.mxu0 %v6519_v19  ;;  %2631 = vmatpush1.bf16.msra.mxu1 %v6529_v20 }
 0x791   : > { %2589 = vmatprep.subr.bf16.mxu0 %v6524_v21  ;;  %2632 = vmatprep.subr.bf16.mxu1 %v6534_v22 }
 0x794   : > { %2590 = vmatpush1.bf16.msra.mxu0 %v6539_v23  ;;  %2633 = vmatpush1.bf16.msra.mxu1 %v6549_v24 }
 0x795   : > { %2591 = vmatprep.subr.bf16.mxu0 %v6544_v25  ;;  %2634 = vmatprep.subr.bf16.mxu1 %v6554_v26 }
 0x798   : > { %2592 = vmatpush1.bf16.msra.mxu0 %v6559_v27  ;;  %2635 = vmatpush1.bf16.msra.mxu1 %v6565_v28 }
 0x799   : > { %2741 = vmatprep.subr.bf16.mxu0 %v6410_v53  ;;  %2784 = vmatprep.subr.bf16.mxu1 %v6423_v49 }
 0x84e   : > { %v2447_v46 = vpop.f32.mrb[16].mxu0  ;;  %v2490_v45 = vpop.f32.mrb[16].mxu1 }
 0x84f   : > { %v2499_v31 = vadd.f32 %v2447_v46, %v2404_v61  ;;  %v2449_v40 = vpop.f32.mrb[17].mxu0  ;;  %v2492_v32 = vpop.f32.mrb[17].mxu1  ;;  %v2501_v44 = vadd.f32 %v2490_v45, %v2406_v38 }
 0x850   : > { %v2500_v33 = vadd.f32 %v2449_v40, %v2405_v43  ;;  %v2451_v58 = vpop.f32.mrb[18].mxu0  ;;  %v2494_v50 = vpop.f32.mrb[18].mxu1  ;;  %v2502_v59 = vadd.f32 %v2492_v32, %v2407_v36 }
 0x851   : > { %v4532_v55 = vmul.f32 -1.442695, %v2499_v31  ;;  %v2503_v54 = vadd.f32 %v2451_v58, %v2408_v52  ;;  %v2453_v60 = vpop.f32.mrb[19].mxu0  ;;  %v2496_v51 = vpop.f32.mrb[19].mxu1  ;;  %v2505_v43 = vadd.f32 %v2494_v50, %v2410_v42 }
 0x852   : > { %v4534_v29 = vmul.f32 -1.442695, %v2500_v33  ;;  %v2504_v35 = vadd.f32 %v2453_v60, %v2409_v30  ;;  %v4536_v62 = vmul.f32 -1.442695, %v2502_v59  ;;  %v2506_v61 = vadd.f32 %v2496_v51, %v2411_v41 }
 0x853   : > { %5095 = vpow2.f32 %v4532_v55  ;;  %v4533_v39 = vmul.f32 -1.442695, %v2503_v54 }
 0x854   : > { %5097 = vpow2.f32 %v4534_v29  ;;  %v4535_v34 = vmul.f32 -1.442695, %v2504_v35  ;;  %v4537_v40 = vmul.f32 -1.442695, %v2506_v61 }
 0x855   : > { %5099 = vpow2.f32 %v4533_v39 }
 0x856   : > { %5101 = vpow2.f32 %v4535_v34 }
 0x857   : > { %5103 = vtanh.f32 %v2501_v44 }
 0x858   : > { %5105 = vpow2.f32 %v4536_v62 }
 0x859   : > { %5107 = vtanh.f32 %v2505_v43 }
 0x85d   : > { %v5096_v46 = vpop.eup %5095 }
 0x85e   : > { %v5098_v52 = vpop.eup %5097  ;;  %v2513_v31 = vadd.f32 1.0, %v5096_v46 }
 0x85f   : > { %v2525_v30 = vadd.f32 1.0, %v5098_v52  ;;  %v5100_v33 = vpop.eup %5099 }
 0x860   : > { %5109 = vrcp.f32 %v2513_v31  ;;  %v2514_v32 = vadd.f32 1.0, %v5100_v33  ;;  %v5102_v58 = vpop.eup %5101 }
 0x861   : > { %5111 = vrcp.f32 %v2525_v30  ;;  %v2526_v55 = vadd.f32 1.0, %v5102_v58  ;;  %v5104_v45 = vpop.eup %5103  ;;  %v2569_v30 = vld [vmem:[#allocation3 + $0x148] sm:$0xff]  ;;  %v2572_v58 = vld [vmem:[#allocation3 + $0x160] sm:$0xff] }
 0x862   : > { %5113 = vpow2.f32 %v4537_v40  ;;  %v5106_v54 = vpop.eup %5105 }
 0x863   : > { %5115 = vrcp.f32 %v2514_v32  ;;  %v5108_v50 = vpop.eup %5107  ;;  %v2539_v34 = vadd.f32 1.0, %v5106_v54 }
 0x864   : > { %5117 = vrcp.f32 %v2526_v55 }
 0x865   : > { %5119 = vrcp.f32 %v2539_v34 }
 0x86a   : > { %v5110_v60 = vpop.eup %5109 }
 0x86b   : > { %v5112_v51 = vpop.eup %5111  ;;  %v2549_v29 = vmul.f32 %v5110_v60, %v5104_v45 }
 0x86c   : > { %v5114_v35 = vpop.eup %5113  ;;  %v2547_v36 = vmul.f32 %v5112_v51, %v6731_v63 }
 0x86d   : > { %v5116_v39 = vpop.eup %5115  ;;  %v2540_v42 = vadd.f32 1.0, %v5114_v35 }
 0x86e   : > { %v6773_v38 = vadd.f32 %v2549_v29, %v2547_v36  ;;  %v2550_v59 = vmul.f32 %v5116_v39, %v5108_v50  ;;  %v5118_v41 = vpop.eup %5117  ;;  %v2573_v50 = vld [vmem:[#allocation3 + $0x168] sm:$0xff] }
 0x86f   : > { %v2548_v44 = vmul.f32 %v5118_v41, %v6735_v37  ;;  %v5120_v61 = vpop.eup %5119  ;;  %v2568_v37 = vld [vmem:[#allocation3 + $0x140] sm:$0xff] }
 0x870   : > { %5121 = vtanh.f32 %v6773_v38 }
 0x871   : > { %v6777_v62 = vadd.f32 %v2550_v59, %v2548_v44  ;;  %5123 = vrcp.f32 %v2540_v42  ;;  %v2571_v42 = vld [vmem:[#allocation3 + $0x158] sm:$0xff] }
 0x873   : > { %5125 = vtanh.f32 %v6777_v62 }
 0x87a   : > { %v5122_v43 = vpop.eup %5121 }
 0x87b   : > { %v5124_v63 = vpop.eup %5123  ;;  %v2555_v52 = vmul.f32 %v5122_v43, %v5120_v61  ;;  %v2570_v43 = vld [vmem:[#allocation3 + $0x150] sm:$0xff] }
 0x87d   : > { %v5126_v46 = vpop.eup %5125 }
 0x87e   : > { %v2556_v31 = vmul.f32 %v5126_v46, %v5124_v63  ;;  %v2575_v46 = vld [vmem:[#allocation3 + $0x178] sm:$0xff] }
 0x880   : > { %v2557_v40 = vpack.c.bf16 %v2556_v31, %v2555_v52  ;;  %v2574_v52 = vld [vmem:[#allocation3 + $0x170] sm:$0xff] }
 0x882   : > { %2567 = vst [vmem:[#allocation2 + $0x20] sm:$0xff] %v2557_v40  ;;  %2610 = vmatmul.mubr.bf16.vlgmr.msra.gmra.mrb[20].mxu0 %v2557_v40  ;;  %2653 = vmatmul.mubr.bf16.vlgmr.msra.gmra.mrb[20].mxu1 %v2557_v40 }
 0x883   : > { %2742 = vmatpush1.bf16.msra.mxu0 %v6414_v47  ;;  %2785 = vmatpush1.bf16.msra.mxu1 %v6429_v56 }
 0x884   : > { %2743 = vmatprep.subr.bf16.mxu0 %v6418_v48  ;;  %2786 = vmatprep.subr.bf16.mxu1 %v6433_v3 }
 0x885   : > { %2773 = vmatprep.mubr.bf16.mxu0 %v5681_v0  ;;  %2816 = vmatprep.mubr.bf16.mxu1 %v5681_v0 }
 0x887   : > { %2744 = vmatpush1.bf16.msra.mxu0 %v6438_v5  ;;  %2787 = vmatpush1.bf16.msra.mxu1 %v6449_v4 }
 0x888   : > { %2745 = vmatprep.subr.bf16.mxu0 %v6444_v57  ;;  %2788 = vmatprep.subr.bf16.mxu1 %v6454_v6 }
 0x88b   : > { %2746 = vmatpush1.bf16.msra.mxu0 %v6459_v7  ;;  %2789 = vmatpush1.bf16.msra.mxu1 %v6469_v8 }
 0x88c   : > { %2747 = vmatprep.subr.bf16.mxu0 %v6464_v9  ;;  %2790 = vmatprep.subr.bf16.mxu1 %v6474_v10 }
 0x88f   : > { %2748 = vmatpush1.bf16.msra.mxu0 %v6479_v11  ;;  %2791 = vmatpush1.bf16.msra.mxu1 %v6489_v12 }
 0x890   : > { %2749 = vmatprep.subr.bf16.mxu0 %v6484_v13  ;;  %2792 = vmatprep.subr.bf16.mxu1 %v6494_v14 }
 0x893   : > { %2750 = vmatpush1.bf16.msra.mxu0 %v6499_v15  ;;  %2793 = vmatpush1.bf16.msra.mxu1 %v6509_v16 }
 0x894   : > { %2751 = vmatprep.subr.bf16.mxu0 %v6504_v17  ;;  %2794 = vmatprep.subr.bf16.mxu1 %v6514_v18 }
 0x897   : > { %2752 = vmatpush1.bf16.msra.mxu0 %v6519_v19  ;;  %2795 = vmatpush1.bf16.msra.mxu1 %v6529_v20 }
 0x898   : > { %2753 = vmatprep.subr.bf16.mxu0 %v6524_v21  ;;  %2796 = vmatprep.subr.bf16.mxu1 %v6534_v22 }
 0x89b   : > { %2754 = vmatpush1.bf16.msra.mxu0 %v6539_v23  ;;  %2797 = vmatpush1.bf16.msra.mxu1 %v6549_v24 }
 0x89c   : > { %2755 = vmatprep.subr.bf16.mxu0 %v6544_v25  ;;  %2798 = vmatprep.subr.bf16.mxu1 %v6554_v26 }
 0x89f   : > { %2756 = vmatpush1.bf16.msra.mxu0 %v6559_v27  ;;  %2799 = vmatpush1.bf16.msra.mxu1 %v6565_v28 }
 0x8a0   : > { %2905 = vmatprep.subr.bf16.mxu0 %v6410_v53  ;;  %2948 = vmatprep.subr.bf16.mxu1 %v6423_v49 }
 0x955   : > { %v2611_v33 = vpop.f32.mrb[20].mxu0  ;;  %v2654_v32 = vpop.f32.mrb[20].mxu1 }
 0x956   : > { %v2663_v55 = vadd.f32 %v2611_v33, %v2568_v37  ;;  %v2613_v45 = vpop.f32.mrb[21].mxu0  ;;  %v2656_v54 = vpop.f32.mrb[21].mxu1  ;;  %v2665_v31 = vadd.f32 %v2654_v32, %v2570_v43 }
 0x957   : > { %v2664_v60 = vadd.f32 %v2613_v45, %v2569_v30  ;;  %v2615_v51 = vpop.f32.mrb[22].mxu0  ;;  %v2658_v29 = vpop.f32.mrb[22].mxu1  ;;  %v2666_v63 = vadd.f32 %v2656_v54, %v2571_v42 }
 0x958   : > { %v4538_v35 = vmul.f32 -1.442695, %v2663_v55  ;;  %v2667_v36 = vadd.f32 %v2615_v51, %v2572_v58  ;;  %v2617_v39 = vpop.f32.mrb[23].mxu0  ;;  %v2660_v34 = vpop.f32.mrb[23].mxu1  ;;  %v2669_v30 = vadd.f32 %v2658_v29, %v2574_v52 }
 0x959   : > { %v4540_v59 = vmul.f32 -1.442695, %v2664_v60  ;;  %v2668_v41 = vadd.f32 %v2617_v39, %v2573_v50  ;;  %v4542_v40 = vmul.f32 -1.442695, %v2666_v63  ;;  %v2670_v37 = vadd.f32 %v2660_v34, %v2575_v46 }
 0x95a   : > { %5127 = vpow2.f32 %v4538_v35  ;;  %v4539_v44 = vmul.f32 -1.442695, %v2667_v36 }
 0x95b   : > { %5129 = vpow2.f32 %v4540_v59  ;;  %v4541_v61 = vmul.f32 -1.442695, %v2668_v41  ;;  %v4543_v45 = vmul.f32 -1.442695, %v2670_v37 }
 0x95c   : > { %5131 = vpow2.f32 %v4539_v44 }
 0x95d   : > { %5133 = vpow2.f32 %v4541_v61 }
 0x95e   : > { %5135 = vtanh.f32 %v2665_v31 }
 0x95f   : > { %5137 = vpow2.f32 %v4542_v40 }
 0x960   : > { %5139 = vtanh.f32 %v2669_v30 }
 0x964   : > { %v5128_v33 = vpop.eup %5127 }
 0x965   : > { %v5130_v58 = vpop.eup %5129  ;;  %v2677_v55 = vadd.f32 1.0, %v5128_v33 }
 0x966   : > { %v2689_v50 = vadd.f32 1.0, %v5130_v58  ;;  %v5132_v60 = vpop.eup %5131 }
 0x967   : > { %5141 = vrcp.f32 %v2677_v55  ;;  %v2678_v54 = vadd.f32 1.0, %v5132_v60  ;;  %v5134_v51 = vpop.eup %5133 }
 0x968   : > { %5143 = vrcp.f32 %v2689_v50  ;;  %v2690_v35 = vadd.f32 1.0, %v5134_v51  ;;  %v5136_v32 = vpop.eup %5135  ;;  %v2733_v50 = vld [vmem:[#allocation3 + $0x188] sm:$0xff]  ;;  %v2736_v51 = vld [vmem:[#allocation3 + $0x1a0] sm:$0xff] }
 0x969   : > { %5145 = vpow2.f32 %v4543_v45  ;;  %v5138_v36 = vpop.eup %5137 }
 0x96a   : > { %5147 = vrcp.f32 %v2678_v54  ;;  %v5140_v29 = vpop.eup %5139  ;;  %v2703_v61 = vadd.f32 1.0, %v5138_v36 }
 0x96b   : > { %5149 = vrcp.f32 %v2690_v35 }
 0x96c   : > { %5151 = vrcp.f32 %v2703_v61 }
 0x971   : > { %v5142_v39 = vpop.eup %5141 }
 0x972   : > { %v5144_v34 = vpop.eup %5143  ;;  %v2713_v59 = vmul.f32 %v5142_v39, %v5136_v32 }
 0x973   : > { %v5146_v41 = vpop.eup %5145  ;;  %v2711_v42 = vmul.f32 %v5144_v34, %v6773_v38 }
 0x974   : > { %v5148_v44 = vpop.eup %5147  ;;  %v2704_v52 = vadd.f32 1.0, %v5146_v41 }
 0x975   : > { %v6815_v43 = vadd.f32 %v2713_v59, %v2711_v42  ;;  %v2714_v63 = vmul.f32 %v5148_v44, %v5140_v29  ;;  %v5150_v46 = vpop.eup %5149  ;;  %v2737_v29 = vld [vmem:[#allocation3 + $0x1a8] sm:$0xff] }
 0x976   : > { %v2712_v31 = vmul.f32 %v5150_v46, %v6777_v62  ;;  %v5152_v37 = vpop.eup %5151  ;;  %v2732_v62 = vld [vmem:[#allocation3 + $0x180] sm:$0xff] }
 0x977   : > { %5153 = vtanh.f32 %v6815_v43 }
 0x978   : > { %v6819_v40 = vadd.f32 %v2714_v63, %v2712_v31  ;;  %5155 = vrcp.f32 %v2704_v52  ;;  %v2735_v52 = vld [vmem:[#allocation3 + $0x198] sm:$0xff] }
 0x97a   : > { %5157 = vtanh.f32 %v6819_v40 }
 0x981   : > { %v5154_v30 = vpop.eup %5153 }
 0x982   : > { %v5156_v38 = vpop.eup %5155  ;;  %v2719_v58 = vmul.f32 %v5154_v30, %v5152_v37  ;;  %v2734_v30 = vld [vmem:[#allocation3 + $0x190] sm:$0xff] }
 0x984   : > { %v5158_v33 = vpop.eup %5157 }
 0x985   : > { %v2720_v55 = vmul.f32 %v5158_v33, %v5156_v38  ;;  %v2739_v33 = vld [vmem:[#allocation3 + $0x1b8] sm:$0xff] }
 0x987   : > { %v2721_v45 = vpack.c.bf16 %v2720_v55, %v2719_v58  ;;  %v2738_v58 = vld [vmem:[#allocation3 + $0x1b0] sm:$0xff] }
 0x989   : > { %2731 = vst [vmem:[#allocation2 + $0x28] sm:$0xff] %v2721_v45  ;;  %2774 = vmatmul.mubr.bf16.vlgmr.msra.gmra.mrb[24].mxu0 %v2721_v45  ;;  %2817 = vmatmul.mubr.bf16.vlgmr.msra.gmra.mrb[24].mxu1 %v2721_v45 }
 0x98a   : > { %2906 = vmatpush1.bf16.msra.mxu0 %v6414_v47  ;;  %2949 = vmatpush1.bf16.msra.mxu1 %v6429_v56 }
 0x98b   : > { %2907 = vmatprep.subr.bf16.mxu0 %v6418_v48  ;;  %2950 = vmatprep.subr.bf16.mxu1 %v6433_v3 }
 0x98c   : > { %2937 = vmatprep.mubr.bf16.mxu0 %v5681_v0  ;;  %2980 = vmatprep.mubr.bf16.mxu1 %v5681_v0 }
 0x98e   : > { %2908 = vmatpush1.bf16.msra.mxu0 %v6438_v5  ;;  %2951 = vmatpush1.bf16.msra.mxu1 %v6449_v4 }
 0x98f   : > { %2909 = vmatprep.subr.bf16.mxu0 %v6444_v57  ;;  %2952 = vmatprep.subr.bf16.mxu1 %v6454_v6 }
 0x992   : > { %2910 = vmatpush1.bf16.msra.mxu0 %v6459_v7  ;;  %2953 = vmatpush1.bf16.msra.mxu1 %v6469_v8 }
 0x993   : > { %2911 = vmatprep.subr.bf16.mxu0 %v6464_v9  ;;  %2954 = vmatprep.subr.bf16.mxu1 %v6474_v10 }
 0x996   : > { %2912 = vmatpush1.bf16.msra.mxu0 %v6479_v11  ;;  %2955 = vmatpush1.bf16.msra.mxu1 %v6489_v12 }
 0x997   : > { %2913 = vmatprep.subr.bf16.mxu0 %v6484_v13  ;;  %2956 = vmatprep.subr.bf16.mxu1 %v6494_v14 }
 0x99a   : > { %2914 = vmatpush1.bf16.msra.mxu0 %v6499_v15  ;;  %2957 = vmatpush1.bf16.msra.mxu1 %v6509_v16 }
 0x99b   : > { %2915 = vmatprep.subr.bf16.mxu0 %v6504_v17  ;;  %2958 = vmatprep.subr.bf16.mxu1 %v6514_v18 }
 0x99e   : > { %2916 = vmatpush1.bf16.msra.mxu0 %v6519_v19  ;;  %2959 = vmatpush1.bf16.msra.mxu1 %v6529_v20 }
 0x99f   : > { %2917 = vmatprep.subr.bf16.mxu0 %v6524_v21  ;;  %2960 = vmatprep.subr.bf16.mxu1 %v6534_v22 }
 0x9a2   : > { %2918 = vmatpush1.bf16.msra.mxu0 %v6539_v23  ;;  %2961 = vmatpush1.bf16.msra.mxu1 %v6549_v24 }
 0x9a3   : > { %2919 = vmatprep.subr.bf16.mxu0 %v6544_v25  ;;  %2962 = vmatprep.subr.bf16.mxu1 %v6554_v26 }
 0x9a6   : > { %2920 = vmatpush1.bf16.msra.mxu0 %v6559_v27  ;;  %2963 = vmatpush1.bf16.msra.mxu1 %v6565_v28 }
 0xa5c   : > { %v2775_v60 = vpop.f32.mrb[24].mxu0  ;;  %v2818_v54 = vpop.f32.mrb[24].mxu1 }
 0xa5d   : > { %v2827_v35 = vadd.f32 %v2775_v60, %v2732_v62  ;;  %v2777_v32 = vpop.f32.mrb[25].mxu0  ;;  %v2820_v36 = vpop.f32.mrb[25].mxu1  ;;  %v2829_v55 = vadd.f32 %v2818_v54, %v2734_v30 }
 0xa5e   : > { %v2828_v39 = vadd.f32 %v2777_v32, %v2733_v50  ;;  %v2779_v34 = vpop.f32.mrb[26].mxu0  ;;  %v2822_v59 = vpop.f32.mrb[26].mxu1  ;;  %v2830_v38 = vadd.f32 %v2820_v36, %v2735_v52 }
 0xa5f   : > { %v4544_v41 = vmul.f32 -1.442695, %v2827_v35  ;;  %v2831_v42 = vadd.f32 %v2779_v34, %v2736_v51  ;;  %v2781_v44 = vpop.f32.mrb[27].mxu0  ;;  %v2824_v61 = vpop.f32.mrb[27].mxu1  ;;  %v2833_v50 = vadd.f32 %v2822_v59, %v2738_v58 }
 0xa60   : > { %v4546_v63 = vmul.f32 -1.442695, %v2828_v39  ;;  %v2832_v46 = vadd.f32 %v2781_v44, %v2737_v29  ;;  %v4548_v45 = vmul.f32 -1.442695, %v2830_v38  ;;  %v2834_v62 = vadd.f32 %v2824_v61, %v2739_v33 }
 0xa61   : > { %5159 = vpow2.f32 %v4544_v41  ;;  %v4545_v31 = vmul.f32 -1.442695, %v2831_v42 }
 0xa62   : > { %5161 = vpow2.f32 %v4546_v63  ;;  %v4547_v37 = vmul.f32 -1.442695, %v2832_v46  ;;  %v4549_v32 = vmul.f32 -1.442695, %v2834_v62 }
 0xa63   : > { %5163 = vpow2.f32 %v4545_v31 }
 0xa64   : > { %5165 = vpow2.f32 %v4547_v37 }
 0xa65   : > { %5167 = vtanh.f32 %v2829_v55 }
 0xa66   : > { %5169 = vpow2.f32 %v4548_v45 }
 0xa67   : > { %5171 = vtanh.f32 %v2833_v50 }
 0xa6b   : > { %v5160_v60 = vpop.eup %5159 }
 0xa6c   : > { %v5162_v51 = vpop.eup %5161  ;;  %v2841_v35 = vadd.f32 1.0, %v5160_v60 }
 0xa6d   : > { %v2853_v29 = vadd.f32 1.0, %v5162_v51  ;;  %v5164_v39 = vpop.eup %5163 }
 0xa6e   : > { %5173 = vrcp.f32 %v2841_v35  ;;  %v2842_v36 = vadd.f32 1.0, %v5164_v39  ;;  %v5166_v34 = vpop.eup %5165 }
 0xa6f   : > { %5175 = vrcp.f32 %v2853_v29  ;;  %v2854_v41 = vadd.f32 1.0, %v5166_v34  ;;  %v5168_v54 = vpop.eup %5167  ;;  %v2896_v29 = vld [vmem:[#allocation3 + $0x1c0] sm:$0xff] }
 0xa70   : > { %5177 = vpow2.f32 %v4549_v32  ;;  %v5170_v42 = vpop.eup %5169  ;;  %v2900_v34 = vld [vmem:[#allocation3 + $0x1e0] sm:$0xff] }
 0xa71   : > { %5179 = vrcp.f32 %v2842_v36  ;;  %v5172_v59 = vpop.eup %5171  ;;  %v2867_v37 = vadd.f32 1.0, %v5170_v42 }
 0xa72   : > { %5181 = vrcp.f32 %v2854_v41 }
 0xa73   : > { %5183 = vrcp.f32 %v2867_v37 }
 0xa78   : > { %v5174_v44 = vpop.eup %5173 }
 0xa79   : > { %v5176_v61 = vpop.eup %5175  ;;  %v2877_v63 = vmul.f32 %v5174_v44, %v5168_v54 }
 0xa7a   : > { %v5178_v46 = vpop.eup %5177  ;;  %v2875_v52 = vmul.f32 %v5176_v61, %v6815_v43 }
 0xa7b   : > { %v5180_v31 = vpop.eup %5179  ;;  %v2868_v58 = vadd.f32 1.0, %v5178_v46 }
 0xa7c   : > { %v6855_v30 = vadd.f32 %v2877_v63, %v2875_v52  ;;  %v2878_v38 = vmul.f32 %v5180_v31, %v5172_v59  ;;  %v5182_v33 = vpop.eup %5181  ;;  %v2901_v59 = vld [vmem:[#allocation3 + $0x1e8] sm:$0xff] }
 0xa7d   : > { %v2876_v55 = vmul.f32 %v5182_v33, %v6819_v40  ;;  %v5184_v62 = vpop.eup %5183  ;;  %v2897_v40 = vld [vmem:[#allocation3 + $0x1c8] sm:$0xff] }
 0xa7e   : > { %5185 = vtanh.f32 %v6855_v30 }
 0xa7f   : > { %v6859_v45 = vadd.f32 %v2878_v38, %v2876_v55  ;;  %5187 = vrcp.f32 %v2868_v58  ;;  %v2899_v58 = vld [vmem:[#allocation3 + $0x1d8] sm:$0xff] }
 0xa81   : > { %5189 = vtanh.f32 %v6859_v45 }
 0xa88   : > { %v5186_v50 = vpop.eup %5185 }
 0xa89   : > { %v5188_v43 = vpop.eup %5187  ;;  %v2883_v51 = vmul.f32 %v5186_v50, %v5184_v62  ;;  %v2898_v50 = vld [vmem:[#allocation3 + $0x1d0] sm:$0xff] }
 0xa8b   : > { %v5190_v60 = vpop.eup %5189 }
 0xa8c   : > { %v2884_v35 = vmul.f32 %v5190_v60, %v5188_v43  ;;  %v2903_v60 = vld [vmem:[#allocation3 + $0x1f8] sm:$0xff] }
 0xa8e   : > { %v2885_v32 = vpack.c.bf16 %v2884_v35, %v2883_v51  ;;  %v2902_v51 = vld [vmem:[#allocation3 + $0x1f0] sm:$0xff] }
 0xa90   : > { %2895 = vst [vmem:[#allocation2 + $0x30] sm:$0xff] %v2885_v32  ;;  %2938 = vmatmul.mubr.bf16.vlgmr.msra.gmra.mrb[28].mxu0 %v2885_v32  ;;  %2981 = vmatmul.mubr.bf16.vlgmr.msra.gmra.mrb[28].mxu1 %v2885_v32 }
 0xb63   : > { %v2939_v39 = vpop.f32.mrb[28].mxu0  ;;  %v2982_v36 = vpop.f32.mrb[28].mxu1 }
 0xb64   : > { %v2991_v41 = vadd.f32 %v2939_v39, %v2896_v29  ;;  %v2941_v54 = vpop.f32.mrb[29].mxu0  ;;  %v2984_v42 = vpop.f32.mrb[29].mxu1  ;;  %v2993_v35 = vadd.f32 %v2982_v36, %v2898_v50 }
 0xb65   : > { %v2992_v44 = vadd.f32 %v2941_v54, %v2897_v40  ;;  %v2943_v61 = vpop.f32.mrb[30].mxu0  ;;  %v2986_v63 = vpop.f32.mrb[30].mxu1  ;;  %v2994_v43 = vadd.f32 %v2984_v42, %v2899_v58 }
 0xb66   : > { %v4550_v46 = vmul.f32 -1.442695, %v2991_v41  ;;  %v2995_v52 = vadd.f32 %v2943_v61, %v2900_v34  ;;  %v2945_v31 = vpop.f32.mrb[31].mxu0  ;;  %v2988_v37 = vpop.f32.mrb[31].mxu1  ;;  %v2997_v40 = vadd.f32 %v2986_v63, %v2902_v51 }
 0xb67   : > { %v4552_v38 = vmul.f32 -1.442695, %v2992_v44  ;;  %v2996_v33 = vadd.f32 %v2945_v31, %v2901_v59  ;;  %v4554_v32 = vmul.f32 -1.442695, %v2994_v43  ;;  %v2998_v29 = vadd.f32 %v2988_v37, %v2903_v60 }
 0xb68   : > { %5191 = vpow2.f32 %v4550_v46  ;;  %v4551_v55 = vmul.f32 -1.442695, %v2995_v52 }
 0xb69   : > { %5193 = vpow2.f32 %v4552_v38  ;;  %v4553_v62 = vmul.f32 -1.442695, %v2996_v33  ;;  %v4555_v54 = vmul.f32 -1.442695, %v2998_v29 }
 0xb6a   : > { %5195 = vpow2.f32 %v4551_v55 }
 0xb6b   : > { %5197 = vpow2.f32 %v4553_v62 }
 0xb6c   : > { %5199 = vtanh.f32 %v2993_v35 }
 0xb6d   : > { %5201 = vpow2.f32 %v4554_v32 }
 0xb6e   : > { %5203 = vtanh.f32 %v2997_v40 }
 0xb72   : > { %v5192_v39 = vpop.eup %5191 }
 0xb73   : > { %v5194_v34 = vpop.eup %5193  ;;  %v3005_v41 = vadd.f32 1.0, %v5192_v39 }
 0xb74   : > { %v3017_v59 = vadd.f32 1.0, %v5194_v34  ;;  %v5196_v44 = vpop.eup %5195 }
 0xb75   : > { %5205 = vrcp.f32 %v3005_v41  ;;  %v3006_v42 = vadd.f32 1.0, %v5196_v44  ;;  %v5198_v61 = vpop.eup %5197  ;;  %v5225_v44 = vld [vmem:[#allocation9 + $0xc] ss:$16 sps:$4 sm:$0xff] (!%p4402_p4)  }
 0xb76   : > { %5207 = vrcp.f32 %v3017_v59  ;;  %v3018_v46 = vadd.f32 1.0, %v5198_v61  ;;  %v5200_v36 = vpop.eup %5199  ;;  %v5223_v59 = vld [vmem:[#allocation9 + $0x4] ss:$16 sps:$4 sm:$0xff] (!%p4402_p4)   ;;  %v5228_v61 = vld [vmem:[#allocation9 + $0x8] ss:$16 sps:$4 sm:$0xff] (!%p4402_p4)   ;;  %3346 = vmatprep.subr.bf16.mxu1 (!%p4402_p4), %v5225_v44 }
 0xb77   : > { %5209 = vpow2.f32 %v4555_v54  ;;  %v5202_v52 = vpop.eup %5201  ;;  %3293 = vmatprep.subr.bf16.mxu0 (!%p4402_p4), %v5223_v59  ;;  %3347 = vmatpush1.bf16.msra.mxu1 (!%p4402_p4), %v5228_v61  ;;  %v5265_v59 = vld [vmem:[#allocation9 + $0xe4] ss:$16 sps:$4 sm:$0xff] (!%p4402_p4)   ;;  %v5267_v44 = vld [vmem:[#allocation9 + $0xec] ss:$16 sps:$4 sm:$0xff] (!%p4402_p4)   ;;  %v5270_v61 = vld [vmem:[#allocation9 + $0xe8] ss:$16 sps:$4 sm:$0xff] (!%p4402_p4)  }
 0xb78   : > { %5211 = vrcp.f32 %v3006_v42  ;;  %v5204_v63 = vpop.eup %5203  ;;  %v3031_v33 = vadd.f32 1.0, %v5202_v52  ;;  %v5685_v42 = vmov (!%p4402_p4), 0   ;;  %v5233_v52 = vld [vmem:[#allocation9 + $0x20] ss:$16 sps:$4 sm:$0xff] (!%p4402_p4)  }
 0xb79   : > { %5213 = vrcp.f32 %v3018_v46  ;;  %3325 = vmatprep.mubr.bf16.mxu0 (!%p4402_p4), %v5685_v42  ;;  %3378 = vmatprep.mubr.bf16.mxu1 (!%p4402_p4), %v5685_v42  ;;  %v5229_v46 = vld [vmem:[#allocation9 + $0x24] ss:$16 sps:$4 sm:$0xff] (!%p4402_p4)  }
 0xb7a   : > { %5215 = vrcp.f32 %v3031_v33  ;;  %v5240_v33 = vld [vmem:[#allocation9 + $0x48] ss:$16 sps:$4 sm:$0xff] (!%p4402_p4)  }
 0xb7f   : > { %v5206_v31 = vpop.eup %5205 }
 0xb80   : > { %v5208_v37 = vpop.eup %5207  ;;  %v3041_v38 = vmul.f32 %v5206_v31, %v5200_v36  ;;  %v5231_v36 = vld [vmem:[#allocation9 + $0x2c] ss:$16 sps:$4 sm:$0xff] (!%p4402_p4)   ;;  %v5235_v31 = vld [vmem:[#allocation9 + $0x44] ss:$16 sps:$4 sm:$0xff] (!%p4402_p4)  }
 0xb81   : > { %v5210_v58 = vpop.eup %5209  ;;  %v3039_v55 = vmul.f32 %v5208_v37, %v6855_v30  ;;  %3348 = vmatprep.subr.bf16.mxu1 (!%p4402_p4), %v5231_v36  ;;  %v5237_v37 = vld [vmem:[#allocation9 + $0x4c] ss:$16 sps:$4 sm:$0xff] (!%p4402_p4)  }
 0xb82   : > { %v5212_v62 = vpop.eup %5211  ;;  %v3032_v51 = vadd.f32 1.0, %v5210_v58  ;;  %v5241_v58 = vld [vmem:[#allocation9 + $0x64] ss:$16 sps:$4 sm:$0xff] (!%p4402_p4)   ;;  %v5272_v36 = vld [vmem:[%s6041_s20 + $0x48] sm:$0xff] (!%p4402_p4)  }
 0xb83   : > { %v3043_v50 = vadd.f32 %v3041_v38, %v3039_v55  ;;  %v3042_v43 = vmul.f32 %v5212_v62, %v5204_v63  ;;  %v5214_v60 = vpop.eup %5213  ;;  %v5234_v63 = vld [vmem:[#allocation9 + $0x28] ss:$16 sps:$4 sm:$0xff] (!%p4402_p4)   ;;  %v5239_v38 = vld [vmem:[#allocation9 + $0x40] ss:$16 sps:$4 sm:$0xff] (!%p4402_p4)   ;;  %v5243_v55 = vld [vmem:[#allocation9 + $0x6c] ss:$16 sps:$4 sm:$0xff] (!%p4402_p4)  }
 0xb84   : > { %v3040_v35 = vmul.f32 %v5214_v60, %v6859_v45  ;;  %v5216_v29 = vpop.eup %5215  ;;  %v5227_v45 = vld [vmem:[#allocation9] ss:$16 sps:$4 sm:$0xff] (!%p4402_p4)   ;;  %3349 = vmatpush1.bf16.msra.mxu1 (!%p4402_p4), %v5234_v63  ;;  %v5249_v60 = vld [vmem:[#allocation9 + $0x8c] ss:$16 sps:$4 sm:$0xff] (!%p4402_p4)  }
 0xb85   : > { %5217 = vtanh.f32 %v3043_v50  ;;  %3050 = vst [vmem:[#allocation5] sm:$0xff] %v3043_v50  ;;  %3294 = vmatpush1.bf16.msra.mxu0 (!%p4402_p4), %v5227_v45  ;;  %3350 = vmatprep.subr.bf16.mxu1 (!%p4402_p4), %v5237_v37  ;;  %v5245_v62 = vld [vmem:[#allocation9 + $0x60] ss:$16 sps:$4 sm:$0xff] (!%p4402_p4)   ;;  %v5246_v50 = vld [vmem:[#allocation9 + $0x68] ss:$16 sps:$4 sm:$0xff] (!%p4402_p4)  }
 0xb86   : > { %v3044_v32 = vadd.f32 %v3042_v43, %v3040_v35  ;;  %5219 = vrcp.f32 %v3032_v51  ;;  %3295 = vmatprep.subr.bf16.mxu0 (!%p4402_p4), %v5229_v46  ;;  %v5247_v43 = vld [vmem:[#allocation9 + $0x84] ss:$16 sps:$4 sm:$0xff] (!%p4402_p4)   ;;  %v5251_v51 = vld [vmem:[#allocation9 + $0x80] ss:$16 sps:$4 sm:$0xff] (!%p4402_p4)   ;;  %v5252_v35 = vld [vmem:[#allocation9 + $0x88] ss:$16 sps:$4 sm:$0xff] (!%p4402_p4)  }
 0xb87   : > { %v5269_v45 = vld [vmem:[#allocation9 + $0xe0] ss:$16 sps:$4 sm:$0xff] (!%p4402_p4)  }
 0xb88   : > { %5221 = vtanh.f32 %v3044_v32  ;;  %3051 = vst [vmem:[#allocation5 + $0x8] sm:$0xff] %v3044_v32  ;;  %3351 = vmatpush1.bf16.msra.mxu1 (!%p4402_p4), %v5240_v33  ;;  %v5253_v32 = vld [vmem:[#allocation9 + $0xa4] ss:$16 sps:$4 sm:$0xff] (!%p4402_p4)  }
 0xb89   : > { %3296 = vmatpush1.bf16.msra.mxu0 (!%p4402_p4), %v5233_v52  ;;  %3352 = vmatprep.subr.bf16.mxu1 (!%p4402_p4), %v5243_v55  ;;  %v5271_v46 = vld [vmem:[%s6041_s20 + $0x40] sm:$0xff] (!%p4402_p4)   ;;  %v3101_v52 = vlaneseq (!%p4402_p4) }
 0xb8a   : > { %3297 = vmatprep.subr.bf16.mxu0 (!%p4402_p4), %v5235_v31 }
 0xb8b   : > { %v3102_v63 = vshrl.u32 (!%p4402_p4), %v3101_v52, 7 }
 0xb8c   : > { %3353 = vmatpush1.bf16.msra.mxu1 (!%p4402_p4), %v5246_v50 }
 0xb8d   : > { %3298 = vmatpush1.bf16.msra.mxu0 (!%p4402_p4), %v5239_v38  ;;  %3354 = vmatprep.subr.bf16.mxu1 (!%p4402_p4), %v5249_v60  ;;  %v3103_v31 = vsub.s32 (!%p4402_p4), 0, %v3102_v63  ;;  %v3111_v37 = vsub.s32 (!%p4402_p4), 2, %v3102_v63  ;;  %v3107_v38 = vsub.s32 (!%p4402_p4), 1, %v3102_v63  ;;  %v3115_v33 = vsub.s32 (!%p4402_p4), 3, %v3102_v63 }
 0xb8e   : > { %3299 = vmatprep.subr.bf16.mxu0 (!%p4402_p4), %v5241_v58 }
 0xb8f   : > { %v5218_v40 = vpop.eup %5217  ;;  %v3104_v58 = vrot.slane (!%p4402_p4), %v6077_v2, %v3103_v31  ;;  %v3112_v55 = vrot.slane (!%p4402_p4), %v6077_v2, %v3111_v37  ;;  %v3116_v50 = vrot.slane (!%p4402_p4), %v6077_v2, %v3115_v33 }
 0xb90   : > { %v3047_v39 = vmul.f32 %v5218_v40, %v5216_v29  ;;  %v5220_v34 = vpop.eup %5219  ;;  %v5255_v29 = vld [vmem:[#allocation9 + $0xac] ss:$16 sps:$4 sm:$0xff] (!%p4402_p4)   ;;  %v5257_v40 = vld [vmem:[#allocation9 + $0xa0] ss:$16 sps:$4 sm:$0xff] (!%p4402_p4)   ;;  %3355 = vmatpush1.bf16.msra.mxu1 (!%p4402_p4), %v5252_v35 }
 0xb91   : > { %3062 = sbr.rel (%p4402_p4) target bundleno = 3206 (0xc86), region = 80  ;;  %3300 = vmatpush1.bf16.msra.mxu0 (!%p4402_p4), %v5245_v62  ;;  %3356 = vmatprep.subr.bf16.mxu1 (!%p4402_p4), %v5255_v29  ;;  %v3108_v62 = vrot.slane (!%p4402_p4), %v6077_v2, %v3107_v38 }
 0xb92   : > { %v5222_v41 = vpop.eup %5221  ;;  %3301 = vmatprep.subr.bf16.mxu0 (!%p4402_p4), %v5247_v43 }
 0xb93   : > { %v3048_v30 = vmul.f32 %v5222_v41, %v5220_v34  ;;  %v5259_v34 = vld [vmem:[#allocation9 + $0xc4] ss:$16 sps:$4 sm:$0xff] (!%p4402_p4)   ;;  %v5261_v41 = vld [vmem:[#allocation9 + $0xcc] ss:$16 sps:$4 sm:$0xff] (!%p4402_p4)  }
 0xb95   : > { %v3049_v54 = vpack.c.bf16 %v3048_v30, %v3047_v39  ;;  %3302 = vmatpush1.bf16.msra.mxu0 (!%p4402_p4), %v5251_v51  ;;  %v5258_v39 = vld [vmem:[#allocation9 + $0xa8] ss:$16 sps:$4 sm:$0xff] (!%p4402_p4)   ;;  %v5263_v30 = vld [vmem:[#allocation9 + $0xc0] ss:$16 sps:$4 sm:$0xff] (!%p4402_p4)  }
 0xb96   : > { %3303 = vmatprep.subr.bf16.mxu0 (!%p4402_p4), %v5253_v32  ;;  %3357 = vmatpush1.bf16.msra.mxu1 (!%p4402_p4), %v5258_v39 }
 0xb97   : > { %3052 = vst [vmem:[#allocation4] sm:$0xff] %v3049_v54  ;;  %3059 = vst [vmem:[#allocation2 + $0x38] sm:$0xff] %v3049_v54  ;;  %v5264_v54 = vld [vmem:[#allocation9 + $0xc8] ss:$16 sps:$4 sm:$0xff] (!%p4402_p4)   ;;  %3358 = vmatprep.subr.bf16.mxu1 (!%p4402_p4), %v5261_v41 }
 0xb99   : > { %3304 = vmatpush1.bf16.msra.mxu0 %v5257_v40 }
 0xb9a   : > { %3305 = vmatprep.subr.bf16.mxu0 %v5259_v34  ;;  %3359 = vmatpush1.bf16.msra.mxu1 %v5264_v54 }
 0xb9b   : > { %3360 = vmatprep.subr.bf16.mxu1 %v5267_v44 }
 0xb9d   : > { %3306 = vmatpush1.bf16.msra.mxu0 %v5263_v30 }
 0xb9e   : > { %3307 = vmatprep.subr.bf16.mxu0 %v5265_v59  ;;  %3361 = vmatpush1.bf16.msra.mxu1 %v5270_v61 }
 0xba1   : > { %3308 = vmatpush1.bf16.msra.mxu0 %v5269_v45  ;;  %3379 = vmatmul.mubr.bf16.vlgmr.msra.gmra.mrb[0].mxu1 %v5271_v46 }
 0xba2   : > { %3388 = vmatprep.mubr.bf16.mxu1 %v5685_v42 }
 0xba4   : > { %3326 = vmatmul.mubr.bf16.vlgmr.msra.gmra.mrb[0].mxu0 %v5271_v46 }
 0xba5   : > { %3335 = vmatprep.mubr.bf16.mxu0 %v5685_v42 }
 0xba9   : > { %3389 = vmatmul.mubr.bf16.gmra.mrb[4].mxu1 %v5272_v36 }
 0xbac   : > { %3336 = vmatmul.mubr.bf16.gmra.mrb[4].mxu0 %v5272_v36 }
 0xc74   : > { %v3380_v60 = vpop.f32.mrb[0].mxu1 }
 0xc75   : > { %v3381_v51 = vadd.f32 %v3380_v60, %v3112_v55  ;;  %v3382_v32 = vpop.f32.mrb[1].mxu1 }
 0xc76   : > { %v3383_v40 = vadd.f32 %v3382_v32, %v3116_v50  ;;  %v3384_v34 = vpop.f32.mrb[2].mxu1 }
 0xc77   : > { %v3327_v43 = vpop.f32.mrb[0].mxu0  ;;  %3401 = vst [vmem:[#allocation3 + $0x10] sm:$0xff] %v3381_v51  ;;  %v3385_v30 = vadd.f32 %v3384_v34, %v3112_v55  ;;  %v3386_v59 = vpop.f32.mrb[3].mxu1 }
 0xc78   : > { %v3328_v42 = vadd.f32 %v3327_v43, %v3104_v58  ;;  %v3329_v35 = vpop.f32.mrb[1].mxu0  ;;  %3402 = vst [vmem:[#allocation3 + $0x18] sm:$0xff] %v3383_v40  ;;  %v3387_v45 = vadd.f32 %v3386_v59, %v3116_v50 }
 0xc79   : > { %v3330_v29 = vadd.f32 %v3329_v35, %v3108_v62  ;;  %v3331_v39 = vpop.f32.mrb[2].mxu0  ;;  %3405 = vst [vmem:[#allocation3 + $0x30] sm:$0xff] %v3385_v30 }
 0xc7a   : > { %3399 = vst [vmem:[#allocation3] sm:$0xff] %v3328_v42  ;;  %v3332_v41 = vadd.f32 %v3331_v39, %v3104_v58  ;;  %v3333_v54 = vpop.f32.mrb[3].mxu0  ;;  %3406 = vst [vmem:[#allocation3 + $0x38] sm:$0xff] %v3387_v45 }
 0xc7b   : > { %3400 = vst [vmem:[#allocation3 + $0x8] sm:$0xff] %v3330_v29  ;;  %v3334_v44 = vadd.f32 %v3333_v54, %v3108_v62 }
 0xc7c   : > { %3403 = vst [vmem:[#allocation3 + $0x20] sm:$0xff] %v3332_v41  ;;  %v3390_v46 = vpop.f32.mrb[4].mxu1 }
 0xc7d   : > { %3404 = vst [vmem:[#allocation3 + $0x28] sm:$0xff] %v3334_v44  ;;  %v3391_v52 = vadd.f32 %v3390_v46, %v3112_v55  ;;  %v3392_v31 = vpop.f32.mrb[5].mxu1 }
 0xc7e   : > { %v3393_v38 = vadd.f32 %v3392_v31, %v3116_v50  ;;  %v3394_v43 = vpop.f32.mrb[6].mxu1 }
 0xc7f   : > { %v3337_v61 = vpop.f32.mrb[4].mxu0  ;;  %3409 = vst [vmem:[#allocation3 + $0x50] sm:$0xff] %v3391_v52  ;;  %v3395_v42 = vadd.f32 %v3394_v43, %v3112_v55  ;;  %v3396_v35 = vpop.f32.mrb[7].mxu1 }
 0xc80   : > { %v3338_v36 = vadd.f32 %v3337_v61, %v3104_v58  ;;  %v3339_v63 = vpop.f32.mrb[5].mxu0  ;;  %3410 = vst [vmem:[#allocation3 + $0x58] sm:$0xff] %v3393_v38  ;;  %v3397_v29 = vadd.f32 %v3396_v35, %v3116_v50 }
 0xc81   : > { %v3340_v37 = vadd.f32 %v3339_v63, %v3108_v62  ;;  %v3341_v33 = vpop.f32.mrb[6].mxu0  ;;  %3413 = vst [vmem:[#allocation3 + $0x70] sm:$0xff] %v3395_v42 }
 0xc82   : > { %3407 = vst [vmem:[#allocation3 + $0x40] sm:$0xff] %v3338_v36  ;;  %v3342_v60 = vadd.f32 %v3341_v33, %v3104_v58  ;;  %v3343_v51 = vpop.f32.mrb[7].mxu0  ;;  %3414 = vst [vmem:[#allocation3 + $0x78] sm:$0xff] %v3397_v29 }
 0xc83   : > { %3408 = vst [vmem:[#allocation3 + $0x48] sm:$0xff] %v3340_v37  ;;  %v3344_v32 = vadd.f32 %v3343_v51, %v3108_v62 }
 0xc84   : > { %3411 = vst [vmem:[#allocation3 + $0x60] sm:$0xff] %v3342_v60 }
 0xc85   : > { %3412 = vst [vmem:[#allocation3 + $0x68] sm:$0xff] %v3344_v32 }
 0xc86 PF: > { %3417 = sbr.rel (%p4443_p6) target bundleno = 3466 (0xd8a), region = 84  ;;  %v5273_v58 = vld [vmem:[%s6052_s18 + $0x4] ss:$16 sps:$4 sm:$0xff] (!%p4443_p6)   ;;  %v5275_v55 = vld [vmem:[%s6052_s18 + $0xc] ss:$16 sps:$4 sm:$0xff] (!%p4443_p6)   ;;  %v5686_v62 = vmov (!%p4443_p6), 0  }
 0xc87   : > { %3665 = vmatprep.mubr.bf16.mxu0 (!%p4443_p6), %v5686_v62  ;;  %3718 = vmatprep.mubr.bf16.mxu1 (!%p4443_p6), %v5686_v62  ;;  %v5277_v50 = vld [vmem:[%s6052_s18] ss:$16 sps:$4 sm:$0xff] (!%p4443_p6)   ;;  %v5278_v40 = vld [vmem:[%s6052_s18 + $0x8] ss:$16 sps:$4 sm:$0xff] (!%p4443_p6)   ;;  %v5279_v39 = vld [vmem:[%s6052_s18 + $0x24] ss:$16 sps:$4 sm:$0xff] (!%p4443_p6)  }
 0xc88   : > { %3633 = vmatprep.subr.bf16.mxu0 (!%p4443_p6), %v5273_v58  ;;  %3686 = vmatprep.subr.bf16.mxu1 (!%p4443_p6), %v5275_v55  ;;  %v5281_v34 = vld [vmem:[%s6052_s18 + $0x2c] ss:$16 sps:$4 sm:$0xff] (!%p4443_p6)   ;;  %v5283_v41 = vld [vmem:[%s6052_s18 + $0x20] ss:$16 sps:$4 sm:$0xff] (!%p4443_p6)   ;;  %v5284_v30 = vld [vmem:[%s6052_s18 + $0x28] ss:$16 sps:$4 sm:$0xff] (!%p4443_p6)  }
 0xc89   : > { %3634 = vmatpush1.bf16.msra.mxu0 (!%p4443_p6), %v5277_v50  ;;  %3687 = vmatpush1.bf16.msra.mxu1 (!%p4443_p6), %v5278_v40  ;;  %v5285_v54 = vld [vmem:[%s6052_s18 + $0x44] ss:$16 sps:$4 sm:$0xff] (!%p4443_p6)   ;;  %v5287_v59 = vld [vmem:[%s6052_s18 + $0x4c] ss:$16 sps:$4 sm:$0xff] (!%p4443_p6)   ;;  %v5289_v44 = vld [vmem:[%s6052_s18 + $0x40] ss:$16 sps:$4 sm:$0xff] (!%p4443_p6)  }
 0xc8a   : > { %3635 = vmatprep.subr.bf16.mxu0 (!%p4443_p6), %v5279_v39  ;;  %3688 = vmatprep.subr.bf16.mxu1 (!%p4443_p6), %v5281_v34  ;;  %v5290_v45 = vld [vmem:[%s6052_s18 + $0x48] ss:$16 sps:$4 sm:$0xff] (!%p4443_p6)   ;;  %v5291_v61 = vld [vmem:[%s6052_s18 + $0x64] ss:$16 sps:$4 sm:$0xff] (!%p4443_p6)   ;;  %v5293_v46 = vld [vmem:[%s6052_s18 + $0x6c] ss:$16 sps:$4 sm:$0xff] (!%p4443_p6)  }
 0xc8b   : > { %v5295_v36 = vld [vmem:[%s6052_s18 + $0x60] ss:$16 sps:$4 sm:$0xff] (!%p4443_p6)   ;;  %v5296_v52 = vld [vmem:[%s6052_s18 + $0x68] ss:$16 sps:$4 sm:$0xff] (!%p4443_p6)   ;;  %v5297_v63 = vld [vmem:[%s6052_s18 + $0x84] ss:$16 sps:$4 sm:$0xff] (!%p4443_p6)  }
 0xc8c   : > { %v5299_v31 = vld [vmem:[%s6052_s18 + $0x8c] ss:$16 sps:$4 sm:$0xff] (!%p4443_p6)   ;;  %v5301_v37 = vld [vmem:[%s6052_s18 + $0x80] ss:$16 sps:$4 sm:$0xff] (!%p4443_p6)   ;;  %v5302_v38 = vld [vmem:[%s6052_s18 + $0x88] ss:$16 sps:$4 sm:$0xff] (!%p4443_p6)  }
 0xc8d   : > { %3636 = vmatpush1.bf16.msra.mxu0 %v5283_v41  ;;  %3689 = vmatpush1.bf16.msra.mxu1 %v5284_v30  ;;  %v5303_v33 = vld [vmem:[%s6052_s18 + $0xa4] ss:$16 sps:$4 sm:$0xff]   ;;  %v5305_v43 = vld [vmem:[%s6052_s18 + $0xac] ss:$16 sps:$4 sm:$0xff]   ;;  %v5307_v60 = vld [vmem:[%s6052_s18 + $0xa0] ss:$16 sps:$4 sm:$0xff]   ;;  %v3453_v41 = vlaneseq }
 0xc8e   : > { %3637 = vmatprep.subr.bf16.mxu0 %v5285_v54  ;;  %3690 = vmatprep.subr.bf16.mxu1 %v5287_v59  ;;  %v5308_v42 = vld [vmem:[%s6052_s18 + $0xa8] ss:$16 sps:$4 sm:$0xff]   ;;  %v5309_v51 = vld [vmem:[%s6052_s18 + $0xc4] ss:$16 sps:$4 sm:$0xff]   ;;  %v5311_v35 = vld [vmem:[%s6052_s18 + $0xcc] ss:$16 sps:$4 sm:$0xff]  }
 0xc8f   : > { %v5313_v32 = vld [vmem:[%s6052_s18 + $0xc0] ss:$16 sps:$4 sm:$0xff]   ;;  %v5314_v29 = vld [vmem:[%s6052_s18 + $0xc8] ss:$16 sps:$4 sm:$0xff]   ;;  %v5315_v58 = vld [vmem:[%s6052_s18 + $0xe4] ss:$16 sps:$4 sm:$0xff]  }
 0xc90   : > { %v5317_v55 = vld [vmem:[%s6052_s18 + $0xec] ss:$16 sps:$4 sm:$0xff]   ;;  %v5319_v50 = vld [vmem:[%s6052_s18 + $0xe0] ss:$16 sps:$4 sm:$0xff]   ;;  %v5320_v40 = vld [vmem:[%s6052_s18 + $0xe8] ss:$16 sps:$4 sm:$0xff]  }
 0xc91   : > { %3638 = vmatpush1.bf16.msra.mxu0 %v5289_v44  ;;  %3691 = vmatpush1.bf16.msra.mxu1 %v5290_v45  ;;  %v3418_v39 = vld [vmem:[#allocation2 + $0x40] sm:$0xff]  ;;  %v3419_v34 = vld [vmem:[#allocation2 + $0x48] sm:$0xff]  ;;  %v3454_v30 = vshrl.u32 %v3453_v41, 7 }
 0xc92   : > { %3639 = vmatprep.subr.bf16.mxu0 %v5291_v61  ;;  %3692 = vmatprep.subr.bf16.mxu1 %v5293_v46 }
 0xc93   : > { %v3455_v54 = vsub.s32 0, %v3454_v30  ;;  %v3463_v59 = vsub.s32 2, %v3454_v30  ;;  %v3459_v44 = vsub.s32 1, %v3454_v30  ;;  %v3467_v45 = vsub.s32 3, %v3454_v30 }
 0xc95   : > { %3640 = vmatpush1.bf16.msra.mxu0 %v5295_v36  ;;  %3693 = vmatpush1.bf16.msra.mxu1 %v5296_v52  ;;  %v3456_v61 = vrot.slane %v6077_v2, %v3455_v54  ;;  %v3464_v46 = vrot.slane %v6077_v2, %v3463_v59  ;;  %v3460_v36 = vrot.slane %v6077_v2, %v3459_v44 }
 0xc96   : > { %3641 = vmatprep.subr.bf16.mxu0 %v5297_v63  ;;  %3694 = vmatprep.subr.bf16.mxu1 %v5299_v31  ;;  %v3468_v52 = vrot.slane %v6077_v2, %v3467_v45 }
 0xc99   : > { %3642 = vmatpush1.bf16.msra.mxu0 %v5301_v37  ;;  %3695 = vmatpush1.bf16.msra.mxu1 %v5302_v38 }
 0xc9a   : > { %3643 = vmatprep.subr.bf16.mxu0 %v5303_v33  ;;  %3696 = vmatprep.subr.bf16.mxu1 %v5305_v43 }
 0xc9d   : > { %3644 = vmatpush1.bf16.msra.mxu0 %v5307_v60  ;;  %3697 = vmatpush1.bf16.msra.mxu1 %v5308_v42 }
 0xc9e   : > { %3645 = vmatprep.subr.bf16.mxu0 %v5309_v51  ;;  %3698 = vmatprep.subr.bf16.mxu1 %v5311_v35 }
 0xca1   : > { %3646 = vmatpush1.bf16.msra.mxu0 %v5313_v32  ;;  %3699 = vmatpush1.bf16.msra.mxu1 %v5314_v29 }
 0xca2   : > { %3647 = vmatprep.subr.bf16.mxu0 %v5315_v58  ;;  %3700 = vmatprep.subr.bf16.mxu1 %v5317_v55 }
 0xca5   : > { %3648 = vmatpush1.bf16.msra.mxu0 %v5319_v50  ;;  %3701 = vmatpush1.bf16.msra.mxu1 %v5320_v40 }
 0xca8   : > { %3666 = vmatmul.mubr.bf16.vlgmr.msra.gmra.mrb[0].mxu0 %v3418_v39  ;;  %3719 = vmatmul.mubr.bf16.vlgmr.msra.gmra.mrb[0].mxu1 %v3418_v39 }
 0xca9   : > { %3675 = vmatprep.mubr.bf16.mxu0 %v5686_v62  ;;  %3728 = vmatprep.mubr.bf16.mxu1 %v5686_v62 }
 0xcb0   : > { %3676 = vmatmul.mubr.bf16.gmra.mrb[4].mxu0 %v3419_v34  ;;  %3729 = vmatmul.mubr.bf16.gmra.mrb[4].mxu1 %v3419_v34 }
 0xd7b   : > { %v3667_v63 = vpop.f32.mrb[0].mxu0  ;;  %v3720_v31 = vpop.f32.mrb[0].mxu1 }
 0xd7c   : > { %v3668_v62 = vadd.f32 %v3667_v63, %v3456_v61  ;;  %v3721_v37 = vadd.f32 %v3720_v31, %v3464_v46  ;;  %v3669_v38 = vpop.f32.mrb[1].mxu0  ;;  %v3722_v33 = vpop.f32.mrb[1].mxu1 }
 0xd7d   : > { %v3670_v43 = vadd.f32 %v3669_v38, %v3460_v36  ;;  %v3723_v60 = vadd.f32 %v3722_v33, %v3468_v52  ;;  %v3671_v42 = vpop.f32.mrb[2].mxu0  ;;  %v3724_v51 = vpop.f32.mrb[2].mxu1 }
 0xd7e   : > { %3739 = vst [vmem:[#allocation3] sm:$0xff] %v3668_v62  ;;  %3741 = vst [vmem:[#allocation3 + $0x10] sm:$0xff] %v3721_v37  ;;  %v3672_v35 = vadd.f32 %v3671_v42, %v3456_v61  ;;  %v3725_v32 = vadd.f32 %v3724_v51, %v3464_v46  ;;  %v3673_v29 = vpop.f32.mrb[3].mxu0  ;;  %v3726_v58 = vpop.f32.mrb[3].mxu1 }
 0xd7f   : > { %3740 = vst [vmem:[#allocation3 + $0x8] sm:$0xff] %v3670_v43  ;;  %3742 = vst [vmem:[#allocation3 + $0x18] sm:$0xff] %v3723_v60  ;;  %v3674_v55 = vadd.f32 %v3673_v29, %v3460_v36  ;;  %v3727_v2 = vadd.f32 %v3726_v58, %v3468_v52 }
 0xd80   : > { %3743 = vst [vmem:[#allocation3 + $0x20] sm:$0xff] %v3672_v35  ;;  %3745 = vst [vmem:[#allocation3 + $0x30] sm:$0xff] %v3725_v32 }
 0xd81   : > { %3744 = vst [vmem:[#allocation3 + $0x28] sm:$0xff] %v3674_v55  ;;  %3746 = vst [vmem:[#allocation3 + $0x38] sm:$0xff] %v3727_v2 }
 0xd83   : > { %v3677_v50 = vpop.f32.mrb[4].mxu0  ;;  %v3730_v40 = vpop.f32.mrb[4].mxu1 }
 0xd84   : > { %v3678_v39 = vadd.f32 %v3677_v50, %v3456_v61  ;;  %v3731_v34 = vadd.f32 %v3730_v40, %v3464_v46  ;;  %v3679_v41 = vpop.f32.mrb[5].mxu0  ;;  %v3732_v30 = vpop.f32.mrb[5].mxu1 }
 0xd85   : > { %v3680_v54 = vadd.f32 %v3679_v41, %v3460_v36  ;;  %v3733_v59 = vadd.f32 %v3732_v30, %v3468_v52  ;;  %v3681_v44 = vpop.f32.mrb[6].mxu0  ;;  %v3734_v45 = vpop.f32.mrb[6].mxu1 }
 0xd86   : > { %3747 = vst [vmem:[#allocation3 + $0x40] sm:$0xff] %v3678_v39  ;;  %3749 = vst [vmem:[#allocation3 + $0x50] sm:$0xff] %v3731_v34  ;;  %v3682_v63 = vadd.f32 %v3681_v44, %v3456_v61  ;;  %v3735_v31 = vadd.f32 %v3734_v45, %v3464_v46  ;;  %v3683_v62 = vpop.f32.mrb[7].mxu0  ;;  %v3736_v37 = vpop.f32.mrb[7].mxu1 }
 0xd87   : > { %3748 = vst [vmem:[#allocation3 + $0x48] sm:$0xff] %v3680_v54  ;;  %3750 = vst [vmem:[#allocation3 + $0x58] sm:$0xff] %v3733_v59  ;;  %v3684_v38 = vadd.f32 %v3683_v62, %v3460_v36  ;;  %v3737_v33 = vadd.f32 %v3736_v37, %v3468_v52 }
 0xd88   : > { %3751 = vst [vmem:[#allocation3 + $0x60] sm:$0xff] %v3682_v63  ;;  %3753 = vst [vmem:[#allocation3 + $0x70] sm:$0xff] %v3735_v31 }
 0xd89   : > { %3752 = vst [vmem:[#allocation3 + $0x68] sm:$0xff] %v3684_v38  ;;  %3754 = vst [vmem:[#allocation3 + $0x78] sm:$0xff] %v3737_v33 }
 0xd8a PF: > { %3764 = vmatprep.subr.bf16.mxu0 %v6410_v53  ;;  %3807 = vmatprep.subr.bf16.mxu1 %v6423_v49  ;;  %v3763_v61 = vld [vmem:[#allocation4] sm:$0xff]  ;;  %v3896_v58 = vld [vmem:[#allocation5] sm:$0xff]  ;;  %v3897_v50 = vld [vmem:[#allocation5 + $0x8] sm:$0xff]  ;;  %vm5687_vm0 = vmmov 0   ;;  %s7168_s7 = sld [smem:[#allocation27_spill]]  ;;  %s7169_s21 = sld [smem:[#allocation26_spill]] }
 0xd8b   : > { %3765 = vmatpush1.bf16.msra.mxu0 %v6414_v47  ;;  %3808 = vmatpush1.bf16.msra.mxu1 %v6429_v56  ;;  %s7171_s15 = sld [smem:[#allocation37_spill]]  ;;  %s7172_s10 = sld [smem:[#allocation34_spill]] }
 0xd8c   : > { %3766 = vmatprep.subr.bf16.mxu0 %v6418_v48  ;;  %3809 = vmatprep.subr.bf16.mxu1 %v6433_v3  ;;  %s4203_s19 = sshll.u32 %s6176_s4, 4  ;;  %s7173_s26 = sld [smem:[#allocation38_spill]]  ;;  %s7015_s19 = int_to_ptr.vmem [resolvable:$true] %s4203_s19 }
 0xd8d   : > { %3796 = vmatprep.mubr.bf16.mxu0 %v5681_v0  ;;  %3839 = vmatprep.mubr.bf16.mxu1 %v5681_v0 }
 0xd8f   : > { %3767 = vmatpush1.bf16.msra.mxu0 %v6438_v5  ;;  %3810 = vmatpush1.bf16.msra.mxu1 %v6449_v4 }
 0xd90   : > { %3768 = vmatprep.subr.bf16.mxu0 %v6444_v57  ;;  %3811 = vmatprep.subr.bf16.mxu1 %v6454_v6  ;;  %s4650_s17 = sshll.u32 %s7168_s7, 1  ;;  %s4651_s23 = sshll.u32 %s7169_s21, 2 }
 0xd91   : > { %s4200_s25 = sadd.s32 %s4651_s23, %s4650_s17  ;;  %s7021_s7 = scalar_lea.sflag [#allocation8], %s449_s22 }
 0xd92   : > { %s4652_s30 = sshll.u32 %s4200_s25, 7  ;;  %s7174_s20 = smov %s7173_s26 }
 0xd93   : > { %3769 = vmatpush1.bf16.msra.mxu0 %v6459_v7  ;;  %3812 = vmatpush1.bf16.msra.mxu1 %v6469_v8  ;;  %s7013_s24 = scalar_lea.hbm %s7173_s26, %s4652_s30  ;;  %s5505_s21 = scalar_lea.vmem %s7015_s19, 256 }
 0xd94   : > { %3770 = vmatprep.subr.bf16.mxu0 %v6464_v9  ;;  %3813 = vmatprep.subr.bf16.mxu1 %v6474_v10  ;;  %p5506_p12 = scmp.ne.s32.totalorder %s7015_s19, %s5505_s21  ;;  %p7175_p7 = scmp.ne.s32.totalorder %s7172_s10, 0 }
 0xd95   : > { %s5688_s17 = smov [#allocation14]  }
 0xd96   : > { %p5507_p13 = pnand %p5506_p12, %p7175_p7  ;;  %s5509_s23 = sshll.u32 %s5688_s17, 4  ;;  %s5510_s23 = int_to_ptr.vmem [resolvable:$false] %s5509_s23 }
 0xd97   : > { %3771 = vmatpush1.bf16.msra.mxu0 %v6479_v11  ;;  %3814 = vmatpush1.bf16.msra.mxu1 %v6489_v12  ;;  %s5511_s25 = scalar_lea.vmem %s5510_s23, 512  ;;  %p5512_p11 = scmp.lt.s32.totalorder %s7015_s19, %s5510_s23 }
 0xd98   : > { %3772 = vmatprep.subr.bf16.mxu0 %v6484_v13  ;;  %3815 = vmatprep.subr.bf16.mxu1 %v6494_v14  ;;  %p5508_p5 = pneg %p5507_p13  ;;  %p5513_p9 = scmp.lt.s32.totalorder %s5511_s25, %s5505_s21 }
 0xd9a   : > { %p5514_p3 = por %p5513_p9, %p5512_p11 }
 0xd9b   : > { %3773 = vmatpush1.bf16.msra.mxu0 %v6499_v15  ;;  %3816 = vmatpush1.bf16.msra.mxu1 %v6509_v16 }
 0xd9c   : > { %3774 = vmatprep.subr.bf16.mxu0 %v6504_v17  ;;  %3817 = vmatprep.subr.bf16.mxu1 %v6514_v18  ;;  %p5515_p10 = pnand %p5514_p3, %p5508_p5 }
 0xd9f   : > { %3775 = vmatpush1.bf16.msra.mxu0 %v6519_v19  ;;  %3818 = vmatpush1.bf16.msra.mxu1 %v6529_v20 }
 0xda0   : > { %3776 = vmatprep.subr.bf16.mxu0 %v6524_v21  ;;  %3819 = vmatprep.subr.bf16.mxu1 %v6534_v22 }
 0xda3   : > { %3777 = vmatpush1.bf16.msra.mxu0 %v6539_v23  ;;  %3820 = vmatpush1.bf16.msra.mxu1 %v6549_v24 }
 0xda4   : > { %3778 = vmatprep.subr.bf16.mxu0 %v6544_v25  ;;  %3821 = vmatprep.subr.bf16.mxu1 %v6554_v26 }
 0xda7   : > { %3779 = vmatpush1.bf16.msra.mxu0 %v6559_v27  ;;  %3822 = vmatpush1.bf16.msra.mxu1 %v6565_v28 }
 0xda8   : > { %3922 = vmatprep.subr.bf16.mxu0 %v6410_v53  ;;  %3965 = vmatprep.subr.bf16.mxu1 %v6423_v49  ;;  %v3755_v53 = vld [vmem:[#allocation3] sm:$0xff] }
 0xda9   : > { %v3759_v49 = vld [vmem:[#allocation3 + $0x20] sm:$0xff] }
 0xdaa   : > { %3797 = vmatmul.mubr.bf16.vlgmr.msra.gmra.mrb[0].mxu0 %v3763_v61  ;;  %3840 = vmatmul.mubr.bf16.vlgmr.msra.gmra.mrb[0].mxu1 %v3763_v61 }
 0xdab   : > { %3923 = vmatpush1.bf16.msra.mxu0 %v6414_v47  ;;  %3966 = vmatpush1.bf16.msra.mxu1 %v6429_v56  ;;  %v3756_v47 = vld [vmem:[#allocation3 + $0x8] sm:$0xff] }
 0xdac   : > { %3924 = vmatprep.subr.bf16.mxu0 %v6418_v48  ;;  %3967 = vmatprep.subr.bf16.mxu1 %v6433_v3 }
 0xdad   : > { %3954 = vmatprep.mubr.bf16.mxu0 %v5681_v0  ;;  %3997 = vmatprep.mubr.bf16.mxu1 %v5681_v0 }
 0xdaf   : > { %3925 = vmatpush1.bf16.msra.mxu0 %v6438_v5  ;;  %3968 = vmatpush1.bf16.msra.mxu1 %v6449_v4 }
 0xdb0   : > { %3926 = vmatprep.subr.bf16.mxu0 %v6444_v57  ;;  %3969 = vmatprep.subr.bf16.mxu1 %v6454_v6  ;;  %v3760_v57 = vld [vmem:[#allocation3 + $0x28] sm:$0xff] }
 0xdb3   : > { %3927 = vmatpush1.bf16.msra.mxu0 %v6459_v7  ;;  %3970 = vmatpush1.bf16.msra.mxu1 %v6469_v8 }
 0xdb4   : > { %3928 = vmatprep.subr.bf16.mxu0 %v6464_v9  ;;  %3971 = vmatprep.subr.bf16.mxu1 %v6474_v10 }
 0xdb7   : > { %3929 = vmatpush1.bf16.msra.mxu0 %v6479_v11  ;;  %3972 = vmatpush1.bf16.msra.mxu1 %v6489_v12 }
 0xdb8   : > { %3930 = vmatprep.subr.bf16.mxu0 %v6484_v13  ;;  %3973 = vmatprep.subr.bf16.mxu1 %v6494_v14 }
 0xdbb   : > { %3931 = vmatpush1.bf16.msra.mxu0 %v6499_v15  ;;  %3974 = vmatpush1.bf16.msra.mxu1 %v6509_v16  ;;  %v3758_v15 = vld [vmem:[#allocation3 + $0x18] sm:$0xff] }
 0xdbc   : > { %3932 = vmatprep.subr.bf16.mxu0 %v6504_v17  ;;  %3975 = vmatprep.subr.bf16.mxu1 %v6514_v18  ;;  %v3762_v18 = vld [vmem:[#allocation3 + $0x38] sm:$0xff] }
 0xdbf   : > { %3933 = vmatpush1.bf16.msra.mxu0 %v6519_v19  ;;  %3976 = vmatpush1.bf16.msra.mxu1 %v6529_v20  ;;  %v3757_v19 = vld [vmem:[#allocation3 + $0x10] sm:$0xff] }
 0xdc0   : > { %3934 = vmatprep.subr.bf16.mxu0 %v6524_v21  ;;  %3977 = vmatprep.subr.bf16.mxu1 %v6534_v22  ;;  %v3761_v20 = vld [vmem:[#allocation3 + $0x30] sm:$0xff] }
 0xdc3   : > { %3935 = vmatpush1.bf16.msra.mxu0 %v6539_v23  ;;  %3978 = vmatpush1.bf16.msra.mxu1 %v6549_v24 }
 0xdc4   : > { %3936 = vmatprep.subr.bf16.mxu0 %v6544_v25  ;;  %3979 = vmatprep.subr.bf16.mxu1 %v6554_v26 }
 0xdc7   : > { %3937 = vmatpush1.bf16.msra.mxu0 %v6559_v27  ;;  %3980 = vmatpush1.bf16.msra.mxu1 %v6565_v28 }
 0xdc8   : > { %4667 = vmatprep.subr.bf16.mxu0 %v5682_v1 }
 0xe7d   : > { %v3798_v48 = vpop.f32.mrb[0].mxu0  ;;  %v3841_v56 = vpop.f32.mrb[0].mxu1 }
 0xe7e   : > { %v3850_v3 = vadd.f32 %v3798_v48, %v3755_v53  ;;  %v3800_v5 = vpop.f32.mrb[1].mxu0  ;;  %v3843_v4 = vpop.f32.mrb[1].mxu1  ;;  %v3852_v23 = vadd.f32 %v3841_v56, %v3757_v19  ;;  %v5322_v48 = vld [vmem:[#allocation13 + $0x8] sm:$0xff]   ;;  %v5324_v56 = vld [vmem:[#allocation13 + $0x18] sm:$0xff]  }
 0xe7f   : > { %v3851_v6 = vadd.f32 %v3800_v5, %v3756_v47  ;;  %v3802_v7 = vpop.f32.mrb[2].mxu0  ;;  %v3845_v9 = vpop.f32.mrb[2].mxu1  ;;  %v3853_v21 = vadd.f32 %v3843_v4, %v3758_v15  ;;  %v5321_v47 = vld [vmem:[#allocation13] sm:$0xff]   ;;  %v5326_v5 = vld [vmem:[#allocation13 + $0x28] sm:$0xff]   ;;  %v5328_v4 = vld [vmem:[#allocation13 + $0x38] sm:$0xff]  }
 0xe80   : > { %v4628_v8 = vmul.f32 -1.442695, %v3850_v3  ;;  %v3854_v10 = vadd.f32 %v3802_v7, %v3759_v49  ;;  %v3804_v11 = vpop.f32.mrb[3].mxu0  ;;  %v3847_v13 = vpop.f32.mrb[3].mxu1  ;;  %v3856_v24 = vadd.f32 %v3845_v9, %v3761_v20  ;;  %v5323_v49 = vld [vmem:[#allocation13 + $0x10] sm:$0xff]   ;;  %v5325_v3 = vld [vmem:[#allocation13 + $0x20] sm:$0xff]  }
 0xe81   : > { %v4630_v12 = vmul.f32 -1.442695, %v3851_v6  ;;  %v3855_v14 = vadd.f32 %v3804_v11, %v3760_v57  ;;  %v3857_v22 = vadd.f32 %v3847_v13, %v3762_v18  ;;  %v4632_v25 = vmul.f32 -1.442695, %v3853_v21  ;;  %v5327_v57 = vld [vmem:[#allocation13 + $0x30] sm:$0xff]   ;;  %v3913_v6 = vld [vmem:[#allocation3 + $0x40] sm:$0xff] }
 0xe82   : > { %5329 = vpow2.f32 %v4628_v8  ;;  %v4629_v17 = vmul.f32 -1.442695, %v3854_v10  ;;  %v3914_v7 = vld [vmem:[#allocation3 + $0x48] sm:$0xff]  ;;  %v3917_v10 = vld [vmem:[#allocation3 + $0x60] sm:$0xff] }
 0xe83   : > { %5331 = vpow2.f32 %v4630_v12  ;;  %v4631_v16 = vmul.f32 -1.442695, %v3855_v14  ;;  %v4633_v26 = vmul.f32 -1.442695, %v3857_v22  ;;  %v3918_v14 = vld [vmem:[#allocation3 + $0x68] sm:$0xff] }
 0xe84   : > { %5333 = vpow2.f32 %v4629_v17 }
 0xe85   : > { %5335 = vpow2.f32 %v4631_v16 }
 0xe86   : > { %5337 = vtanh.f32 %v3852_v23 }
 0xe87   : > { %5339 = vpow2.f32 %v4632_v25 }
 0xe88   : > { %5341 = vtanh.f32 %v3856_v24 }
 0xe89   : > { %5343 = vpow2.f32 %v4633_v26  ;;  %v3915_v26 = vld [vmem:[#allocation3 + $0x50] sm:$0xff] }
 0xe8c   : > { %v5330_v27 = vpop.eup %5329 }
 0xe8d   : > { %v5332_v28 = vpop.eup %5331  ;;  %v3864_v46 = vadd.f32 1.0, %v5330_v27 }
 0xe8e   : > { %v5334_v36 = vpop.eup %5333  ;;  %v3876_v52 = vadd.f32 1.0, %v5332_v28  ;;  %v3920_v28 = vld [vmem:[#allocation3 + $0x78] sm:$0xff] }
 0xe8f   : > { %v5336_v43 = vpop.eup %5335  ;;  %5345 = vrcp.f32 %v3864_v46  ;;  %v3865_v60 = vadd.f32 1.0, %v5334_v36  ;;  %v3919_v46 = vld [vmem:[#allocation3 + $0x70] sm:$0xff] }
 0xe90   : > { %5347 = vrcp.f32 %v3876_v52  ;;  %v3877_v42 = vadd.f32 1.0, %v5336_v43  ;;  %v5338_v51 = vpop.eup %5337 }
 0xe91   : > { %5349 = vrcp.f32 %v3865_v60  ;;  %v5340_v35 = vpop.eup %5339 }
 0xe92   : > { %5351 = vrcp.f32 %v3877_v42  ;;  %v5342_v32 = vpop.eup %5341  ;;  %v3890_v39 = vadd.f32 1.0, %v5340_v35 }
 0xe93   : > { %v5344_v29 = vpop.eup %5343 }
 0xe94   : > { %v3891_v59 = vadd.f32 1.0, %v5344_v29  ;;  %5353 = vrcp.f32 %v3890_v39 }
 0xe99   : > { %v5346_v55 = vpop.eup %5345 }
 0xe9a   : > { %v5348_v2 = vpop.eup %5347  ;;  %v3900_v40 = vmul.f32 %v5346_v55, %v5338_v51 }
 0xe9b   : > { %v5350_v34 = vpop.eup %5349  ;;  %v3898_v41 = vmul.f32 %v5348_v2, %v3896_v58 }
 0xe9c   : > { %v5352_v30 = vpop.eup %5351  ;;  %v3901_v54 = vmul.f32 %v5350_v34, %v5342_v32 }
 0xe9d   : > { %v3899_v44 = vmul.f32 %v5352_v30, %v3897_v50  ;;  %v6987_v45 = vadd.f32 %v3900_v40, %v3898_v41 }
 0xe9e   : > { %v5354_v31 = vpop.eup %5353 }
 0xe9f   : > { %5355 = vtanh.f32 %v6987_v45  ;;  %v6990_v63 = vadd.f32 %v3901_v54, %v3899_v44 }
 0xea0   : > { %5357 = vrcp.f32 %v3891_v59 }
 0xea1   : > { %5359 = vtanh.f32 %v6990_v63 }
 0xea9   : > { %v5356_v62 = vpop.eup %5355 }
 0xeaa   : > { %v5358_v37 = vpop.eup %5357  ;;  %v3906_v33 = vmul.f32 %v5356_v62, %v5354_v31 }
 0xeab   : > { %v5360_v38 = vpop.eup %5359 }
 0xeac   : > { %v3907_v61 = vmul.f32 %v5360_v38, %v5358_v37 }
 0xeae   : > { %v3908_v53 = vpack.c.bf16 %v3907_v61, %v3906_v33 }
 0xeb0   : > { %3912 = vst [vmem:[#allocation2 + $0x40] sm:$0xff] %v3908_v53  ;;  %3955 = vmatmul.mubr.bf16.vlgmr.msra.gmra.mrb[4].mxu0 %v3908_v53  ;;  %3998 = vmatmul.mubr.bf16.vlgmr.msra.gmra.mrb[4].mxu1 %v3908_v53 }
 0xeb1   : > { %4668 = vmatpush3.bf16.msra.mxu0 %v5321_v47  ;;  %4683 = vmatprep.mubr.msk.bf16.mxu0 %vm5687_vm0, %v5682_v1 }
 0xeb2   : > { %4669 = vmatprep.subr.bf16.mxu0 %v5682_v1 }
 0xeb5   : > { %4670 = vmatpush3.bf16.msra.mxu0 %v5322_v48 }
 0xeb6   : > { %4671 = vmatprep.subr.bf16.mxu0 %v5682_v1 }
 0xeb9   : > { %4672 = vmatpush3.bf16.msra.mxu0 %v5323_v49 }
 0xeba   : > { %4673 = vmatprep.subr.bf16.mxu0 %v5682_v1 }
 0xebd   : > { %4674 = vmatpush3.bf16.msra.mxu0 %v5324_v56 }
 0xebe   : > { %4675 = vmatprep.subr.bf16.mxu0 %v5682_v1 }
 0xec1   : > { %4676 = vmatpush3.bf16.msra.mxu0 %v5325_v3 }
 0xec2   : > { %4677 = vmatprep.subr.bf16.mxu0 %v5682_v1 }
 0xec5   : > { %4678 = vmatpush3.bf16.msra.mxu0 %v5326_v5 }
 0xec6   : > { %4679 = vmatprep.subr.bf16.mxu0 %v5682_v1 }
 0xec9   : > { %4680 = vmatpush3.bf16.msra.mxu0 %v5327_v57 }
 0xeca   : > { %4681 = vmatprep.subr.bf16.mxu0 %v5682_v1  ;;  %v3916_v1 = vld [vmem:[#allocation3 + $0x58] sm:$0xff] }
 0xecd   : > { %4682 = vmatpush3.bf16.msra.mxu0 %v5328_v4 }
 0xf83   : > { %v3956_v9 = vpop.f32.mrb[4].mxu0  ;;  %v3999_v8 = vpop.f32.mrb[4].mxu1 }
 0xf84   : > { %v4008_v11 = vadd.f32 %v3956_v9, %v3913_v6  ;;  %v3958_v13 = vpop.f32.mrb[5].mxu0  ;;  %v4001_v12 = vpop.f32.mrb[5].mxu1  ;;  %v4010_v36 = vadd.f32 %v3999_v8, %v3915_v26 }
 0xf85   : > { %v4009_v15 = vadd.f32 %v3958_v13, %v3914_v7  ;;  %v3960_v17 = vpop.f32.mrb[6].mxu0  ;;  %v4003_v16 = vpop.f32.mrb[6].mxu1  ;;  %v4011_v27 = vadd.f32 %v4001_v12, %v3916_v1 }
 0xf86   : > { %v4634_v18 = vmul.f32 -1.442695, %v4008_v11  ;;  %v4012_v19 = vadd.f32 %v3960_v17, %v3917_v10  ;;  %v3962_v21 = vpop.f32.mrb[7].mxu0  ;;  %v4005_v20 = vpop.f32.mrb[7].mxu1  ;;  %v4014_v60 = vadd.f32 %v4003_v16, %v3919_v46 }
 0xf87   : > { %v4636_v22 = vmul.f32 -1.442695, %v4009_v15  ;;  %v4013_v23 = vadd.f32 %v3962_v21, %v3918_v14  ;;  %v4638_v52 = vmul.f32 -1.442695, %v4011_v27  ;;  %v4015_v43 = vadd.f32 %v4005_v20, %v3920_v28 }
 0xf88   : > { %5361 = vpow2.f32 %v4634_v18  ;;  %v4635_v25 = vmul.f32 -1.442695, %v4012_v19 }
 0xf89   : > { %5363 = vpow2.f32 %v4636_v22  ;;  %v4637_v24 = vmul.f32 -1.442695, %v4013_v23  ;;  %v4639_v32 = vmul.f32 -1.442695, %v4015_v43 }
 0xf8a   : > { %5365 = vpow2.f32 %v4635_v25 }
 0xf8b   : > { %5367 = vpow2.f32 %v4637_v24 }
 0xf8c   : > { %5369 = vtanh.f32 %v4010_v36 }
 0xf8d   : > { %5371 = vpow2.f32 %v4638_v52 }
 0xf8e   : > { %5373 = vtanh.f32 %v4014_v60 }
 0xf92   : > { %v5362_v42 = vpop.eup %5361 }
 0xf93   : > { %v5364_v51 = vpop.eup %5363  ;;  %v4022_v35 = vadd.f32 1.0, %v5362_v42 }
 0xf94   : > { %v4034_v29 = vadd.f32 1.0, %v5364_v51  ;;  %v5366_v58 = vpop.eup %5365 }
 0xf95   : > { %5375 = vrcp.f32 %v4022_v35  ;;  %v4023_v55 = vadd.f32 1.0, %v5366_v58  ;;  %v5368_v2 = vpop.eup %5367 }
 0xf96   : > { %5377 = vrcp.f32 %v4034_v29  ;;  %v4035_v50 = vadd.f32 1.0, %v5368_v2  ;;  %v5370_v40 = vpop.eup %5369 }
 0xf97   : > { %5379 = vpow2.f32 %v4639_v32  ;;  %v5372_v39 = vpop.eup %5371 }
 0xf98   : > { %5381 = vrcp.f32 %v4023_v55  ;;  %v5374_v34 = vpop.eup %5373  ;;  %v4048_v59 = vadd.f32 1.0, %v5372_v39 }
 0xf99   : > { %5383 = vrcp.f32 %v4035_v50 }
 0xf9a   : > { %5385 = vrcp.f32 %v4048_v59 }
 0xf9f   : > { %v5376_v41 = vpop.eup %5375 }
 0xfa0   : > { %v5378_v30 = vpop.eup %5377  ;;  %v4058_v54 = vmul.f32 %v5376_v41, %v5370_v40 }
 0xfa1   : > { %v5380_v44 = vpop.eup %5379  ;;  %v4056_v31 = vmul.f32 %v5378_v30, %v6987_v45 }
 0xfa2   : > { %v5382_v62 = vpop.eup %5381  ;;  %v4049_v61 = vadd.f32 1.0, %v5380_v44 }
 0xfa3   : > { %v4060_v37 = vadd.f32 %v4058_v54, %v4056_v31  ;;  %v4059_v38 = vmul.f32 %v5382_v62, %v5374_v34  ;;  %v5384_v33 = vpop.eup %5383 }
 0xfa4   : > { %v4057_v53 = vmul.f32 %v5384_v33, %v6990_v63  ;;  %v5386_v48 = vpop.eup %5385  ;;  %v4640_v63 = vld [vmem:[%s7171_s15] ss:$0 sm:$0xff] }
 0xfa5   : > { %5387 = vtanh.f32 %v4060_v37  ;;  %4067 = vst [vmem:[#allocation5] sm:$0xff] %v4060_v37 }
 0xfa6   : > { %v4061_v47 = vadd.f32 %v4059_v38, %v4057_v53  ;;  %5389 = vrcp.f32 %v4049_v61 }
 0xfa8   : > { %5391 = vtanh.f32 %v4061_v47  ;;  %4068 = vst [vmem:[#allocation5 + $0x8] sm:$0xff] %v4061_v47 }
 0xfaf   : > { %v5388_v49 = vpop.eup %5387 }
 0xfb0   : > { %v4064_v45 = vmul.f32 %v5388_v49, %v5386_v48  ;;  %v5390_v56 = vpop.eup %5389 }
 0xfb2   : > { %v5392_v3 = vpop.eup %5391 }
 0xfb3   : > { %v4065_v5 = vmul.f32 %v5392_v3, %v5390_v56 }
 0xfb5   : > { %v4066_v57 = vpack.c.bf16 %v4065_v5, %v4064_v45 }
 0xfb7   : > { %4069 = vst [vmem:[#allocation4] sm:$0xff] %v4066_v57  ;;  %4070 = vst [vmem:[#allocation2 + $0x48] sm:$0xff] %v4066_v57  ;;  %v4072_v4 = vmax.bf16 %v5681_v0, %v4066_v57 }
 0xfb9   : > { %4684 = vmatmul.mubr.bf16.vlgmr.msra.gmra.mrb[8].mxu0 %v4072_v4 }
0x108c   : > { %v4178_v6 = vpop.f32.mrb[8].mxu0 }
0x108d   : > { %v4179_v7 = vadd.f32 %v4640_v63, %v4178_v6  ;;  %v4685_v9 = vpop.f32.mrb[9].mxu0 }
0x108e   : > { %v4181_v8 = vpop.f32.mrb[10].mxu0 }
0x108f   : > { %4185 = vst [vmem:[%s6176_s4] sm:$0xff] %v4179_v7  ;;  %v4182_v0 = vadd.f32 %v4640_v63, %v4181_v8  ;;  %v4686_v10 = vpop.f32.mrb[11].mxu0 }
0x1091   : > { %4186 = vst [vmem:[%s6176_s4 + $0x8] sm:$0xff] %v4182_v0 }
0x1092   : > { %5518 = shalt.err (!%p5515_p10)
}
0x1093   : > { %s5519_s22 = scalar_lea.hbm %s7013_s24, 256  ;;  %s5523_s27 = scalar_lea.hbm %s7174_s20, 1024 }
0x1094   : > { %p5520_p0 = scmp.ne.s32.totalorder %s7013_s24, %s5519_s22  ;;  %p5524_p2 = scmp.lt.u32.totalorder %s7013_s24, %s7174_s20 }
0x1095   : > { %p5525_p4 = scmp.lt.u32.totalorder %s5523_s27, %s5519_s22  ;;  %p5527_p12 = scmp.lt.u32.totalorder %s5519_s22, %s7013_s24 }
0x1096   : > { %p5521_p1 = pnand %p5520_p0, %p7175_p7 }
0x1097   : > { %p5526_p6 = por %p5525_p4, %p5524_p2 }
0x1098   : > { %p5522_p8 = pneg %p5521_p1 }
0x1099   : > { %p5528_p13 = por %p5527_p12, %p5526_p6 }
0x109b   : > { %p5529_p5 = pnand %p5528_p13, %p5522_p8 }
0x109d   : > { %5532 = shalt.err (!%p5529_p5)
}
0x109e   : > { %s5689_s30 = smov 128   ;;  %s5690_s16 = smov 8  }
0x109f   : > { %4710 = dma.vmem_to_hbm [thread:$0]  (%p7175_p7), %s7015_s19, 256, %s7013_s24, %s7021_s7, %s5689_s30, %s5689_s30, %s5690_s16  }
0x10a0 PF: > { %s7176_s11 = sld [smem:[#allocation23_spill]]  ;;  %s7177_s26 = sld [smem:[#allocation35_spill]] }
0x10a1   : > { %p4727_p11 = scmp.ge.s32.totalorder %s5663_s14, 2 }
0x10a6   : > { %s4218_s21 = sand.u32 1, %s7176_s11   ;;  %p7178_p9 = scmp.ne.s32.totalorder %s7177_s26, 0 }
0x10a7   : > { %s4219_s17 = scalar_lea.sflag [#allocation8], %s4218_s21 }
0x10a8   : > { %p4720_p3 = pnand %p4727_p11, %p7178_p9 }
0x10aa   : > { %5606 = dma.done.wait (!%p4720_p3), %s4219_s17, 256  }
0x10ab   : > { %5608 = vsyncadd (!%p4720_p3), %s4219_s17, 4294967040  ;;  %s24_s14 = sadd.s32 1, %s5663_s14   ;;  %s7180_s24 = sld [smem:[#allocation24_spill]] }
0x10ac   : > { %p7050_p10 = scmp.ge.s32.totalorder %s24_s14, 6   ;;  %s7181_s25 = sld [smem:[#allocation25_spill]] }
0x10ad   : > { %s7182_s26 = sld [smem:[#allocation33_spill]]  ;;  %s7183_s10 = sld [smem:[#allocation30_spill]] }
0x10ae   : > { %s7184_s19 = sld [smem:[#allocation31_spill]]  ;;  %s7185_s7 = sld [smem:[#allocation28_spill]] }
0x10af   : > { %s7186_s22 = sld [smem:[#allocation29_spill]]  ;;  %s7187_s27 = smov %s5627_s28 }
0x10b0   : > { %s7188_s28 = smov %s5631_s29  ;;  %s7190_s30 = smov %s5639_s8 }
0x10b1   : > { %s7191_s8 = smov %s5643_s9  ;;  %s7194_s11 = smov %s5659_s13 }
0x10b2   :  { %23 = sbr.rel (!%p7050_p10) target bundleno = 15 (0xf), region = 158 }
0x10b3   : > { %s7189_s29 = smov %s7183_s10  ;;  %s7193_s10 = smov %s5655_s12 }
0x10b4   : > { %s7192_s9 = smov %s7184_s19  ;;  %s7195_s12 = smov %s7185_s7 }
0x10b5   : > { %s7196_s13 = smov %s7186_s22 }
0x10b9   :  { %4224 = vsyncpa [#allocation7], 1 }
0x10ba   :  { %4226 = vsyncpa [#allocation7 + $0x1], 1 }
0x10bb   :  { %4227 = vsyncpa [#allocation10], 1 }
0x10bc   :  { %4228 = vsyncpa [#allocation8], 1 }
0x10bd   :  { %4230 = vsyncpa [#allocation8 + $0x1], 1 }

</bundles_post_ra>
